<compile_context>
chip_gen: v7x
topology: tpu7x:2x2x1
jax: 0.10.0
libtpu: 0.0.40
codegen_flags: <defaults>
</compile_context>

<pallas_src>
import functools

import jax
import jax.numpy as jnp
import numpy as np
from jax.experimental import pallas as pl
from jax.experimental.pallas import tpu as pltpu


# ----------------------------------------------------------------------------
# Host-side constants: 1-D "bilinear upsample (align_corners) + reflection pad"
# resampling matrix.  Pure numpy, evaluated at trace time.  O(out*in) storage.
# ----------------------------------------------------------------------------
def _resample_pad_matrix(in_size, scale, pad):
    """Returns M (out_size + 2*pad, in_size) with M @ v = reflect_pad(upsample(v))."""
    if scale > 1:
        out_size = in_size * scale
        if out_size == 1:
            src = np.zeros((1,), np.float64)
        else:
            src = np.arange(out_size, dtype=np.float64) * ((in_size - 1) / (out_size - 1))
        i0 = np.clip(np.floor(src).astype(np.int64), 0, in_size - 1)
        i1 = np.clip(i0 + 1, 0, in_size - 1)
        w = src - i0
        A = np.zeros((out_size, in_size), np.float64)
        A[np.arange(out_size), i0] += 1.0 - w
        A[np.arange(out_size), i1] += w
    else:
        out_size = in_size
        A = np.eye(in_size, dtype=np.float64)
    # Reflection-pad row selection (PyTorch ReflectionPad2d semantics).
    idx = np.arange(-pad, out_size + pad)
    idx = np.where(idx < 0, -idx, idx)
    idx = np.where(idx >= out_size, 2 * (out_size - 1) - idx, idx)
    return A[idx].astype(np.float32)


# ----------------------------------------------------------------------------
# Pallas kernel: separable fused upsample+pad (MXU), depthwise KxK conv,
# pointwise 1x1 conv (VPU scalar-broadcast MACs) and InstanceNorm2d.
# One batch element per grid step ("parallel"); upsampled image never touches HBM.
# ----------------------------------------------------------------------------
def upsample_dwsc_in_kernel(x_ref, ry_ref, rxt_ref, dw_ref, pw_ref, o_ref,
                            xp_ref, *, C, Cout, K, Hin, Hp, Wp, H, W, eps):
    # x_ref  : (1, C*Hin, Win)  VMEM  pre-upsample input, channels stacked on rows
    # ry_ref : (Hp, Hin)        VMEM  row "upsample + reflection pad" operator
    # rxt_ref: (Win, Wp)        VMEM  column operator (pre-transposed)
    # dw_ref : (C, K*K)         SMEM  depthwise tap weights (scalar reads)
    # pw_ref : (Cout, C)        SMEM  pointwise 1x1 weights (scalar reads)
    # o_ref  : (1, Cout, H, W)  VMEM  exact NCHW output block
    # xp_ref : (C, Hp, Wp)      VMEM scratch: upsampled + reflection-padded image

    # 1) Separable bilinear-upsample + reflection-pad, resident in VMEM.
    #    1a) column resample for all channels in ONE MXU matmul (M = C*Hin).
    xq = jnp.dot(x_ref[0], rxt_ref[...],
                 preferred_element_type=jnp.float32)             # (C*Hin, Wp)
    #    1b) row resample per channel (small (Hp,Hin)@(Hin,Wp) matmuls).
    ry = ry_ref[...]
    for c in range(C):
        xp_ref[c] = jnp.dot(ry, xq[c * Hin:(c + 1) * Hin, :],
                            preferred_element_type=jnp.float32)  # (Hp, Wp)

    # 2) Depthwise KxK conv (stride 1): per-channel scalar-broadcast tap MACs;
    #    accumulator initialised with tap 0 (no zeros+add).
    dmaps = []
    for c in range(C):
        acc = dw_ref[c, 0] * xp_ref[c, 0:H, 0:W]
        for t in range(1, K * K):
            dy, dx = divmod(t, K)
            acc = acc + dw_ref[c, t] * xp_ref[c, dy:dy + H, dx:dx + W]
        dmaps.append(acc)                                        # (H, W)

    # 3) Pointwise 1x1 conv + 4) InstanceNorm2d (affine=False, biased variance,
    #    eps) with a mean-shifted two-pass variance.  Conv biases omitted: any
    #    per-channel constant cancels exactly under the non-affine InstanceNorm.
    inv_n = 1.0 / float(H * W)
    for o in range(Cout):
        y = pw_ref[o, 0] * dmaps[0]
        for c in range(1, C):
            y = y + pw_ref[o, c] * dmaps[c]
        mean = jnp.sum(y) * inv_n
        yc = y - mean
        var = jnp.sum(yc * yc) * inv_n
        o_ref[0, o] = (yc * jax.lax.rsqrt(var + eps)).astype(o_ref.dtype)


def upsample_conv_layer(x, params, *, kernel_size, upsample):
    """Forward pass of UpsampleConvLayer.  x: (N, C, H, W) float32, returns NCHW."""
    dw_w, dw_b, pw_w, pw_b = params
    del dw_b, pw_b  # exactly cancelled by the non-affine InstanceNorm
    K = kernel_size
    pad = int(np.floor(K / 2))
    N, C, Hin, Win = x.shape
    scale = int(upsample) if upsample else 1
    Ho, Wo = Hin * scale, Win * scale
    Hp, Wp = Ho + 2 * pad, Wo + 2 * pad
    H, W = Hp - K + 1, Wp - K + 1
    Cout = pw_w.shape[0]

    # Constant separable "upsample + reflection pad" operators (trace-time numpy).
    ry = jnp.asarray(_resample_pad_matrix(Hin, scale, pad))                 # (Hp, Hin)
    rxt = jnp.asarray(np.ascontiguousarray(
        _resample_pad_matrix(Win, scale, pad).T))                           # (Win, Wp)

    x_stk = x.astype(jnp.float32).reshape(N, C * Hin, Win)   # free view, stays NCHW
    dww = dw_w.reshape(C, K * K).astype(jnp.float32)         # tap-major per channel
    pww = pw_w.astype(jnp.float32)                           # (Cout, C)

    kernel = functools.partial(
        upsample_dwsc_in_kernel,
        C=C, Cout=Cout, K=K, Hin=Hin, Hp=Hp, Wp=Wp, H=H, W=W, eps=1e-5)

    out = pl.pallas_call(
        kernel,
        out_shape=jax.ShapeDtypeStruct((N, Cout, H, W), jnp.float32),
        grid_spec=pltpu.PrefetchScalarGridSpec(
            num_scalar_prefetch=0,
            grid=(N,),
            in_specs=[
                pl.BlockSpec((1, C * Hin, Win), lambda n: (n, 0, 0)),
                pl.BlockSpec((Hp, Hin), lambda n: (0, 0)),
                pl.BlockSpec((Win, Wp), lambda n: (0, 0)),
                pl.BlockSpec(memory_space=pltpu.MemorySpace.SMEM),
                pl.BlockSpec(memory_space=pltpu.MemorySpace.SMEM),
            ],
            out_specs=pl.BlockSpec((1, Cout, H, W), lambda n: (n, 0, 0, 0)),
            scratch_shapes=[pltpu.VMEM((C, Hp, Wp), jnp.float32)],
        ),
        compiler_params=pltpu.CompilerParams(
            dimension_semantics=("parallel",),
            vmem_limit_bytes=32 * 1024 * 1024),
    )(x_stk, ry, rxt, dww, pww)
    return out  # exact (N, Cout, H, W) -- no wrapper pad/reshape/crop round trip


# ----------------------------------------------------------------------------
# Pure-JAX reference (gather-based upsample, explicit pad, WITH biases,
# two-pass InstanceNorm, no MXU einsum) for an independent correctness check.
# ----------------------------------------------------------------------------
def upsample_bilinear_align_corners(x, scale):
    N, C, H, W = x.shape
    Ho, Wo = H * scale, W * scale

    def src_coords(in_s, out_s):
        if out_s == 1:
            return jnp.zeros((out_s,), jnp.float32)
        return jnp.arange(out_s, dtype=jnp.float32) * ((in_s - 1) / (out_s - 1))

    ys = src_coords(H, Ho)
    xs = src_coords(W, Wo)
    y0 = jnp.clip(jnp.floor(ys).astype(jnp.int32), 0, H - 1)
    y1 = jnp.clip(y0 + 1, 0, H - 1)
    x0 = jnp.clip(jnp.floor(xs).astype(jnp.int32), 0, W - 1)
    x1 = jnp.clip(x0 + 1, 0, W - 1)
    wy = (ys - y0.astype(jnp.float32))[:, None]
    wx = (xs - x0.astype(jnp.float32))[None, :]

    g00 = x[:, :, y0][:, :, :, x0]
    g01 = x[:, :, y0][:, :, :, x1]
    g10 = x[:, :, y1][:, :, :, x0]
    g11 = x[:, :, y1][:, :, :, x1]
    top = g00 * (1.0 - wx) + g01 * wx
    bot = g10 * (1.0 - wx) + g11 * wx
    return top * (1.0 - wy) + bot * wy


def reference_forward(x_nchw, params, *, kernel_size, upsample):
    dw_w, dw_b, pw_w, pw_b = params
    K = kernel_size
    pad = int(np.floor(K / 2))
    if upsample:
        x_nchw = upsample_bilinear_align_corners(x_nchw, upsample)
    xp = x_nchw if pad == 0 else jnp.pad(
        x_nchw, ((0, 0), (0, 0), (pad, pad), (pad, pad)), mode="reflect")
    N, C, Hp, Wp = xp.shape
    H, W = Hp - K + 1, Wp - K + 1
    acc = jnp.zeros((N, C, H, W), jnp.float32)
    for dy in range(K):
        for dx in range(K):
            acc = acc + xp[:, :, dy:dy + H, dx:dx + W] * dw_w[None, :, dy, dx, None, None]
    acc = acc + dw_b[None, :, None, None]
    Cout = pw_w.shape[0]
    pwo = jnp.zeros((N, Cout, H, W), jnp.float32)
    for c in range(C):
        pwo = pwo + acc[:, c:c + 1, :, :] * pw_w[None, :, c, None, None]
    pwo = pwo + pw_b[None, :, None, None]
    mean = pwo.mean(axis=(2, 3), keepdims=True)
    var = ((pwo - mean) ** 2).mean(axis=(2, 3), keepdims=True)
    return (pwo - mean) / jnp.sqrt(var + 1e-5)


if __name__ == "__main__":
    # Module config: UpsampleConvLayer(in=4, out=8, kernel_size=3, stride=1, upsample=2)
    in_channels, out_channels, kernel_size, upsample = 4, 8, 3, 2
    N, H, W = 2, 16, 16

    key = jax.random.PRNGKey(0)
    k_x, k_dw, k_db, k_pw, k_pb = jax.random.split(key, 5)
    x = jax.random.normal(k_x, (N, in_channels, H, W), jnp.float32)

    dw_w = jax.random.normal(k_dw, (in_channels, kernel_size, kernel_size), jnp.float32) * 0.2
    dw_b = jax.random.normal(k_db, (in_channels,), jnp.float32) * 0.1
    pw_w = jax.random.normal(k_pw, (out_channels, in_channels), jnp.float32) * 0.2
    pw_b = jax.random.normal(k_pb, (out_channels,), jnp.float32) * 0.1
    params = (dw_w, dw_b, pw_w, pw_b)

    out = upsample_conv_layer(x, params, kernel_size=kernel_size, upsample=upsample)
    out = jax.block_until_ready(out)

    ref = jax.block_until_ready(
        reference_forward(x, params, kernel_size=kernel_size, upsample=upsample))

    assert out.shape == (N, out_channels, H * upsample, W * upsample), out.shape
    np.testing.assert_allclose(np.asarray(out), np.asarray(ref), rtol=1e-4, atol=2e-4)
    print("KERNEL_OK")
</pallas_src>

<mosaic_0001>
module attributes {stable_mosaic.version = 11 : i64} {
  func.func @upsample_dwsc_in_kernel(%arg0: i32, %arg1: memref<1x64x16xf32, #tpu.memory_space<vmem>>, %arg2: memref<34x16xf32, #tpu.memory_space<vmem>>, %arg3: memref<16x34xf32, #tpu.memory_space<vmem>>, %arg4: memref<4x9xf32, #tpu.memory_space<smem>>, %arg5: memref<8x4xf32, #tpu.memory_space<smem>>, %arg6: memref<1x8x32x32xf32, #tpu.memory_space<vmem>>, %arg7: memref<4x34x34xf32, #tpu.memory_space<vmem>>) attributes {dimension_semantics = [#tpu.dimension_semantics<parallel>], iteration_bounds = array<i64: 2>, scalar_prefetch = 0 : i64, scratch_operands = 1 : i64, tpu.core_type = #tpu.core_type<tc>, window_params = [{transform_indices = @transform_0, window_bounds = array<i64: 1, 64, 16>}, {pipeline_mode = #tpu.pipeline_mode<synchronous>, transform_indices = @transform_1, window_bounds = array<i64: 34, 16>}, {pipeline_mode = #tpu.pipeline_mode<synchronous>, transform_indices = @transform_2, window_bounds = array<i64: 16, 34>}, {transform_indices = @transform_3, window_bounds = array<i64: 4, 9>}, {transform_indices = @transform_4, window_bounds = array<i64: 8, 4>}, {transform_indices = @transform_5, window_bounds = array<i64: 1, 8, 32, 32>}]} {
    %c0 = arith.constant 0 : index
    %c0_0 = arith.constant 0 : index
    %c0_1 = arith.constant 0 : index
    %0 = vector.load %arg1[%c0, %c0_0, %c0_1] : memref<1x64x16xf32, #tpu.memory_space<vmem>>, vector<1x64x16xf32>
    %1 = vector.shape_cast %0 : vector<1x64x16xf32> to vector<64x16xf32>
    %c0_2 = arith.constant 0 : index
    %c0_3 = arith.constant 0 : index
    %2 = vector.load %arg3[%c0_2, %c0_3] : memref<16x34xf32, #tpu.memory_space<vmem>>, vector<16x34xf32>
    %cst = arith.constant dense<0.000000e+00> : vector<64x34xf32>
    %3 = tpu.matmul %1, %2, %cst {dimension_numbers = #tpu.dot_dimension_numbers<[1], [0], [0], [1], [0, 0, 1, 1], [], []>} : vector<64x16xf32>, vector<16x34xf32>, vector<64x34xf32> -> vector<64x34xf32>
    %c0_4 = arith.constant 0 : index
    %c0_5 = arith.constant 0 : index
    %4 = vector.load %arg2[%c0_4, %c0_5] : memref<34x16xf32, #tpu.memory_space<vmem>>, vector<34x16xf32>
    %5 = vector.extract_strided_slice %3 {offsets = [0, 0], sizes = [16, 34], strides = [1, 1]} : vector<64x34xf32> to vector<16x34xf32>
    %cst_6 = arith.constant dense<0.000000e+00> : vector<34x34xf32>
    %6 = tpu.matmul %4, %5, %cst_6 {dimension_numbers = #tpu.dot_dimension_numbers<[1], [0], [0], [1], [0, 0, 1, 1], [], []>} : vector<34x16xf32>, vector<16x34xf32>, vector<34x34xf32> -> vector<34x34xf32>
    %c0_7 = arith.constant 0 : index
    %c0_8 = arith.constant 0 : index
    %c0_9 = arith.constant 0 : index
    %7 = vector.load %arg7[%c0_7, %c0_8, %c0_9] : memref<4x34x34xf32, #tpu.memory_space<vmem>>, vector<1x34x34xf32>
    %8 = vector.shape_cast %7 : vector<1x34x34xf32> to vector<34x34xf32>
    %9 = vector.shape_cast %6 : vector<34x34xf32> to vector<1x34x34xf32>
    tpu.vector_store %arg7[%c0_7, %c0_8, %c0_9], %9 {strides = array<i32>} : memref<4x34x34xf32, #tpu.memory_space<vmem>>, vector<1x34x34xf32>,
    %10 = vector.extract_strided_slice %3 {offsets = [16, 0], sizes = [16, 34], strides = [1, 1]} : vector<64x34xf32> to vector<16x34xf32>
    %cst_10 = arith.constant dense<0.000000e+00> : vector<34x34xf32>
    %11 = tpu.matmul %4, %10, %cst_10 {dimension_numbers = #tpu.dot_dimension_numbers<[1], [0], [0], [1], [0, 0, 1, 1], [], []>} : vector<34x16xf32>, vector<16x34xf32>, vector<34x34xf32> -> vector<34x34xf32>
    %c1 = arith.constant 1 : index
    %c0_11 = arith.constant 0 : index
    %c0_12 = arith.constant 0 : index
    %12 = vector.load %arg7[%c1, %c0_11, %c0_12] : memref<4x34x34xf32, #tpu.memory_space<vmem>>, vector<1x34x34xf32>
    %13 = vector.shape_cast %12 : vector<1x34x34xf32> to vector<34x34xf32>
    %14 = vector.shape_cast %11 : vector<34x34xf32> to vector<1x34x34xf32>
    tpu.vector_store %arg7[%c1, %c0_11, %c0_12], %14 {strides = array<i32>} : memref<4x34x34xf32, #tpu.memory_space<vmem>>, vector<1x34x34xf32>,
    %15 = vector.extract_strided_slice %3 {offsets = [32, 0], sizes = [16, 34], strides = [1, 1]} : vector<64x34xf32> to vector<16x34xf32>
    %cst_13 = arith.constant dense<0.000000e+00> : vector<34x34xf32>
    %16 = tpu.matmul %4, %15, %cst_13 {dimension_numbers = #tpu.dot_dimension_numbers<[1], [0], [0], [1], [0, 0, 1, 1], [], []>} : vector<34x16xf32>, vector<16x34xf32>, vector<34x34xf32> -> vector<34x34xf32>
    %c2 = arith.constant 2 : index
    %c0_14 = arith.constant 0 : index
    %c0_15 = arith.constant 0 : index
    %17 = vector.load %arg7[%c2, %c0_14, %c0_15] : memref<4x34x34xf32, #tpu.memory_space<vmem>>, vector<1x34x34xf32>
    %18 = vector.shape_cast %17 : vector<1x34x34xf32> to vector<34x34xf32>
    %19 = vector.shape_cast %16 : vector<34x34xf32> to vector<1x34x34xf32>
    tpu.vector_store %arg7[%c2, %c0_14, %c0_15], %19 {strides = array<i32>} : memref<4x34x34xf32, #tpu.memory_space<vmem>>, vector<1x34x34xf32>,
    %20 = vector.extract_strided_slice %3 {offsets = [48, 0], sizes = [16, 34], strides = [1, 1]} : vector<64x34xf32> to vector<16x34xf32>
    %cst_16 = arith.constant dense<0.000000e+00> : vector<34x34xf32>
    %21 = tpu.matmul %4, %20, %cst_16 {dimension_numbers = #tpu.dot_dimension_numbers<[1], [0], [0], [1], [0, 0, 1, 1], [], []>} : vector<34x16xf32>, vector<16x34xf32>, vector<34x34xf32> -> vector<34x34xf32>
    %c3 = arith.constant 3 : index
    %c0_17 = arith.constant 0 : index
    %c0_18 = arith.constant 0 : index
    %22 = vector.load %arg7[%c3, %c0_17, %c0_18] : memref<4x34x34xf32, #tpu.memory_space<vmem>>, vector<1x34x34xf32>
    %23 = vector.shape_cast %22 : vector<1x34x34xf32> to vector<34x34xf32>
    %24 = vector.shape_cast %21 : vector<34x34xf32> to vector<1x34x34xf32>
    tpu.vector_store %arg7[%c3, %c0_17, %c0_18], %24 {strides = array<i32>} : memref<4x34x34xf32, #tpu.memory_space<vmem>>, vector<1x34x34xf32>,
    %c0_19 = arith.constant 0 : index
    %c0_20 = arith.constant 0 : index
    %25 = memref.load %arg4[%c0_19, %c0_20] : memref<4x9xf32, #tpu.memory_space<smem>>
    %c0_21 = arith.constant 0 : index
    %c0_22 = arith.constant 0 : index
    %c0_23 = arith.constant 0 : index
    %26 = vector.load %arg7[%c0_21, %c0_22, %c0_23] : memref<4x34x34xf32, #tpu.memory_space<vmem>>, vector<1x32x32xf32>
    %27 = vector.shape_cast %26 : vector<1x32x32xf32> to vector<32x32xf32>
    %28 = vector.broadcast %25 : f32 to vector<32x32xf32>
    %29 = arith.mulf %28, %27 : vector<32x32xf32>
    %c0_24 = arith.constant 0 : index
    %c1_25 = arith.constant 1 : index
    %30 = memref.load %arg4[%c0_24, %c1_25] : memref<4x9xf32, #tpu.memory_space<smem>>
    %c0_26 = arith.constant 0 : index
    %c0_27 = arith.constant 0 : index
    %c1_28 = arith.constant 1 : index
    %31 = vector.load %arg7[%c0_26, %c0_27, %c1_28] : memref<4x34x34xf32, #tpu.memory_space<vmem>>, vector<1x32x32xf32>
    %32 = vector.shape_cast %31 : vector<1x32x32xf32> to vector<32x32xf32>
    %33 = vector.broadcast %30 : f32 to vector<32x32xf32>
    %34 = arith.mulf %33, %32 : vector<32x32xf32>
    %35 = arith.addf %29, %34 : vector<32x32xf32>
    %c0_29 = arith.constant 0 : index
    %c2_30 = arith.constant 2 : index
    %36 = memref.load %arg4[%c0_29, %c2_30] : memref<4x9xf32, #tpu.memory_space<smem>>
    %c0_31 = arith.constant 0 : index
    %c0_32 = arith.constant 0 : index
    %c2_33 = arith.constant 2 : index
    %37 = vector.load %arg7[%c0_31, %c0_32, %c2_33] : memref<4x34x34xf32, #tpu.memory_space<vmem>>, vector<1x32x32xf32>
    %38 = vector.shape_cast %37 : vector<1x32x32xf32> to vector<32x32xf32>
    %39 = vector.broadcast %36 : f32 to vector<32x32xf32>
    %40 = arith.mulf %39, %38 : vector<32x32xf32>
    %41 = arith.addf %35, %40 : vector<32x32xf32>
    %c0_34 = arith.constant 0 : index
    %c3_35 = arith.constant 3 : index
    %42 = memref.load %arg4[%c0_34, %c3_35] : memref<4x9xf32, #tpu.memory_space<smem>>
    %c0_36 = arith.constant 0 : index
    %c1_37 = arith.constant 1 : index
    %c0_38 = arith.constant 0 : index
    %43 = vector.load %arg7[%c0_36, %c1_37, %c0_38] : memref<4x34x34xf32, #tpu.memory_space<vmem>>, vector<1x32x32xf32>
    %44 = vector.shape_cast %43 : vector<1x32x32xf32> to vector<32x32xf32>
    %45 = vector.broadcast %42 : f32 to vector<32x32xf32>
    %46 = arith.mulf %45, %44 : vector<32x32xf32>
    %47 = arith.addf %41, %46 : vector<32x32xf32>
    %c0_39 = arith.constant 0 : index
    %c4 = arith.constant 4 : index
    %48 = memref.load %arg4[%c0_39, %c4] : memref<4x9xf32, #tpu.memory_space<smem>>
    %c0_40 = arith.constant 0 : index
    %c1_41 = arith.constant 1 : index
    %c1_42 = arith.constant 1 : index
    %49 = vector.load %arg7[%c0_40, %c1_41, %c1_42] : memref<4x34x34xf32, #tpu.memory_space<vmem>>, vector<1x32x32xf32>
    %50 = vector.shape_cast %49 : vector<1x32x32xf32> to vector<32x32xf32>
    %51 = vector.broadcast %48 : f32 to vector<32x32xf32>
    %52 = arith.mulf %51, %50 : vector<32x32xf32>
    %53 = arith.addf %47, %52 : vector<32x32xf32>
    %c0_43 = arith.constant 0 : index
    %c5 = arith.constant 5 : index
    %54 = memref.load %arg4[%c0_43, %c5] : memref<4x9xf32, #tpu.memory_space<smem>>
    %c0_44 = arith.constant 0 : index
    %c1_45 = arith.constant 1 : index
    %c2_46 = arith.constant 2 : index
    %55 = vector.load %arg7[%c0_44, %c1_45, %c2_46] : memref<4x34x34xf32, #tpu.memory_space<vmem>>, vector<1x32x32xf32>
    %56 = vector.shape_cast %55 : vector<1x32x32xf32> to vector<32x32xf32>
    %57 = vector.broadcast %54 : f32 to vector<32x32xf32>
    %58 = arith.mulf %57, %56 : vector<32x32xf32>
    %59 = arith.addf %53, %58 : vector<32x32xf32>
    %c0_47 = arith.constant 0 : index
    %c6 = arith.constant 6 : index
    %60 = memref.load %arg4[%c0_47, %c6] : memref<4x9xf32, #tpu.memory_space<smem>>
    %c0_48 = arith.constant 0 : index
    %c2_49 = arith.constant 2 : index
    %c0_50 = arith.constant 0 : index
    %61 = vector.load %arg7[%c0_48, %c2_49, %c0_50] : memref<4x34x34xf32, #tpu.memory_space<vmem>>, vector<1x32x32xf32>
    %62 = vector.shape_cast %61 : vector<1x32x32xf32> to vector<32x32xf32>
    %63 = vector.broadcast %60 : f32 to vector<32x32xf32>
    %64 = arith.mulf %63, %62 : vector<32x32xf32>
    %65 = arith.addf %59, %64 : vector<32x32xf32>
    %c0_51 = arith.constant 0 : index
    %c7 = arith.constant 7 : index
    %66 = memref.load %arg4[%c0_51, %c7] : memref<4x9xf32, #tpu.memory_space<smem>>
    %c0_52 = arith.constant 0 : index
    %c2_53 = arith.constant 2 : index
    %c1_54 = arith.constant 1 : index
    %67 = vector.load %arg7[%c0_52, %c2_53, %c1_54] : memref<4x34x34xf32, #tpu.memory_space<vmem>>, vector<1x32x32xf32>
    %68 = vector.shape_cast %67 : vector<1x32x32xf32> to vector<32x32xf32>
    %69 = vector.broadcast %66 : f32 to vector<32x32xf32>
    %70 = arith.mulf %69, %68 : vector<32x32xf32>
    %71 = arith.addf %65, %70 : vector<32x32xf32>
    %c0_55 = arith.constant 0 : index
    %c8 = arith.constant 8 : index
    %72 = memref.load %arg4[%c0_55, %c8] : memref<4x9xf32, #tpu.memory_space<smem>>
    %c0_56 = arith.constant 0 : index
    %c2_57 = arith.constant 2 : index
    %c2_58 = arith.constant 2 : index
    %73 = vector.load %arg7[%c0_56, %c2_57, %c2_58] : memref<4x34x34xf32, #tpu.memory_space<vmem>>, vector<1x32x32xf32>
    %74 = vector.shape_cast %73 : vector<1x32x32xf32> to vector<32x32xf32>
    %75 = vector.broadcast %72 : f32 to vector<32x32xf32>
    %76 = arith.mulf %75, %74 : vector<32x32xf32>
    %77 = arith.addf %71, %76 : vector<32x32xf32>
    %c1_59 = arith.constant 1 : index
    %c0_60 = arith.constant 0 : index
    %78 = memref.load %arg4[%c1_59, %c0_60] : memref<4x9xf32, #tpu.memory_space<smem>>
    %c1_61 = arith.constant 1 : index
    %c0_62 = arith.constant 0 : index
    %c0_63 = arith.constant 0 : index
    %79 = vector.load %arg7[%c1_61, %c0_62, %c0_63] : memref<4x34x34xf32, #tpu.memory_space<vmem>>, vector<1x32x32xf32>
    %80 = vector.shape_cast %79 : vector<1x32x32xf32> to vector<32x32xf32>
    %81 = vector.broadcast %78 : f32 to vector<32x32xf32>
    %82 = arith.mulf %81, %80 : vector<32x32xf32>
    %c1_64 = arith.constant 1 : index
    %c1_65 = arith.constant 1 : index
    %83 = memref.load %arg4[%c1_64, %c1_65] : memref<4x9xf32, #tpu.memory_space<smem>>
    %c1_66 = arith.constant 1 : index
    %c0_67 = arith.constant 0 : index
    %c1_68 = arith.constant 1 : index
    %84 = vector.load %arg7[%c1_66, %c0_67, %c1_68] : memref<4x34x34xf32, #tpu.memory_space<vmem>>, vector<1x32x32xf32>
    %85 = vector.shape_cast %84 : vector<1x32x32xf32> to vector<32x32xf32>
    %86 = vector.broadcast %83 : f32 to vector<32x32xf32>
    %87 = arith.mulf %86, %85 : vector<32x32xf32>
    %88 = arith.addf %82, %87 : vector<32x32xf32>
    %c1_69 = arith.constant 1 : index
    %c2_70 = arith.constant 2 : index
    %89 = memref.load %arg4[%c1_69, %c2_70] : memref<4x9xf32, #tpu.memory_space<smem>>
    %c1_71 = arith.constant 1 : index
    %c0_72 = arith.constant 0 : index
    %c2_73 = arith.constant 2 : index
    %90 = vector.load %arg7[%c1_71, %c0_72, %c2_73] : memref<4x34x34xf32, #tpu.memory_space<vmem>>, vector<1x32x32xf32>
    %91 = vector.shape_cast %90 : vector<1x32x32xf32> to vector<32x32xf32>
    %92 = vector.broadcast %89 : f32 to vector<32x32xf32>
    %93 = arith.mulf %92, %91 : vector<32x32xf32>
    %94 = arith.addf %88, %93 : vector<32x32xf32>
    %c1_74 = arith.constant 1 : index
    %c3_75 = arith.constant 3 : index
    %95 = memref.load %arg4[%c1_74, %c3_75] : memref<4x9xf32, #tpu.memory_space<smem>>
    %c1_76 = arith.constant 1 : index
    %c1_77 = arith.constant 1 : index
    %c0_78 = arith.constant 0 : index
    %96 = vector.load %arg7[%c1_76, %c1_77, %c0_78] : memref<4x34x34xf32, #tpu.memory_space<vmem>>, vector<1x32x32xf32>
    %97 = vector.shape_cast %96 : vector<1x32x32xf32> to vector<32x32xf32>
    %98 = vector.broadcast %95 : f32 to vector<32x32xf32>
    %99 = arith.mulf %98, %97 : vector<32x32xf32>
    %100 = arith.addf %94, %99 : vector<32x32xf32>
    %c1_79 = arith.constant 1 : index
    %c4_80 = arith.constant 4 : index
    %101 = memref.load %arg4[%c1_79, %c4_80] : memref<4x9xf32, #tpu.memory_space<smem>>
    %c1_81 = arith.constant 1 : index
    %c1_82 = arith.constant 1 : index
    %c1_83 = arith.constant 1 : index
    %102 = vector.load %arg7[%c1_81, %c1_82, %c1_83] : memref<4x34x34xf32, #tpu.memory_space<vmem>>, vector<1x32x32xf32>
    %103 = vector.shape_cast %102 : vector<1x32x32xf32> to vector<32x32xf32>
    %104 = vector.broadcast %101 : f32 to vector<32x32xf32>
    %105 = arith.mulf %104, %103 : vector<32x32xf32>
    %106 = arith.addf %100, %105 : vector<32x32xf32>
    %c1_84 = arith.constant 1 : index
    %c5_85 = arith.constant 5 : index
    %107 = memref.load %arg4[%c1_84, %c5_85] : memref<4x9xf32, #tpu.memory_space<smem>>
    %c1_86 = arith.constant 1 : index
    %c1_87 = arith.constant 1 : index
    %c2_88 = arith.constant 2 : index
    %108 = vector.load %arg7[%c1_86, %c1_87, %c2_88] : memref<4x34x34xf32, #tpu.memory_space<vmem>>, vector<1x32x32xf32>
    %109 = vector.shape_cast %108 : vector<1x32x32xf32> to vector<32x32xf32>
    %110 = vector.broadcast %107 : f32 to vector<32x32xf32>
    %111 = arith.mulf %110, %109 : vector<32x32xf32>
    %112 = arith.addf %106, %111 : vector<32x32xf32>
    %c1_89 = arith.constant 1 : index
    %c6_90 = arith.constant 6 : index
    %113 = memref.load %arg4[%c1_89, %c6_90] : memref<4x9xf32, #tpu.memory_space<smem>>
    %c1_91 = arith.constant 1 : index
    %c2_92 = arith.constant 2 : index
    %c0_93 = arith.constant 0 : index
    %114 = vector.load %arg7[%c1_91, %c2_92, %c0_93] : memref<4x34x34xf32, #tpu.memory_space<vmem>>, vector<1x32x32xf32>
    %115 = vector.shape_cast %114 : vector<1x32x32xf32> to vector<32x32xf32>
    %116 = vector.broadcast %113 : f32 to vector<32x32xf32>
    %117 = arith.mulf %116, %115 : vector<32x32xf32>
    %118 = arith.addf %112, %117 : vector<32x32xf32>
    %c1_94 = arith.constant 1 : index
    %c7_95 = arith.constant 7 : index
    %119 = memref.load %arg4[%c1_94, %c7_95] : memref<4x9xf32, #tpu.memory_space<smem>>
    %c1_96 = arith.constant 1 : index
    %c2_97 = arith.constant 2 : index
    %c1_98 = arith.constant 1 : index
    %120 = vector.load %arg7[%c1_96, %c2_97, %c1_98] : memref<4x34x34xf32, #tpu.memory_space<vmem>>, vector<1x32x32xf32>
    %121 = vector.shape_cast %120 : vector<1x32x32xf32> to vector<32x32xf32>
    %122 = vector.broadcast %119 : f32 to vector<32x32xf32>
    %123 = arith.mulf %122, %121 : vector<32x32xf32>
    %124 = arith.addf %118, %123 : vector<32x32xf32>
    %c1_99 = arith.constant 1 : index
    %c8_100 = arith.constant 8 : index
    %125 = memref.load %arg4[%c1_99, %c8_100] : memref<4x9xf32, #tpu.memory_space<smem>>
    %c1_101 = arith.constant 1 : index
    %c2_102 = arith.constant 2 : index
    %c2_103 = arith.constant 2 : index
    %126 = vector.load %arg7[%c1_101, %c2_102, %c2_103] : memref<4x34x34xf32, #tpu.memory_space<vmem>>, vector<1x32x32xf32>
    %127 = vector.shape_cast %126 : vector<1x32x32xf32> to vector<32x32xf32>
    %128 = vector.broadcast %125 : f32 to vector<32x32xf32>
    %129 = arith.mulf %128, %127 : vector<32x32xf32>
    %130 = arith.addf %124, %129 : vector<32x32xf32>
    %c2_104 = arith.constant 2 : index
    %c0_105 = arith.constant 0 : index
    %131 = memref.load %arg4[%c2_104, %c0_105] : memref<4x9xf32, #tpu.memory_space<smem>>
    %c2_106 = arith.constant 2 : index
    %c0_107 = arith.constant 0 : index
    %c0_108 = arith.constant 0 : index
    %132 = vector.load %arg7[%c2_106, %c0_107, %c0_108] : memref<4x34x34xf32, #tpu.memory_space<vmem>>, vector<1x32x32xf32>
    %133 = vector.shape_cast %132 : vector<1x32x32xf32> to vector<32x32xf32>
    %134 = vector.broadcast %131 : f32 to vector<32x32xf32>
    %135 = arith.mulf %134, %133 : vector<32x32xf32>
    %c2_109 = arith.constant 2 : index
    %c1_110 = arith.constant 1 : index
    %136 = memref.load %arg4[%c2_109, %c1_110] : memref<4x9xf32, #tpu.memory_space<smem>>
    %c2_111 = arith.constant 2 : index
    %c0_112 = arith.constant 0 : index
    %c1_113 = arith.constant 1 : index
    %137 = vector.load %arg7[%c2_111, %c0_112, %c1_113] : memref<4x34x34xf32, #tpu.memory_space<vmem>>, vector<1x32x32xf32>
    %138 = vector.shape_cast %137 : vector<1x32x32xf32> to vector<32x32xf32>
    %139 = vector.broadcast %136 : f32 to vector<32x32xf32>
    %140 = arith.mulf %139, %138 : vector<32x32xf32>
    %141 = arith.addf %135, %140 : vector<32x32xf32>
    %c2_114 = arith.constant 2 : index
    %c2_115 = arith.constant 2 : index
    %142 = memref.load %arg4[%c2_114, %c2_115] : memref<4x9xf32, #tpu.memory_space<smem>>
    %c2_116 = arith.constant 2 : index
    %c0_117 = arith.constant 0 : index
    %c2_118 = arith.constant 2 : index
    %143 = vector.load %arg7[%c2_116, %c0_117, %c2_118] : memref<4x34x34xf32, #tpu.memory_space<vmem>>, vector<1x32x32xf32>
    %144 = vector.shape_cast %143 : vector<1x32x32xf32> to vector<32x32xf32>
    %145 = vector.broadcast %142 : f32 to vector<32x32xf32>
    %146 = arith.mulf %145, %144 : vector<32x32xf32>
    %147 = arith.addf %141, %146 : vector<32x32xf32>
    %c2_119 = arith.constant 2 : index
    %c3_120 = arith.constant 3 : index
    %148 = memref.load %arg4[%c2_119, %c3_120] : memref<4x9xf32, #tpu.memory_space<smem>>
    %c2_121 = arith.constant 2 : index
    %c1_122 = arith.constant 1 : index
    %c0_123 = arith.constant 0 : index
    %149 = vector.load %arg7[%c2_121, %c1_122, %c0_123] : memref<4x34x34xf32, #tpu.memory_space<vmem>>, vector<1x32x32xf32>
    %150 = vector.shape_cast %149 : vector<1x32x32xf32> to vector<32x32xf32>
    %151 = vector.broadcast %148 : f32 to vector<32x32xf32>
    %152 = arith.mulf %151, %150 : vector<32x32xf32>
    %153 = arith.addf %147, %152 : vector<32x32xf32>
    %c2_124 = arith.constant 2 : index
    %c4_125 = arith.constant 4 : index
    %154 = memref.load %arg4[%c2_124, %c4_125] : memref<4x9xf32, #tpu.memory_space<smem>>
    %c2_126 = arith.constant 2 : index
    %c1_127 = arith.constant 1 : index
    %c1_128 = arith.constant 1 : index
    %155 = vector.load %arg7[%c2_126, %c1_127, %c1_128] : memref<4x34x34xf32, #tpu.memory_space<vmem>>, vector<1x32x32xf32>
    %156 = vector.shape_cast %155 : vector<1x32x32xf32> to vector<32x32xf32>
    %157 = vector.broadcast %154 : f32 to vector<32x32xf32>
    %158 = arith.mulf %157, %156 : vector<32x32xf32>
    %159 = arith.addf %153, %158 : vector<32x32xf32>
    %c2_129 = arith.constant 2 : index
    %c5_130 = arith.constant 5 : index
    %160 = memref.load %arg4[%c2_129, %c5_130] : memref<4x9xf32, #tpu.memory_space<smem>>
    %c2_131 = arith.constant 2 : index
    %c1_132 = arith.constant 1 : index
    %c2_133 = arith.constant 2 : index
    %161 = vector.load %arg7[%c2_131, %c1_132, %c2_133] : memref<4x34x34xf32, #tpu.memory_space<vmem>>, vector<1x32x32xf32>
    %162 = vector.shape_cast %161 : vector<1x32x32xf32> to vector<32x32xf32>
    %163 = vector.broadcast %160 : f32 to vector<32x32xf32>
    %164 = arith.mulf %163, %162 : vector<32x32xf32>
    %165 = arith.addf %159, %164 : vector<32x32xf32>
    %c2_134 = arith.constant 2 : index
    %c6_135 = arith.constant 6 : index
    %166 = memref.load %arg4[%c2_134, %c6_135] : memref<4x9xf32, #tpu.memory_space<smem>>
    %c2_136 = arith.constant 2 : index
    %c2_137 = arith.constant 2 : index
    %c0_138 = arith.constant 0 : index
    %167 = vector.load %arg7[%c2_136, %c2_137, %c0_138] : memref<4x34x34xf32, #tpu.memory_space<vmem>>, vector<1x32x32xf32>
    %168 = vector.shape_cast %167 : vector<1x32x32xf32> to vector<32x32xf32>
    %169 = vector.broadcast %166 : f32 to vector<32x32xf32>
    %170 = arith.mulf %169, %168 : vector<32x32xf32>
    %171 = arith.addf %165, %170 : vector<32x32xf32>
    %c2_139 = arith.constant 2 : index
    %c7_140 = arith.constant 7 : index
    %172 = memref.load %arg4[%c2_139, %c7_140] : memref<4x9xf32, #tpu.memory_space<smem>>
    %c2_141 = arith.constant 2 : index
    %c2_142 = arith.constant 2 : index
    %c1_143 = arith.constant 1 : index
    %173 = vector.load %arg7[%c2_141, %c2_142, %c1_143] : memref<4x34x34xf32, #tpu.memory_space<vmem>>, vector<1x32x32xf32>
    %174 = vector.shape_cast %173 : vector<1x32x32xf32> to vector<32x32xf32>
    %175 = vector.broadcast %172 : f32 to vector<32x32xf32>
    %176 = arith.mulf %175, %174 : vector<32x32xf32>
    %177 = arith.addf %171, %176 : vector<32x32xf32>
    %c2_144 = arith.constant 2 : index
    %c8_145 = arith.constant 8 : index
    %178 = memref.load %arg4[%c2_144, %c8_145] : memref<4x9xf32, #tpu.memory_space<smem>>
    %c2_146 = arith.constant 2 : index
    %c2_147 = arith.constant 2 : index
    %c2_148 = arith.constant 2 : index
    %179 = vector.load %arg7[%c2_146, %c2_147, %c2_148] : memref<4x34x34xf32, #tpu.memory_space<vmem>>, vector<1x32x32xf32>
    %180 = vector.shape_cast %179 : vector<1x32x32xf32> to vector<32x32xf32>
    %181 = vector.broadcast %178 : f32 to vector<32x32xf32>
    %182 = arith.mulf %181, %180 : vector<32x32xf32>
    %183 = arith.addf %177, %182 : vector<32x32xf32>
    %c3_149 = arith.constant 3 : index
    %c0_150 = arith.constant 0 : index
    %184 = memref.load %arg4[%c3_149, %c0_150] : memref<4x9xf32, #tpu.memory_space<smem>>
    %c3_151 = arith.constant 3 : index
    %c0_152 = arith.constant 0 : index
    %c0_153 = arith.constant 0 : index
    %185 = vector.load %arg7[%c3_151, %c0_152, %c0_153] : memref<4x34x34xf32, #tpu.memory_space<vmem>>, vector<1x32x32xf32>
    %186 = vector.shape_cast %185 : vector<1x32x32xf32> to vector<32x32xf32>
    %187 = vector.broadcast %184 : f32 to vector<32x32xf32>
    %188 = arith.mulf %187, %186 : vector<32x32xf32>
    %c3_154 = arith.constant 3 : index
    %c1_155 = arith.constant 1 : index
    %189 = memref.load %arg4[%c3_154, %c1_155] : memref<4x9xf32, #tpu.memory_space<smem>>
    %c3_156 = arith.constant 3 : index
    %c0_157 = arith.constant 0 : index
    %c1_158 = arith.constant 1 : index
    %190 = vector.load %arg7[%c3_156, %c0_157, %c1_158] : memref<4x34x34xf32, #tpu.memory_space<vmem>>, vector<1x32x32xf32>
    %191 = vector.shape_cast %190 : vector<1x32x32xf32> to vector<32x32xf32>
    %192 = vector.broadcast %189 : f32 to vector<32x32xf32>
    %193 = arith.mulf %192, %191 : vector<32x32xf32>
    %194 = arith.addf %188, %193 : vector<32x32xf32>
    %c3_159 = arith.constant 3 : index
    %c2_160 = arith.constant 2 : index
    %195 = memref.load %arg4[%c3_159, %c2_160] : memref<4x9xf32, #tpu.memory_space<smem>>
    %c3_161 = arith.constant 3 : index
    %c0_162 = arith.constant 0 : index
    %c2_163 = arith.constant 2 : index
    %196 = vector.load %arg7[%c3_161, %c0_162, %c2_163] : memref<4x34x34xf32, #tpu.memory_space<vmem>>, vector<1x32x32xf32>
    %197 = vector.shape_cast %196 : vector<1x32x32xf32> to vector<32x32xf32>
    %198 = vector.broadcast %195 : f32 to vector<32x32xf32>
    %199 = arith.mulf %198, %197 : vector<32x32xf32>
    %200 = arith.addf %194, %199 : vector<32x32xf32>
    %c3_164 = arith.constant 3 : index
    %c3_165 = arith.constant 3 : index
    %201 = memref.load %arg4[%c3_164, %c3_165] : memref<4x9xf32, #tpu.memory_space<smem>>
    %c3_166 = arith.constant 3 : index
    %c1_167 = arith.constant 1 : index
    %c0_168 = arith.constant 0 : index
    %202 = vector.load %arg7[%c3_166, %c1_167, %c0_168] : memref<4x34x34xf32, #tpu.memory_space<vmem>>, vector<1x32x32xf32>
    %203 = vector.shape_cast %202 : vector<1x32x32xf32> to vector<32x32xf32>
    %204 = vector.broadcast %201 : f32 to vector<32x32xf32>
    %205 = arith.mulf %204, %203 : vector<32x32xf32>
    %206 = arith.addf %200, %205 : vector<32x32xf32>
    %c3_169 = arith.constant 3 : index
    %c4_170 = arith.constant 4 : index
    %207 = memref.load %arg4[%c3_169, %c4_170] : memref<4x9xf32, #tpu.memory_space<smem>>
    %c3_171 = arith.constant 3 : index
    %c1_172 = arith.constant 1 : index
    %c1_173 = arith.constant 1 : index
    %208 = vector.load %arg7[%c3_171, %c1_172, %c1_173] : memref<4x34x34xf32, #tpu.memory_space<vmem>>, vector<1x32x32xf32>
    %209 = vector.shape_cast %208 : vector<1x32x32xf32> to vector<32x32xf32>
    %210 = vector.broadcast %207 : f32 to vector<32x32xf32>
    %211 = arith.mulf %210, %209 : vector<32x32xf32>
    %212 = arith.addf %206, %211 : vector<32x32xf32>
    %c3_174 = arith.constant 3 : index
    %c5_175 = arith.constant 5 : index
    %213 = memref.load %arg4[%c3_174, %c5_175] : memref<4x9xf32, #tpu.memory_space<smem>>
    %c3_176 = arith.constant 3 : index
    %c1_177 = arith.constant 1 : index
    %c2_178 = arith.constant 2 : index
    %214 = vector.load %arg7[%c3_176, %c1_177, %c2_178] : memref<4x34x34xf32, #tpu.memory_space<vmem>>, vector<1x32x32xf32>
    %215 = vector.shape_cast %214 : vector<1x32x32xf32> to vector<32x32xf32>
    %216 = vector.broadcast %213 : f32 to vector<32x32xf32>
    %217 = arith.mulf %216, %215 : vector<32x32xf32>
    %218 = arith.addf %212, %217 : vector<32x32xf32>
    %c3_179 = arith.constant 3 : index
    %c6_180 = arith.constant 6 : index
    %219 = memref.load %arg4[%c3_179, %c6_180] : memref<4x9xf32, #tpu.memory_space<smem>>
    %c3_181 = arith.constant 3 : index
    %c2_182 = arith.constant 2 : index
    %c0_183 = arith.constant 0 : index
    %220 = vector.load %arg7[%c3_181, %c2_182, %c0_183] : memref<4x34x34xf32, #tpu.memory_space<vmem>>, vector<1x32x32xf32>
    %221 = vector.shape_cast %220 : vector<1x32x32xf32> to vector<32x32xf32>
    %222 = vector.broadcast %219 : f32 to vector<32x32xf32>
    %223 = arith.mulf %222, %221 : vector<32x32xf32>
    %224 = arith.addf %218, %223 : vector<32x32xf32>
    %c3_184 = arith.constant 3 : index
    %c7_185 = arith.constant 7 : index
    %225 = memref.load %arg4[%c3_184, %c7_185] : memref<4x9xf32, #tpu.memory_space<smem>>
    %c3_186 = arith.constant 3 : index
    %c2_187 = arith.constant 2 : index
    %c1_188 = arith.constant 1 : index
    %226 = vector.load %arg7[%c3_186, %c2_187, %c1_188] : memref<4x34x34xf32, #tpu.memory_space<vmem>>, vector<1x32x32xf32>
    %227 = vector.shape_cast %226 : vector<1x32x32xf32> to vector<32x32xf32>
    %228 = vector.broadcast %225 : f32 to vector<32x32xf32>
    %229 = arith.mulf %228, %227 : vector<32x32xf32>
    %230 = arith.addf %224, %229 : vector<32x32xf32>
    %c3_189 = arith.constant 3 : index
    %c8_190 = arith.constant 8 : index
    %231 = memref.load %arg4[%c3_189, %c8_190] : memref<4x9xf32, #tpu.memory_space<smem>>
    %c3_191 = arith.constant 3 : index
    %c2_192 = arith.constant 2 : index
    %c2_193 = arith.constant 2 : index
    %232 = vector.load %arg7[%c3_191, %c2_192, %c2_193] : memref<4x34x34xf32, #tpu.memory_space<vmem>>, vector<1x32x32xf32>
    %233 = vector.shape_cast %232 : vector<1x32x32xf32> to vector<32x32xf32>
    %234 = vector.broadcast %231 : f32 to vector<32x32xf32>
    %235 = arith.mulf %234, %233 : vector<32x32xf32>
    %236 = arith.addf %230, %235 : vector<32x32xf32>
    %c0_194 = arith.constant 0 : index
    %c0_195 = arith.constant 0 : index
    %237 = memref.load %arg5[%c0_194, %c0_195] : memref<8x4xf32, #tpu.memory_space<smem>>
    %238 = vector.broadcast %237 : f32 to vector<32x32xf32>
    %239 = arith.mulf %238, %77 : vector<32x32xf32>
    %c0_196 = arith.constant 0 : index
    %c1_197 = arith.constant 1 : index
    %240 = memref.load %arg5[%c0_196, %c1_197] : memref<8x4xf32, #tpu.memory_space<smem>>
    %241 = vector.broadcast %240 : f32 to vector<32x32xf32>
    %242 = arith.mulf %241, %130 : vector<32x32xf32>
    %243 = arith.addf %239, %242 : vector<32x32xf32>
    %c0_198 = arith.constant 0 : index
    %c2_199 = arith.constant 2 : index
    %244 = memref.load %arg5[%c0_198, %c2_199] : memref<8x4xf32, #tpu.memory_space<smem>>
    %245 = vector.broadcast %244 : f32 to vector<32x32xf32>
    %246 = arith.mulf %245, %183 : vector<32x32xf32>
    %247 = arith.addf %243, %246 : vector<32x32xf32>
    %c0_200 = arith.constant 0 : index
    %c3_201 = arith.constant 3 : index
    %248 = memref.load %arg5[%c0_200, %c3_201] : memref<8x4xf32, #tpu.memory_space<smem>>
    %249 = vector.broadcast %248 : f32 to vector<32x32xf32>
    %250 = arith.mulf %249, %236 : vector<32x32xf32>
    %251 = arith.addf %247, %250 : vector<32x32xf32>
    %252 = vector.shape_cast %251 : vector<32x32xf32> to vector<1x32x32xf32>
    %cst_202 = arith.constant dense<0.000000e+00> : vector<1xf32>
    %253 = vector.multi_reduction <add>, %252, %cst_202 [1, 2] : vector<1x32x32xf32> to vector<1xf32>
    %254 = vector.shape_cast %253 : vector<1xf32> to vector<1x1x1xf32>
    %255 = vector.extract %254[0, 0, 0] : f32 from vector<1x1x1xf32>
    %cst_203 = arith.constant 9.765625E-4 : f32
    %256 = arith.mulf %255, %cst_203 : f32
    %257 = vector.broadcast %256 : f32 to vector<32x32xf32>
    %258 = arith.subf %251, %257 : vector<32x32xf32>
    %259 = arith.mulf %258, %258 : vector<32x32xf32>
    %260 = vector.shape_cast %259 : vector<32x32xf32> to vector<1x32x32xf32>
    %cst_204 = arith.constant dense<0.000000e+00> : vector<1xf32>
    %261 = vector.multi_reduction <add>, %260, %cst_204 [1, 2] : vector<1x32x32xf32> to vector<1xf32>
    %262 = vector.shape_cast %261 : vector<1xf32> to vector<1x1x1xf32>
    %263 = vector.extract %262[0, 0, 0] : f32 from vector<1x1x1xf32>
    %cst_205 = arith.constant 9.765625E-4 : f32
    %264 = arith.mulf %263, %cst_205 : f32
    %cst_206 = arith.constant 9.99999974E-6 : f32
    %265 = arith.addf %264, %cst_206 : f32
    %266 = math.rsqrt %265 : f32
    %267 = vector.broadcast %266 : f32 to vector<32x32xf32>
    %268 = arith.mulf %258, %267 : vector<32x32xf32>
    %c0_207 = arith.constant 0 : index
    %c0_208 = arith.constant 0 : index
    %c0_209 = arith.constant 0 : index
    %c0_210 = arith.constant 0 : index
    %269 = vector.load %arg6[%c0_207, %c0_208, %c0_209, %c0_210] : memref<1x8x32x32xf32, #tpu.memory_space<vmem>>, vector<1x1x32x32xf32>
    %270 = vector.shape_cast %269 : vector<1x1x32x32xf32> to vector<32x32xf32>
    %271 = vector.shape_cast %268 : vector<32x32xf32> to vector<1x1x32x32xf32>
    tpu.vector_store %arg6[%c0_207, %c0_208, %c0_209, %c0_210], %271 {strides = array<i32>} : memref<1x8x32x32xf32, #tpu.memory_space<vmem>>, vector<1x1x32x32xf32>,
    %c1_211 = arith.constant 1 : index
    %c0_212 = arith.constant 0 : index
    %272 = memref.load %arg5[%c1_211, %c0_212] : memref<8x4xf32, #tpu.memory_space<smem>>
    %273 = vector.broadcast %272 : f32 to vector<32x32xf32>
    %274 = arith.mulf %273, %77 : vector<32x32xf32>
    %c1_213 = arith.constant 1 : index
    %c1_214 = arith.constant 1 : index
    %275 = memref.load %arg5[%c1_213, %c1_214] : memref<8x4xf32, #tpu.memory_space<smem>>
    %276 = vector.broadcast %275 : f32 to vector<32x32xf32>
    %277 = arith.mulf %276, %130 : vector<32x32xf32>
    %278 = arith.addf %274, %277 : vector<32x32xf32>
    %c1_215 = arith.constant 1 : index
    %c2_216 = arith.constant 2 : index
    %279 = memref.load %arg5[%c1_215, %c2_216] : memref<8x4xf32, #tpu.memory_space<smem>>
    %280 = vector.broadcast %279 : f32 to vector<32x32xf32>
    %281 = arith.mulf %280, %183 : vector<32x32xf32>
    %282 = arith.addf %278, %281 : vector<32x32xf32>
    %c1_217 = arith.constant 1 : index
    %c3_218 = arith.constant 3 : index
    %283 = memref.load %arg5[%c1_217, %c3_218] : memref<8x4xf32, #tpu.memory_space<smem>>
    %284 = vector.broadcast %283 : f32 to vector<32x32xf32>
    %285 = arith.mulf %284, %236 : vector<32x32xf32>
    %286 = arith.addf %282, %285 : vector<32x32xf32>
    %287 = vector.shape_cast %286 : vector<32x32xf32> to vector<1x32x32xf32>
    %cst_219 = arith.constant dense<0.000000e+00> : vector<1xf32>
    %288 = vector.multi_reduction <add>, %287, %cst_219 [1, 2] : vector<1x32x32xf32> to vector<1xf32>
    %289 = vector.shape_cast %288 : vector<1xf32> to vector<1x1x1xf32>
    %290 = vector.extract %289[0, 0, 0] : f32 from vector<1x1x1xf32>
    %cst_220 = arith.constant 9.765625E-4 : f32
    %291 = arith.mulf %290, %cst_220 : f32
    %292 = vector.broadcast %291 : f32 to vector<32x32xf32>
    %293 = arith.subf %286, %292 : vector<32x32xf32>
    %294 = arith.mulf %293, %293 : vector<32x32xf32>
    %295 = vector.shape_cast %294 : vector<32x32xf32> to vector<1x32x32xf32>
    %cst_221 = arith.constant dense<0.000000e+00> : vector<1xf32>
    %296 = vector.multi_reduction <add>, %295, %cst_221 [1, 2] : vector<1x32x32xf32> to vector<1xf32>
    %297 = vector.shape_cast %296 : vector<1xf32> to vector<1x1x1xf32>
    %298 = vector.extract %297[0, 0, 0] : f32 from vector<1x1x1xf32>
    %cst_222 = arith.constant 9.765625E-4 : f32
    %299 = arith.mulf %298, %cst_222 : f32
    %cst_223 = arith.constant 9.99999974E-6 : f32
    %300 = arith.addf %299, %cst_223 : f32
    %301 = math.rsqrt %300 : f32
    %302 = vector.broadcast %301 : f32 to vector<32x32xf32>
    %303 = arith.mulf %293, %302 : vector<32x32xf32>
    %c0_224 = arith.constant 0 : index
    %c1_225 = arith.constant 1 : index
    %c0_226 = arith.constant 0 : index
    %c0_227 = arith.constant 0 : index
    %304 = vector.load %arg6[%c0_224, %c1_225, %c0_226, %c0_227] : memref<1x8x32x32xf32, #tpu.memory_space<vmem>>, vector<1x1x32x32xf32>
    %305 = vector.shape_cast %304 : vector<1x1x32x32xf32> to vector<32x32xf32>
    %306 = vector.shape_cast %303 : vector<32x32xf32> to vector<1x1x32x32xf32>
    tpu.vector_store %arg6[%c0_224, %c1_225, %c0_226, %c0_227], %306 {strides = array<i32>} : memref<1x8x32x32xf32, #tpu.memory_space<vmem>>, vector<1x1x32x32xf32>,
    %c2_228 = arith.constant 2 : index
    %c0_229 = arith.constant 0 : index
    %307 = memref.load %arg5[%c2_228, %c0_229] : memref<8x4xf32, #tpu.memory_space<smem>>
    %308 = vector.broadcast %307 : f32 to vector<32x32xf32>
    %309 = arith.mulf %308, %77 : vector<32x32xf32>
    %c2_230 = arith.constant 2 : index
    %c1_231 = arith.constant 1 : index
    %310 = memref.load %arg5[%c2_230, %c1_231] : memref<8x4xf32, #tpu.memory_space<smem>>
    %311 = vector.broadcast %310 : f32 to vector<32x32xf32>
    %312 = arith.mulf %311, %130 : vector<32x32xf32>
    %313 = arith.addf %309, %312 : vector<32x32xf32>
    %c2_232 = arith.constant 2 : index
    %c2_233 = arith.constant 2 : index
    %314 = memref.load %arg5[%c2_232, %c2_233] : memref<8x4xf32, #tpu.memory_space<smem>>
    %315 = vector.broadcast %314 : f32 to vector<32x32xf32>
    %316 = arith.mulf %315, %183 : vector<32x32xf32>
    %317 = arith.addf %313, %316 : vector<32x32xf32>
    %c2_234 = arith.constant 2 : index
    %c3_235 = arith.constant 3 : index
    %318 = memref.load %arg5[%c2_234, %c3_235] : memref<8x4xf32, #tpu.memory_space<smem>>
    %319 = vector.broadcast %318 : f32 to vector<32x32xf32>
    %320 = arith.mulf %319, %236 : vector<32x32xf32>
    %321 = arith.addf %317, %320 : vector<32x32xf32>
    %322 = vector.shape_cast %321 : vector<32x32xf32> to vector<1x32x32xf32>
    %cst_236 = arith.constant dense<0.000000e+00> : vector<1xf32>
    %323 = vector.multi_reduction <add>, %322, %cst_236 [1, 2] : vector<1x32x32xf32> to vector<1xf32>
    %324 = vector.shape_cast %323 : vector<1xf32> to vector<1x1x1xf32>
    %325 = vector.extract %324[0, 0, 0] : f32 from vector<1x1x1xf32>
    %cst_237 = arith.constant 9.765625E-4 : f32
    %326 = arith.mulf %325, %cst_237 : f32
    %327 = vector.broadcast %326 : f32 to vector<32x32xf32>
    %328 = arith.subf %321, %327 : vector<32x32xf32>
    %329 = arith.mulf %328, %328 : vector<32x32xf32>
    %330 = vector.shape_cast %329 : vector<32x32xf32> to vector<1x32x32xf32>
    %cst_238 = arith.constant dense<0.000000e+00> : vector<1xf32>
    %331 = vector.multi_reduction <add>, %330, %cst_238 [1, 2] : vector<1x32x32xf32> to vector<1xf32>
    %332 = vector.shape_cast %331 : vector<1xf32> to vector<1x1x1xf32>
    %333 = vector.extract %332[0, 0, 0] : f32 from vector<1x1x1xf32>
    %cst_239 = arith.constant 9.765625E-4 : f32
    %334 = arith.mulf %333, %cst_239 : f32
    %cst_240 = arith.constant 9.99999974E-6 : f32
    %335 = arith.addf %334, %cst_240 : f32
    %336 = math.rsqrt %335 : f32
    %337 = vector.broadcast %336 : f32 to vector<32x32xf32>
    %338 = arith.mulf %328, %337 : vector<32x32xf32>
    %c0_241 = arith.constant 0 : index
    %c2_242 = arith.constant 2 : index
    %c0_243 = arith.constant 0 : index
    %c0_244 = arith.constant 0 : index
    %339 = vector.load %arg6[%c0_241, %c2_242, %c0_243, %c0_244] : memref<1x8x32x32xf32, #tpu.memory_space<vmem>>, vector<1x1x32x32xf32>
    %340 = vector.shape_cast %339 : vector<1x1x32x32xf32> to vector<32x32xf32>
    %341 = vector.shape_cast %338 : vector<32x32xf32> to vector<1x1x32x32xf32>
    tpu.vector_store %arg6[%c0_241, %c2_242, %c0_243, %c0_244], %341 {strides = array<i32>} : memref<1x8x32x32xf32, #tpu.memory_space<vmem>>, vector<1x1x32x32xf32>,
    %c3_245 = arith.constant 3 : index
    %c0_246 = arith.constant 0 : index
    %342 = memref.load %arg5[%c3_245, %c0_246] : memref<8x4xf32, #tpu.memory_space<smem>>
    %343 = vector.broadcast %342 : f32 to vector<32x32xf32>
    %344 = arith.mulf %343, %77 : vector<32x32xf32>
    %c3_247 = arith.constant 3 : index
    %c1_248 = arith.constant 1 : index
    %345 = memref.load %arg5[%c3_247, %c1_248] : memref<8x4xf32, #tpu.memory_space<smem>>
    %346 = vector.broadcast %345 : f32 to vector<32x32xf32>
    %347 = arith.mulf %346, %130 : vector<32x32xf32>
    %348 = arith.addf %344, %347 : vector<32x32xf32>
    %c3_249 = arith.constant 3 : index
    %c2_250 = arith.constant 2 : index
    %349 = memref.load %arg5[%c3_249, %c2_250] : memref<8x4xf32, #tpu.memory_space<smem>>
    %350 = vector.broadcast %349 : f32 to vector<32x32xf32>
    %351 = arith.mulf %350, %183 : vector<32x32xf32>
    %352 = arith.addf %348, %351 : vector<32x32xf32>
    %c3_251 = arith.constant 3 : index
    %c3_252 = arith.constant 3 : index
    %353 = memref.load %arg5[%c3_251, %c3_252] : memref<8x4xf32, #tpu.memory_space<smem>>
    %354 = vector.broadcast %353 : f32 to vector<32x32xf32>
    %355 = arith.mulf %354, %236 : vector<32x32xf32>
    %356 = arith.addf %352, %355 : vector<32x32xf32>
    %357 = vector.shape_cast %356 : vector<32x32xf32> to vector<1x32x32xf32>
    %cst_253 = arith.constant dense<0.000000e+00> : vector<1xf32>
    %358 = vector.multi_reduction <add>, %357, %cst_253 [1, 2] : vector<1x32x32xf32> to vector<1xf32>
    %359 = vector.shape_cast %358 : vector<1xf32> to vector<1x1x1xf32>
    %360 = vector.extract %359[0, 0, 0] : f32 from vector<1x1x1xf32>
    %cst_254 = arith.constant 9.765625E-4 : f32
    %361 = arith.mulf %360, %cst_254 : f32
    %362 = vector.broadcast %361 : f32 to vector<32x32xf32>
    %363 = arith.subf %356, %362 : vector<32x32xf32>
    %364 = arith.mulf %363, %363 : vector<32x32xf32>
    %365 = vector.shape_cast %364 : vector<32x32xf32> to vector<1x32x32xf32>
    %cst_255 = arith.constant dense<0.000000e+00> : vector<1xf32>
    %366 = vector.multi_reduction <add>, %365, %cst_255 [1, 2] : vector<1x32x32xf32> to vector<1xf32>
    %367 = vector.shape_cast %366 : vector<1xf32> to vector<1x1x1xf32>
    %368 = vector.extract %367[0, 0, 0] : f32 from vector<1x1x1xf32>
    %cst_256 = arith.constant 9.765625E-4 : f32
    %369 = arith.mulf %368, %cst_256 : f32
    %cst_257 = arith.constant 9.99999974E-6 : f32
    %370 = arith.addf %369, %cst_257 : f32
    %371 = math.rsqrt %370 : f32
    %372 = vector.broadcast %371 : f32 to vector<32x32xf32>
    %373 = arith.mulf %363, %372 : vector<32x32xf32>
    %c0_258 = arith.constant 0 : index
    %c3_259 = arith.constant 3 : index
    %c0_260 = arith.constant 0 : index
    %c0_261 = arith.constant 0 : index
    %374 = vector.load %arg6[%c0_258, %c3_259, %c0_260, %c0_261] : memref<1x8x32x32xf32, #tpu.memory_space<vmem>>, vector<1x1x32x32xf32>
    %375 = vector.shape_cast %374 : vector<1x1x32x32xf32> to vector<32x32xf32>
    %376 = vector.shape_cast %373 : vector<32x32xf32> to vector<1x1x32x32xf32>
    tpu.vector_store %arg6[%c0_258, %c3_259, %c0_260, %c0_261], %376 {strides = array<i32>} : memref<1x8x32x32xf32, #tpu.memory_space<vmem>>, vector<1x1x32x32xf32>,
    %c4_262 = arith.constant 4 : index
    %c0_263 = arith.constant 0 : index
    %377 = memref.load %arg5[%c4_262, %c0_263] : memref<8x4xf32, #tpu.memory_space<smem>>
    %378 = vector.broadcast %377 : f32 to vector<32x32xf32>
    %379 = arith.mulf %378, %77 : vector<32x32xf32>
    %c4_264 = arith.constant 4 : index
    %c1_265 = arith.constant 1 : index
    %380 = memref.load %arg5[%c4_264, %c1_265] : memref<8x4xf32, #tpu.memory_space<smem>>
    %381 = vector.broadcast %380 : f32 to vector<32x32xf32>
    %382 = arith.mulf %381, %130 : vector<32x32xf32>
    %383 = arith.addf %379, %382 : vector<32x32xf32>
    %c4_266 = arith.constant 4 : index
    %c2_267 = arith.constant 2 : index
    %384 = memref.load %arg5[%c4_266, %c2_267] : memref<8x4xf32, #tpu.memory_space<smem>>
    %385 = vector.broadcast %384 : f32 to vector<32x32xf32>
    %386 = arith.mulf %385, %183 : vector<32x32xf32>
    %387 = arith.addf %383, %386 : vector<32x32xf32>
    %c4_268 = arith.constant 4 : index
    %c3_269 = arith.constant 3 : index
    %388 = memref.load %arg5[%c4_268, %c3_269] : memref<8x4xf32, #tpu.memory_space<smem>>
    %389 = vector.broadcast %388 : f32 to vector<32x32xf32>
    %390 = arith.mulf %389, %236 : vector<32x32xf32>
    %391 = arith.addf %387, %390 : vector<32x32xf32>
    %392 = vector.shape_cast %391 : vector<32x32xf32> to vector<1x32x32xf32>
    %cst_270 = arith.constant dense<0.000000e+00> : vector<1xf32>
    %393 = vector.multi_reduction <add>, %392, %cst_270 [1, 2] : vector<1x32x32xf32> to vector<1xf32>
    %394 = vector.shape_cast %393 : vector<1xf32> to vector<1x1x1xf32>
    %395 = vector.extract %394[0, 0, 0] : f32 from vector<1x1x1xf32>
    %cst_271 = arith.constant 9.765625E-4 : f32
    %396 = arith.mulf %395, %cst_271 : f32
    %397 = vector.broadcast %396 : f32 to vector<32x32xf32>
    %398 = arith.subf %391, %397 : vector<32x32xf32>
    %399 = arith.mulf %398, %398 : vector<32x32xf32>
    %400 = vector.shape_cast %399 : vector<32x32xf32> to vector<1x32x32xf32>
    %cst_272 = arith.constant dense<0.000000e+00> : vector<1xf32>
    %401 = vector.multi_reduction <add>, %400, %cst_272 [1, 2] : vector<1x32x32xf32> to vector<1xf32>
    %402 = vector.shape_cast %401 : vector<1xf32> to vector<1x1x1xf32>
    %403 = vector.extract %402[0, 0, 0] : f32 from vector<1x1x1xf32>
    %cst_273 = arith.constant 9.765625E-4 : f32
    %404 = arith.mulf %403, %cst_273 : f32
    %cst_274 = arith.constant 9.99999974E-6 : f32
    %405 = arith.addf %404, %cst_274 : f32
    %406 = math.rsqrt %405 : f32
    %407 = vector.broadcast %406 : f32 to vector<32x32xf32>
    %408 = arith.mulf %398, %407 : vector<32x32xf32>
    %c0_275 = arith.constant 0 : index
    %c4_276 = arith.constant 4 : index
    %c0_277 = arith.constant 0 : index
    %c0_278 = arith.constant 0 : index
    %409 = vector.load %arg6[%c0_275, %c4_276, %c0_277, %c0_278] : memref<1x8x32x32xf32, #tpu.memory_space<vmem>>, vector<1x1x32x32xf32>
    %410 = vector.shape_cast %409 : vector<1x1x32x32xf32> to vector<32x32xf32>
    %411 = vector.shape_cast %408 : vector<32x32xf32> to vector<1x1x32x32xf32>
    tpu.vector_store %arg6[%c0_275, %c4_276, %c0_277, %c0_278], %411 {strides = array<i32>} : memref<1x8x32x32xf32, #tpu.memory_space<vmem>>, vector<1x1x32x32xf32>,
    %c5_279 = arith.constant 5 : index
    %c0_280 = arith.constant 0 : index
    %412 = memref.load %arg5[%c5_279, %c0_280] : memref<8x4xf32, #tpu.memory_space<smem>>
    %413 = vector.broadcast %412 : f32 to vector<32x32xf32>
    %414 = arith.mulf %413, %77 : vector<32x32xf32>
    %c5_281 = arith.constant 5 : index
    %c1_282 = arith.constant 1 : index
    %415 = memref.load %arg5[%c5_281, %c1_282] : memref<8x4xf32, #tpu.memory_space<smem>>
    %416 = vector.broadcast %415 : f32 to vector<32x32xf32>
    %417 = arith.mulf %416, %130 : vector<32x32xf32>
    %418 = arith.addf %414, %417 : vector<32x32xf32>
    %c5_283 = arith.constant 5 : index
    %c2_284 = arith.constant 2 : index
    %419 = memref.load %arg5[%c5_283, %c2_284] : memref<8x4xf32, #tpu.memory_space<smem>>
    %420 = vector.broadcast %419 : f32 to vector<32x32xf32>
    %421 = arith.mulf %420, %183 : vector<32x32xf32>
    %422 = arith.addf %418, %421 : vector<32x32xf32>
    %c5_285 = arith.constant 5 : index
    %c3_286 = arith.constant 3 : index
    %423 = memref.load %arg5[%c5_285, %c3_286] : memref<8x4xf32, #tpu.memory_space<smem>>
    %424 = vector.broadcast %423 : f32 to vector<32x32xf32>
    %425 = arith.mulf %424, %236 : vector<32x32xf32>
    %426 = arith.addf %422, %425 : vector<32x32xf32>
    %427 = vector.shape_cast %426 : vector<32x32xf32> to vector<1x32x32xf32>
    %cst_287 = arith.constant dense<0.000000e+00> : vector<1xf32>
    %428 = vector.multi_reduction <add>, %427, %cst_287 [1, 2] : vector<1x32x32xf32> to vector<1xf32>
    %429 = vector.shape_cast %428 : vector<1xf32> to vector<1x1x1xf32>
    %430 = vector.extract %429[0, 0, 0] : f32 from vector<1x1x1xf32>
    %cst_288 = arith.constant 9.765625E-4 : f32
    %431 = arith.mulf %430, %cst_288 : f32
    %432 = vector.broadcast %431 : f32 to vector<32x32xf32>
    %433 = arith.subf %426, %432 : vector<32x32xf32>
    %434 = arith.mulf %433, %433 : vector<32x32xf32>
    %435 = vector.shape_cast %434 : vector<32x32xf32> to vector<1x32x32xf32>
    %cst_289 = arith.constant dense<0.000000e+00> : vector<1xf32>
    %436 = vector.multi_reduction <add>, %435, %cst_289 [1, 2] : vector<1x32x32xf32> to vector<1xf32>
    %437 = vector.shape_cast %436 : vector<1xf32> to vector<1x1x1xf32>
    %438 = vector.extract %437[0, 0, 0] : f32 from vector<1x1x1xf32>
    %cst_290 = arith.constant 9.765625E-4 : f32
    %439 = arith.mulf %438, %cst_290 : f32
    %cst_291 = arith.constant 9.99999974E-6 : f32
    %440 = arith.addf %439, %cst_291 : f32
    %441 = math.rsqrt %440 : f32
    %442 = vector.broadcast %441 : f32 to vector<32x32xf32>
    %443 = arith.mulf %433, %442 : vector<32x32xf32>
    %c0_292 = arith.constant 0 : index
    %c5_293 = arith.constant 5 : index
    %c0_294 = arith.constant 0 : index
    %c0_295 = arith.constant 0 : index
    %444 = vector.load %arg6[%c0_292, %c5_293, %c0_294, %c0_295] : memref<1x8x32x32xf32, #tpu.memory_space<vmem>>, vector<1x1x32x32xf32>
    %445 = vector.shape_cast %444 : vector<1x1x32x32xf32> to vector<32x32xf32>
    %446 = vector.shape_cast %443 : vector<32x32xf32> to vector<1x1x32x32xf32>
    tpu.vector_store %arg6[%c0_292, %c5_293, %c0_294, %c0_295], %446 {strides = array<i32>} : memref<1x8x32x32xf32, #tpu.memory_space<vmem>>, vector<1x1x32x32xf32>,
    %c6_296 = arith.constant 6 : index
    %c0_297 = arith.constant 0 : index
    %447 = memref.load %arg5[%c6_296, %c0_297] : memref<8x4xf32, #tpu.memory_space<smem>>
    %448 = vector.broadcast %447 : f32 to vector<32x32xf32>
    %449 = arith.mulf %448, %77 : vector<32x32xf32>
    %c6_298 = arith.constant 6 : index
    %c1_299 = arith.constant 1 : index
    %450 = memref.load %arg5[%c6_298, %c1_299] : memref<8x4xf32, #tpu.memory_space<smem>>
    %451 = vector.broadcast %450 : f32 to vector<32x32xf32>
    %452 = arith.mulf %451, %130 : vector<32x32xf32>
    %453 = arith.addf %449, %452 : vector<32x32xf32>
    %c6_300 = arith.constant 6 : index
    %c2_301 = arith.constant 2 : index
    %454 = memref.load %arg5[%c6_300, %c2_301] : memref<8x4xf32, #tpu.memory_space<smem>>
    %455 = vector.broadcast %454 : f32 to vector<32x32xf32>
    %456 = arith.mulf %455, %183 : vector<32x32xf32>
    %457 = arith.addf %453, %456 : vector<32x32xf32>
    %c6_302 = arith.constant 6 : index
    %c3_303 = arith.constant 3 : index
    %458 = memref.load %arg5[%c6_302, %c3_303] : memref<8x4xf32, #tpu.memory_space<smem>>
    %459 = vector.broadcast %458 : f32 to vector<32x32xf32>
    %460 = arith.mulf %459, %236 : vector<32x32xf32>
    %461 = arith.addf %457, %460 : vector<32x32xf32>
    %462 = vector.shape_cast %461 : vector<32x32xf32> to vector<1x32x32xf32>
    %cst_304 = arith.constant dense<0.000000e+00> : vector<1xf32>
    %463 = vector.multi_reduction <add>, %462, %cst_304 [1, 2] : vector<1x32x32xf32> to vector<1xf32>
    %464 = vector.shape_cast %463 : vector<1xf32> to vector<1x1x1xf32>
    %465 = vector.extract %464[0, 0, 0] : f32 from vector<1x1x1xf32>
    %cst_305 = arith.constant 9.765625E-4 : f32
    %466 = arith.mulf %465, %cst_305 : f32
    %467 = vector.broadcast %466 : f32 to vector<32x32xf32>
    %468 = arith.subf %461, %467 : vector<32x32xf32>
    %469 = arith.mulf %468, %468 : vector<32x32xf32>
    %470 = vector.shape_cast %469 : vector<32x32xf32> to vector<1x32x32xf32>
    %cst_306 = arith.constant dense<0.000000e+00> : vector<1xf32>
    %471 = vector.multi_reduction <add>, %470, %cst_306 [1, 2] : vector<1x32x32xf32> to vector<1xf32>
    %472 = vector.shape_cast %471 : vector<1xf32> to vector<1x1x1xf32>
    %473 = vector.extract %472[0, 0, 0] : f32 from vector<1x1x1xf32>
    %cst_307 = arith.constant 9.765625E-4 : f32
    %474 = arith.mulf %473, %cst_307 : f32
    %cst_308 = arith.constant 9.99999974E-6 : f32
    %475 = arith.addf %474, %cst_308 : f32
    %476 = math.rsqrt %475 : f32
    %477 = vector.broadcast %476 : f32 to vector<32x32xf32>
    %478 = arith.mulf %468, %477 : vector<32x32xf32>
    %c0_309 = arith.constant 0 : index
    %c6_310 = arith.constant 6 : index
    %c0_311 = arith.constant 0 : index
    %c0_312 = arith.constant 0 : index
    %479 = vector.load %arg6[%c0_309, %c6_310, %c0_311, %c0_312] : memref<1x8x32x32xf32, #tpu.memory_space<vmem>>, vector<1x1x32x32xf32>
    %480 = vector.shape_cast %479 : vector<1x1x32x32xf32> to vector<32x32xf32>
    %481 = vector.shape_cast %478 : vector<32x32xf32> to vector<1x1x32x32xf32>
    tpu.vector_store %arg6[%c0_309, %c6_310, %c0_311, %c0_312], %481 {strides = array<i32>} : memref<1x8x32x32xf32, #tpu.memory_space<vmem>>, vector<1x1x32x32xf32>,
    %c7_313 = arith.constant 7 : index
    %c0_314 = arith.constant 0 : index
    %482 = memref.load %arg5[%c7_313, %c0_314] : memref<8x4xf32, #tpu.memory_space<smem>>
    %483 = vector.broadcast %482 : f32 to vector<32x32xf32>
    %484 = arith.mulf %483, %77 : vector<32x32xf32>
    %c7_315 = arith.constant 7 : index
    %c1_316 = arith.constant 1 : index
    %485 = memref.load %arg5[%c7_315, %c1_316] : memref<8x4xf32, #tpu.memory_space<smem>>
    %486 = vector.broadcast %485 : f32 to vector<32x32xf32>
    %487 = arith.mulf %486, %130 : vector<32x32xf32>
    %488 = arith.addf %484, %487 : vector<32x32xf32>
    %c7_317 = arith.constant 7 : index
    %c2_318 = arith.constant 2 : index
    %489 = memref.load %arg5[%c7_317, %c2_318] : memref<8x4xf32, #tpu.memory_space<smem>>
    %490 = vector.broadcast %489 : f32 to vector<32x32xf32>
    %491 = arith.mulf %490, %183 : vector<32x32xf32>
    %492 = arith.addf %488, %491 : vector<32x32xf32>
    %c7_319 = arith.constant 7 : index
    %c3_320 = arith.constant 3 : index
    %493 = memref.load %arg5[%c7_319, %c3_320] : memref<8x4xf32, #tpu.memory_space<smem>>
    %494 = vector.broadcast %493 : f32 to vector<32x32xf32>
    %495 = arith.mulf %494, %236 : vector<32x32xf32>
    %496 = arith.addf %492, %495 : vector<32x32xf32>
    %497 = vector.shape_cast %496 : vector<32x32xf32> to vector<1x32x32xf32>
    %cst_321 = arith.constant dense<0.000000e+00> : vector<1xf32>
    %498 = vector.multi_reduction <add>, %497, %cst_321 [1, 2] : vector<1x32x32xf32> to vector<1xf32>
    %499 = vector.shape_cast %498 : vector<1xf32> to vector<1x1x1xf32>
    %500 = vector.extract %499[0, 0, 0] : f32 from vector<1x1x1xf32>
    %cst_322 = arith.constant 9.765625E-4 : f32
    %501 = arith.mulf %500, %cst_322 : f32
    %502 = vector.broadcast %501 : f32 to vector<32x32xf32>
    %503 = arith.subf %496, %502 : vector<32x32xf32>
    %504 = arith.mulf %503, %503 : vector<32x32xf32>
    %505 = vector.shape_cast %504 : vector<32x32xf32> to vector<1x32x32xf32>
    %cst_323 = arith.constant dense<0.000000e+00> : vector<1xf32>
    %506 = vector.multi_reduction <add>, %505, %cst_323 [1, 2] : vector<1x32x32xf32> to vector<1xf32>
    %507 = vector.shape_cast %506 : vector<1xf32> to vector<1x1x1xf32>
    %508 = vector.extract %507[0, 0, 0] : f32 from vector<1x1x1xf32>
    %cst_324 = arith.constant 9.765625E-4 : f32
    %509 = arith.mulf %508, %cst_324 : f32
    %cst_325 = arith.constant 9.99999974E-6 : f32
    %510 = arith.addf %509, %cst_325 : f32
    %511 = math.rsqrt %510 : f32
    %512 = vector.broadcast %511 : f32 to vector<32x32xf32>
    %513 = arith.mulf %503, %512 : vector<32x32xf32>
    %c0_326 = arith.constant 0 : index
    %c7_327 = arith.constant 7 : index
    %c0_328 = arith.constant 0 : index
    %c0_329 = arith.constant 0 : index
    %514 = vector.load %arg6[%c0_326, %c7_327, %c0_328, %c0_329] : memref<1x8x32x32xf32, #tpu.memory_space<vmem>>, vector<1x1x32x32xf32>
    %515 = vector.shape_cast %514 : vector<1x1x32x32xf32> to vector<32x32xf32>
    %516 = vector.shape_cast %513 : vector<32x32xf32> to vector<1x1x32x32xf32>
    tpu.vector_store %arg6[%c0_326, %c7_327, %c0_328, %c0_329], %516 {strides = array<i32>} : memref<1x8x32x32xf32, #tpu.memory_space<vmem>>, vector<1x1x32x32xf32>,
    return
  }
  func.func @transform_0(%arg0: i32) -> (i32, i32, i32) {
    %c0_i32 = arith.constant 0 : i32
    %c0_i32_0 = arith.constant 0 : i32
    %c0_i32_1 = arith.constant 0 : i32
    return %arg0, %c0_i32, %c0_i32_0 : i32, i32, i32
  }
  func.func @transform_1(%arg0: i32) -> (i32, i32) {
    %c0_i32 = arith.constant 0 : i32
    %c0_i32_0 = arith.constant 0 : i32
    %c0_i32_1 = arith.constant 0 : i32
    return %c0_i32, %c0_i32_0 : i32, i32
  }
  func.func @transform_2(%arg0: i32) -> (i32, i32) {
    %c0_i32 = arith.constant 0 : i32
    %c0_i32_0 = arith.constant 0 : i32
    %c0_i32_1 = arith.constant 0 : i32
    return %c0_i32, %c0_i32_0 : i32, i32
  }
  func.func @transform_3(%arg0: i32) -> (i32, i32) {
    %c0_i32 = arith.constant 0 : i32
    %c0_i32_0 = arith.constant 0 : i32
    %c0_i32_1 = arith.constant 0 : i32
    return %c0_i32, %c0_i32_0 : i32, i32
  }
  func.func @transform_4(%arg0: i32) -> (i32, i32) {
    %c0_i32 = arith.constant 0 : i32
    %c0_i32_0 = arith.constant 0 : i32
    %c0_i32_1 = arith.constant 0 : i32
    return %c0_i32, %c0_i32_0 : i32, i32
  }
  func.func @transform_5(%arg0: i32) -> (i32, i32, i32, i32) {
    %c0_i32 = arith.constant 0 : i32
    %c0_i32_0 = arith.constant 0 : i32
    %c0_i32_1 = arith.constant 0 : i32
    %c0_i32_2 = arith.constant 0 : i32
    return %arg0, %c0_i32, %c0_i32_0, %c0_i32_1 : i32, i32, i32, i32
  }
}

</mosaic_0001>

<bundles_post_ra>
// kernel: tpu_custom_call.1
= control target key start
LH: loop header
LB: loop body
LE: loop exit
PB: predicated region body
PF: predicated region fallthrough
CT: control target
= control target key end

     0   :  { %s4502_s0 = inlined_call_operand.vmem [shape: f32[2,64,16], index: 0, kind: input, shape index: {}]   ;;  %s4503_s1 = inlined_call_operand.vmem [shape: f32[34,16], index: 1, kind: input, shape index: {}]   ;;  %s4504_s2 = inlined_call_operand.vmem [shape: f32[16,34], index: 2, kind: input, shape index: {}]   ;;  %s4505_s3 = inlined_call_operand.vmem [shape: f32[4,9], index: 3, kind: input, shape index: {}]   ;;  %s4506_s4 = inlined_call_operand.vmem [shape: f32[8,4], index: 4, kind: input, shape index: {}]   ;;  %s4507_s5 = inlined_call_operand.hbm [shape: f32[2,8,32,32], index: 5, kind: output, shape index: {}]  }
   0x1   :  { %4552 = sst [smem:[#allocation48_spill]] %s4502_s0 }
   0x2   :  { %10 = vsyncpa [#allocation5], 0 }
   0x3   :  { %11 = vsyncpa [#allocation7], 0 }
   0x4   :  { %12 = vsyncpa [#allocation4], 0 }
   0x5   :  { %14 = vsyncpa [#allocation4 + $0x1], 0  ;;  %s2974_s18 = smov 0   ;;  %s2976_s19 = smov 0  }
   0x6   :  { %s2978_s20 = smov 0   ;;  %s2980_s21 = smov 0  }
   0x7 LB: > { %s2995_s22 = sadd.s32 4294967295, %s2932_s21   ;;  %s2413_s23 = sadd.s32 4294967294, %s2932_s21   ;;  %s2932_s21 = sphi %s2980_s21, %s4669_s21   ;;  %s2928_s20 = sphi %s2978_s20, %s4668_s20   ;;  %s2924_s19 = sphi %s2976_s19, %s4667_s19   ;;  %s2920_s18 = sphi %s2974_s18, %s4666_s18  }
   0x8   : > { %s2999_s24 = sadd.s32 1, %s2932_s21   ;;  %s137_s25 = sadd.s32 1, %s2928_s20 }
   0x9   : > { %s134_s26 = ssub.s32 %s2932_s21, %s2999_s24  ;;  %p147_p0 = scmp.ne.s32.totalorder %s2928_s20, %s2924_s19 }
   0xa   : > { %p135_p1 = scmp.eq.s32.totalorder %s134_s26, 0  ;;  %p148_p2 = scmp.eq.s32.totalorder %s2995_s22, 1 }
   0xb   : > { %p153_p3 = scmp.ne.s32.totalorder %s2924_s19, %s2920_s18  ;;  %p154_p4 = scmp.eq.s32.totalorder %s2413_s23, 1 }
   0xc   : > { %s3010_s27 = scalar_select %p135_p1, %s2928_s20, %s137_s25  }
   0xd   : > { %p3012_p5 = por %p148_p2, %p147_p0  ;;  %p3016_p6 = por %p154_p4, %p153_p3 }
   0xe   : > { %p2414_p7 = scmp.ge.s32.totalorder %s2932_s21, 1  ;;  %p161_p8 = scmp.lt.s32.totalorder %s2932_s21, 3 }
   0xf   : > { %s4553_s28 = scalar_select %p3012_p5, 1, 0 }
  0x10   : > { %s4554_s29 = scalar_select %p3016_p6, 1, 0 }
  0x11   : > { %p4508_p9 = scmp.eq.s32.totalorder %s2995_s22, 0  ;;  %p3023_p10 = pnand %p2414_p7, %p161_p8 }
  0x12   : > { %s180_s8 = sshll.u32 %s4505_s3, 4  ;;  %s191_s11 = sshll.u32 %s4506_s4, 4  ;;  %s181_s8 = int_to_ptr.vmem [resolvable:$true] %s180_s8  ;;  %s192_s11 = int_to_ptr.vmem [resolvable:$true] %s191_s11 }
  0x13   : > { %s4555_s30 = scalar_select %p3023_p10, 1, 0 }
  0x14   : > { %p2759_p11 = pneg %p3023_p10  ;;  %s2832_s13 = scalar_lea.vmem %s181_s8, 64 }
  0x15   : > { %p2833_p13 = scmp.ne.s32.totalorder %s181_s8, %s2832_s13  ;;  %p2840_p3 = scmp.lt.s32.totalorder %s181_s8, %s181_s8 }
  0x16   : > { %p3037_p12 = pnand %p4508_p9, %p2759_p11  ;;  %p2841_p4 = scmp.lt.s32.totalorder %s2832_s13, %s2832_s13 }
  0x18   : > { %p2834_p0 = pneg %p3037_p12  ;;  %p2842_p7 = por %p2841_p4, %p2840_p3 }
  0x1a   : > { %p2835_p1 = pnand %p2834_p0, %p2833_p13 }
  0x1c   : > { %p2836_p2 = pneg %p2835_p1 }
  0x1e   : > { %p2843_p8 = pnand %p2842_p7, %p2836_p2 }
  0x20   : > { %2846 = shalt.err (!%p2843_p8)
}
  0x21   : > { %s2934_s14 = smov [#allocation3]   ;;  %s2847_s15 = scalar_lea.vmem %s192_s11, 128 }
  0x22   : > { %2762 = dma.vmem_to_smem (!%p3037_p12), %s181_s8, 64, %s2934_s14, [#allocation5]  }
  0x23   : > { %p2848_p11 = scmp.ne.s32.totalorder %s192_s11, %s2847_s15  ;;  %p2855_p5 = scmp.lt.s32.totalorder %s192_s11, %s192_s11 }
  0x24   : > { %p2856_p10 = scmp.lt.s32.totalorder %s2847_s15, %s2847_s15 }
  0x25   : > { %p2850_p9 = pnand %p2848_p11, %p2834_p0 }
  0x26   : > { %p2857_p13 = por %p2856_p10, %p2855_p5 }
  0x27   : > { %p2851_p6 = pneg %p2850_p9 }
  0x29   : > { %p2858_p1 = pnand %p2857_p13, %p2851_p6 }
  0x2b   : > { %2861 = shalt.err (!%p2858_p1)
}
  0x2c   : > { %s2935_s16 = smov [#allocation6]   ;;  %p4557_p2 = scmp.ne.s32.totalorder %s4555_s30, 0 }
  0x2d   : > { %2765 = dma.vmem_to_smem (!%p3037_p12), %s192_s11, 128, %s2935_s16, [#allocation7]  }
  0x2e   : > { %212 = sbr.rel (%p4557_p2) target bundleno = 3327 (0xcff), region = 40 }
  0x35   : > { %p4558_p3 = scmp.eq.s32.totalorder %s2995_s22, 0 }
  0x37   : > { %2907 = dma.done.wait (%p4558_p3), [#allocation5], 64   ;;  %p4559_p4 = pmov %p4558_p3 }
  0x38   : > { %p4560_p9 = pmov %p4558_p3 }
  0x39   : > { %2909 = vsyncadd (%p4559_p4), [#allocation5], 4294967232 }
  0x3a   : > { %2911 = dma.done.wait (%p4560_p9), [#allocation7], 128   ;;  %p4561_p5 = pmov %p4558_p3 }
  0x3c   : > { %2913 = vsyncadd (%p4561_p5), [#allocation7], 4294967168 }
  0x3d   : > { %222 = sfence }
  0x3e   : > { %v258_v0 = vld [vmem:[%s4504_s2] sm:$0xff]  ;;  %v259_v1 = vld [vmem:[%s4504_s2 + $0x8] sm:$0xff]  ;;  %p245_p6 = scmp.lt.s32.totalorder %s2995_s22, 1  ;;  %vm260_vm0 = vcmask 130048   ;;  %s4562_s0 = sld [smem:[#allocation48_spill]]  ;;  %v2936_v11 = vmov 0.0|0.0  }
  0x3f   : > { %v2683_v2 = vpack.c.bf16 %v259_v1, %v258_v0  ;;  %vm2937_vm1 = vmmov 0   ;;  %v2938_v12 = vmov 0.0   ;;  %v390_v20 = vld [vmem:[%s4503_s1] sm:$0xff]  ;;  %v391_v26 = vld [vmem:[%s4503_s1 + $0x8] sm:$0xff]  ;;  %v392_v27 = vld [vmem:[%s4503_s1 + $0x10] sm:$0xff]  ;;  %vm500_vm2 = vcmask 277504  }
  0x40   : > { %s246_s30 = scalar_select %p245_p6, %s2995_s22, 1  ;;  %v393_v28 = vld [vmem:[%s4503_s1 + $0x18] sm:$0xff]  ;;  %v394_v29 = vld [vmem:[%s4503_s1 + $0x20] sm:$0x3]  ;;  %vm505_vm3 = vcmask 271360   ;;  %vm1607_vm4 = vcmask 261120  }
  0x41   : > { %2684 = vmatprep.subr.bf16.mxu0 %v2683_v2  ;;  %2699 = vmatprep.subr.bf16.mxu1 %v2683_v2  ;;  %s2453_s26 = sld [smem:[#allocation3 + $0x2]]  ;;  %s2456_s7 = sld [smem:[#allocation3 + $0x5]] }
  0x42   : > { %2686 = vmatpush3.bf16.msra.mxu0 %v2683_v2  ;;  %s2551_s6 = sshll.u32 %s246_s30, 6  ;;  %2700 = vmatpush3.bf16.msra.mxu1 %v2683_v2  ;;  %s2452_s30 = sld [smem:[#allocation3 + $0x1]] }
  0x43   : > { %2687 = vmatprep.subr.bf16.mxu1 %v2936_v11  ;;  %2690 = vmatprep.subr.bf16.mxu0 %v2936_v11  ;;  %s2462_s8 = sld [smem:[#allocation3 + $0x82]]  ;;  %s2939_s10 = smov 126  }
  0x44   : > { %s249_s9 = scalar_lea.vmem %s4562_s0, %s2551_s6  ;;  %s2461_s6 = sld [smem:[#allocation3 + $0x81]] }
  0x45   : > { %v250_v3 = vld [vmem:[%s249_s9] sm:$0xff]  ;;  %v251_v4 = vld [vmem:[%s249_s9 + $0x8] sm:$0xff]  ;;  %v252_v5 = vld [vmem:[%s249_s9 + $0x10] sm:$0xff]  ;;  %s4511_s11 = smov 127   ;;  %s2455_s12 = sld [smem:[#allocation3 + $0x4]] }
  0x46   : > { %2595 = vmatprep.mubr.msk.f32.mxu0 %vm260_vm0, %v250_v3  ;;  %v254_v6 = vld [vmem:[%s249_s9 + $0x20] sm:$0xff]  ;;  %v255_v7 = vld [vmem:[%s249_s9 + $0x28] sm:$0xff]  ;;  %v256_v8 = vld [vmem:[%s249_s9 + $0x30] sm:$0xff]  ;;  %s2458_s13 = sld [smem:[#allocation3 + $0x7]]  ;;  %s2465_s14 = sld [smem:[#allocation3 + $0x85]] }
  0x47   : > { %2596 = vmatmul.mubr.msk.f32.vlgmr.msra.gmra.mrb[0].mxu0 %vm260_vm0, %v251_v4  ;;  %2601 = vmatprep.mubr.msk.f32.mxu1 %vm260_vm0, %v254_v6  ;;  %v253_v9 = vld [vmem:[%s249_s9 + $0x18] sm:$0xff]  ;;  %v3134_v36 = vstv %s2453_s26  ;;  %v3164_v55 = vstv %s2456_s7  ;;  %s2464_s15 = sld [smem:[#allocation3 + $0x84]]  ;;  %s2468_s16 = sld [smem:[#allocation3 + $0x88]] }
  0x48   : > { %2598 = vmatprep.mubr.msk.f32.mxu0 %vm260_vm0, %v252_v5  ;;  %2602 = vmatmul.mubr.msk.f32.vlgmr.msra.gmra.mrb[0].mxu1 %vm260_vm0, %v255_v7  ;;  %v257_v10 = vld [vmem:[%s249_s9 + $0x38] sm:$0xff]  ;;  %v3136_v37 = vstv %s2452_s30  ;;  %s3148_s9 = sld [smem:[#allocation3 + $0x8]]  ;;  %s2467_s17 = sld [smem:[#allocation3 + $0x87]] }
  0x49   : > { %2604 = vmatprep.mubr.msk.f32.mxu1 %vm260_vm0, %v256_v8  ;;  %v3174_v62 = vstv %s2462_s8  ;;  %s2471_s23 = sld [smem:[#allocation3 + $0x102]]  ;;  %s2470_s25 = sld [smem:[#allocation3 + $0x101]] }
  0x4a   : > { %v3146_v45 = vstv %s2461_s6  ;;  %s2480_s26 = sld [smem:[#allocation3 + $0x182]]  ;;  %s2479_s30 = sld [smem:[#allocation3 + $0x181]] }
  0x4b   : > { %2599 = vmatmul.mubr.msk.f32.gmra.mrb[2].mxu0 %vm260_vm0, %v253_v9  ;;  %v3191_v8 = vstv %s2455_s12  ;;  %s2474_s6 = sld [smem:[#allocation3 + $0x105]]  ;;  %s2473_s7 = sld [smem:[#allocation3 + $0x104]] }
  0x4c   : > { %2605 = vmatmul.mubr.msk.f32.gmra.mrb[2].mxu1 %vm260_vm0, %v257_v10  ;;  %2630 = vmatprep.mubr.msk.f32.mxu0 %vm2937_vm1, %v2938_v12  ;;  %s2477_s8 = sld [smem:[#allocation3 + $0x108]]  ;;  %s3591_s0 = sld [smem:[#allocation6 + $0x381]] }
  0x4d   : > { %2611 = vmatprep.mubr.msk.f32.mxu1 %vm2937_vm1, %v2938_v12  ;;  %s795_s12 = sld [smem:[#allocation3]]  ;;  %p4664_p12 = scmp.ne.s32.totalorder %s4553_s28, 0 }
  0x4e   : > { %v3179_v0 = vstv %s3148_s9  ;;  %s2476_s9 = sld [smem:[#allocation3 + $0x107]] }
 0x11a   : > { %v2597_v13 = vpop.f32.mrb[0].mxu0 }
 0x11b   : > { %v351_v14 = vpop.f32.mrb[1].mxu0  ;;  %v2603_v15 = vpop.f32.mrb[0].mxu1 }
 0x11c   : > { %v2688_v16 = vpack.c.bf16 %v2597_v13, %v351_v14  ;;  %v371_v17 = vpop.f32.mrb[1].mxu1 }
 0x11d   : > { %v2694_v18 = vpack.c.bf16 %v2603_v15, %v371_v17  ;;  %v3201_v15 = vstv %s2458_s13  ;;  %s2454_s13 = sld [smem:[#allocation3 + $0x3]] }
 0x11e   : > { %v2600_v19 = vpop.f32.mrb[2].mxu0  ;;  %2689 = vmatpush3.bf16.msra.mxu1 %v2688_v16 }
 0x11f   : > { %v361_v21 = vpop.f32.mrb[3].mxu0  ;;  %2693 = vmatprep.subr.bf16.mxu1 %v2936_v11  ;;  %v2606_v22 = vpop.f32.mrb[2].mxu1 }
 0x120   : > { %v2691_v23 = vpack.c.bf16 %v2600_v19, %v361_v21  ;;  %v381_v24 = vpop.f32.mrb[3].mxu1 }
 0x121   : > { %2612 = vmatmul.mubr.msk.f32.vlgmr.msra.gmra.mrb[4].mxu1 %vm260_vm0, %v390_v20  ;;  %v2697_v25 = vpack.c.bf16 %v2606_v22, %v381_v24 }
 0x122   : > { %2692 = vmatpush3.bf16.msra.mxu0 %v2691_v23  ;;  %2614 = vmatprep.mubr.msk.f32.mxu1 %vm2937_vm1, %v2938_v12 }
 0x123   : > { %2695 = vmatpush3.bf16.msra.mxu1 %v2694_v18  ;;  %2696 = vmatprep.subr.bf16.mxu0 %v2936_v11 }
 0x125   : > { %2615 = vmatmul.mubr.msk.f32.gmra.mrb[6].mxu1 %vm260_vm0, %v391_v26  ;;  %2631 = vmatmul.mubr.msk.f32.vlgmr.msra.gmra.mrb[4].mxu0 %vm260_vm0, %v390_v20 }
 0x126   : > { %2617 = vmatprep.mubr.msk.f32.mxu1 %vm2937_vm1, %v2938_v12  ;;  %2633 = vmatprep.mubr.msk.f32.mxu0 %vm2937_vm1, %v2938_v12 }
 0x127   : > { %2698 = vmatpush3.bf16.msra.mxu0 %v2697_v25 }
 0x129   : > { %2618 = vmatmul.mubr.msk.f32.gmra.mrb[8].mxu1 %vm260_vm0, %v392_v27  ;;  %2634 = vmatmul.mubr.msk.f32.gmra.mrb[6].mxu0 %vm260_vm0, %v391_v26 }
 0x12a   : > { %2636 = vmatprep.mubr.msk.f32.mxu0 %vm2937_vm1, %v2938_v12  ;;  %2620 = vmatprep.mubr.msk.f32.mxu1 %vm2937_vm1, %v2938_v12 }
 0x12d   : > { %2637 = vmatmul.mubr.msk.f32.gmra.mrb[8].mxu0 %vm260_vm0, %v392_v27  ;;  %2621 = vmatmul.mubr.msk.f32.gmra.mrb[10].mxu1 %vm260_vm0, %v393_v28 }
 0x12e   : > { %2623 = vmatprep.mubr.msk.f32.mxu1 %vm2937_vm1, %v2938_v12  ;;  %2639 = vmatprep.mubr.msk.f32.mxu0 %vm2937_vm1, %v2938_v12 }
 0x131   : > { %2624 = vmatmul.mubr.msk.f32.gmra.mrb[12].mxu1 %vm260_vm0, %v394_v29  ;;  %2640 = vmatmul.mubr.msk.f32.gmra.mrb[10].mxu0 %vm260_vm0, %v393_v28 }
 0x132   : > { %2642 = vmatprep.mubr.msk.f32.mxu0 %vm2937_vm1, %v2938_v12  ;;  %2649 = vmatprep.mubr.msk.f32.mxu1 %vm2937_vm1, %v2938_v12 }
 0x135   : > { %2643 = vmatmul.mubr.msk.f32.gmra.mrb[12].mxu0 %vm260_vm0, %v394_v29  ;;  %2650 = vmatmul.mubr.msk.f32.vlgmr.msra.gmra.mrb[14].mxu1 %vm260_vm0, %v390_v20 }
 0x136   : > { %2652 = vmatprep.mubr.msk.f32.mxu1 %vm2937_vm1, %v2938_v12  ;;  %2668 = vmatprep.mubr.msk.f32.mxu0 %vm2937_vm1, %v2938_v12 }
 0x139   : > { %2653 = vmatmul.mubr.msk.f32.gmra.mrb[16].mxu1 %vm260_vm0, %v391_v26  ;;  %2669 = vmatmul.mubr.msk.f32.vlgmr.msra.gmra.mrb[14].mxu0 %vm260_vm0, %v390_v20 }
 0x13a   : > { %2655 = vmatprep.mubr.msk.f32.mxu1 %vm2937_vm1, %v2938_v12  ;;  %2671 = vmatprep.mubr.msk.f32.mxu0 %vm2937_vm1, %v2938_v12 }
 0x13d   : > { %2656 = vmatmul.mubr.msk.f32.gmra.mrb[18].mxu1 %vm260_vm0, %v392_v27  ;;  %2672 = vmatmul.mubr.msk.f32.gmra.mrb[16].mxu0 %vm260_vm0, %v391_v26 }
 0x13e   : > { %2658 = vmatprep.mubr.msk.f32.mxu1 %vm2937_vm1, %v2938_v12  ;;  %2674 = vmatprep.mubr.msk.f32.mxu0 %vm2937_vm1, %v2938_v12 }
 0x141   : > { %2659 = vmatmul.mubr.msk.f32.gmra.mrb[20].mxu1 %vm260_vm0, %v393_v28  ;;  %2675 = vmatmul.mubr.msk.f32.gmra.mrb[18].mxu0 %vm260_vm0, %v392_v27 }
 0x142   : > { %2661 = vmatprep.mubr.msk.f32.mxu1 %vm2937_vm1, %v2938_v12  ;;  %2677 = vmatprep.mubr.msk.f32.mxu0 %vm2937_vm1, %v2938_v12 }
 0x145   : > { %2662 = vmatmul.mubr.msk.f32.gmra.mrb[22].mxu1 %vm260_vm0, %v394_v29  ;;  %2678 = vmatmul.mubr.msk.f32.gmra.mrb[20].mxu0 %vm260_vm0, %v393_v28 }
 0x146   : > { %2680 = vmatprep.mubr.msk.f32.mxu0 %vm2937_vm1, %v2938_v12 }
 0x149   : > { %2681 = vmatmul.mubr.msk.f32.gmra.mrb[22].mxu0 %vm260_vm0, %v394_v29 }
 0x1f4   : > { %v476_v30 = vpop.f32.mrb[4].mxu1 }
 0x1f5   : > { %501 = vst.msk [vmem:[#allocation2] sm:$0xff] %vm500_vm2, %v476_v30  ;;  %v2613_v31 = vpop.f32.mrb[5].mxu1 }
 0x1f8   : > { %v481_v32 = vpop.f32.mrb[6].mxu1  ;;  %v573_v33 = vpop.f32.mrb[4].mxu0 }
 0x1f9   : > { %502 = vst.msk [vmem:[#allocation2 + $0x8] sm:$0xff] %vm500_vm2, %v481_v32  ;;  %598 = vst.msk [vmem:[#allocation2 + $0x28] sm:$0xff] %vm500_vm2, %v573_v33  ;;  %v2616_v34 = vpop.f32.mrb[7].mxu1  ;;  %v2632_v35 = vpop.f32.mrb[5].mxu0 }
 0x1fc   : > { %v486_v38 = vpop.f32.mrb[8].mxu1  ;;  %v3138_v39 = vld [vmem:[#allocation2] sm:$0xff]  ;;  %v578_v40 = vpop.f32.mrb[6].mxu0 }
 0x1fd   : > { %503 = vst.msk [vmem:[#allocation2 + $0x10] sm:$0xff] %vm500_vm2, %v486_v38  ;;  %v833_v41 = vmul.f32 %v3134_v36, %v3138_v39  ;;  %v807_v42 = vmul.f32 %v3136_v37, %v3138_v39  ;;  %599 = vst.msk [vmem:[#allocation2 + $0x30] sm:$0xff] %vm500_vm2, %v578_v40  ;;  %v2635_v43 = vpop.f32.mrb[7].mxu0  ;;  %v2619_v44 = vpop.f32.mrb[9].mxu1  ;;  %v3233_v40 = vstv %s2465_s14  ;;  %s2482_s14 = sld [smem:[#allocation3 + $0x184]] }
 0x1ff   : > { %841 = vrot.lane.b32.xlu1 %v833_v41, %s2939_s10  ;;  %815 = vrot.lane.b32.xlu0 %v807_v42, %s4511_s11  ;;  %v3235_v41 = vstv %s2464_s15  ;;  %s2460_s15 = sld [smem:[#allocation3 + $0x80]] }
 0x200   : > { %v3152_v46 = vld [vmem:[#allocation2 + $0x8] sm:$0xff]  ;;  %v583_v48 = vpop.f32.mrb[8].mxu0  ;;  %v491_v49 = vpop.f32.mrb[10].mxu1 }
 0x201   : > { %v3154_v47 = vld [vmem:[#allocation2 + $0x28] sm:$0xff]  ;;  %v808_v50 = vmul.f32 %v3136_v37, %v3152_v46  ;;  %600 = vst.msk [vmem:[#allocation2 + $0x38] sm:$0xff] %vm500_vm2, %v583_v48  ;;  %504 = vst.msk [vmem:[#allocation2 + $0x18] sm:$0xff] %vm500_vm2, %v491_v49  ;;  %v2622_v52 = vpop.f32.mrb[11].mxu1  ;;  %v2638_v53 = vpop.f32.mrb[9].mxu0  ;;  %v834_v58 = vmul.f32 %v3134_v36, %v3152_v46 }
 0x202   : > { %v1001_v51 = vmul.f32 %v3146_v45, %v3154_v47  ;;  %v3162_v54 = vld [vmem:[#allocation2 + $0x1] sm:$0xff]  ;;  %v1027_v4 = vmul.f32 %v3174_v62, %v3154_v47  ;;  %v3254_v53 = vstv %s2468_s16  ;;  %s2463_s16 = sld [smem:[#allocation3 + $0x83]] }
 0x203   : > { %817 = vrot.lane.b32.xlu0 %v808_v50, %s4511_s11  ;;  %v899_v59 = vmul.f32 %v3164_v55, %v3162_v54  ;;  %v3176_v63 = vld [vmem:[#allocation2 + $0x2] sm:$0xff]  ;;  %v873_v12 = vmul.f32 %v3191_v8, %v3162_v54 }
 0x204   : > { %1009 = vrot.lane.b32.xlu1 %v1001_v51, %s4511_s11  ;;  %v496_v56 = vpop.f32.mrb[12].mxu1  ;;  %v588_v57 = vpop.f32.mrb[10].mxu0  ;;  %v3183_v1 = vld [vmem:[#allocation2 + $0x30] sm:$0xff]  ;;  %v965_v5 = vmul.f32 %v3179_v0, %v3176_v63  ;;  %v939_v19 = vmul.f32 %v3201_v15, %v3176_v63 }
 0x205   : > { %506 = vst.msk [vmem:[#allocation2 + $0x20] sm:$0x3] %vm505_vm3, %v496_v56  ;;  %v2641_v60 = vpop.f32.mrb[11].mxu0  ;;  %v2625_v61 = vpop.f32.mrb[13].mxu1  ;;  %v1002_v9 = vmul.f32 %v3146_v45, %v3183_v1  ;;  %v3205_v16 = vld [vmem:[#allocation2 + $0x10] sm:$0xff]  ;;  %v1028_v20 = vmul.f32 %v3174_v62, %v3183_v1  ;;  %v3256_v56 = vstv %s2467_s17  ;;  %s2485_s17 = sld [smem:[#allocation3 + $0x187]] }
 0x206   : > { %601 = vst.msk [vmem:[#allocation2 + $0x40] sm:$0xff] %vm500_vm2, %v588_v57  ;;  %v809_v23 = vmul.f32 %v3136_v37, %v3205_v16  ;;  %v835_v24 = vmul.f32 %v3134_v36, %v3205_v16  ;;  %v3221_v29 = vld [vmem:[#allocation2 + $0x9] sm:$0xff] }
 0x207   : > { %843 = vrot.lane.b32.xlu0 %v834_v58, %s2939_s10  ;;  %v900_v32 = vmul.f32 %v3164_v55, %v3221_v29  ;;  %v874_v33 = vmul.f32 %v3191_v8, %v3221_v29  ;;  %v3231_v38 = vld [vmem:[#allocation2 + $0x29] sm:$0xff] }
 0x208   : > { %907 = vrot.lane.b32.xlu1 %v899_v59, %s2939_s10  ;;  %v593_v2 = vpop.f32.mrb[12].mxu0  ;;  %v669_v3 = vpop.f32.mrb[14].mxu1  ;;  %v1093_v43 = vmul.f32 %v3233_v40, %v3231_v38  ;;  %v1067_v44 = vmul.f32 %v3235_v41, %v3231_v38  ;;  %v3244_v49 = vld [vmem:[#allocation2 + $0xa] sm:$0xff]  ;;  %v3260_v57 = vld [vmem:[#allocation2 + $0x18] sm:$0xff] }
 0x209   : > { %602 = vst.msk [vmem:[#allocation2 + $0x48] sm:$0x3] %vm505_vm3, %v593_v2  ;;  %v2651_v6 = vpop.f32.mrb[15].mxu1  ;;  %v2644_v7 = vpop.f32.mrb[13].mxu0  ;;  %v966_v50 = vmul.f32 %v3179_v0, %v3244_v49  ;;  %v940_v51 = vmul.f32 %v3201_v15, %v3244_v49  ;;  %v3252_v52 = vld [vmem:[#allocation2 + $0x2a] sm:$0xff]  ;;  %v3262_v58 = vld [vmem:[#allocation2 + $0x38] sm:$0xff]  ;;  %v810_v61 = vmul.f32 %v3136_v37, %v3260_v57 }
 0x20a   : > { %694 = vst.msk [vmem:[#allocation2 + $0x50] sm:$0xff] %vm500_vm2, %v669_v3  ;;  %v1159_v59 = vmul.f32 %v3254_v53, %v3252_v52  ;;  %v1133_v60 = vmul.f32 %v3256_v56, %v3252_v52  ;;  %v1003_v2 = vmul.f32 %v3146_v45, %v3262_v58  ;;  %v3274_v3 = vld [vmem:[#allocation2 + $0x31] sm:$0xff]  ;;  %v836_v7 = vmul.f32 %v3134_v36, %v3260_v57 }
 0x20b   : > { %1035 = vrot.lane.b32.xlu0 %v1027_v4, %s2939_s10  ;;  %v1068_v4 = vmul.f32 %v3235_v41, %v3274_v3  ;;  %v3282_v6 = vld [vmem:[#allocation2 + $0x11] sm:$0xff] }
 0x20c   : > { %973 = vrot.lane.b32.xlu1 %v965_v5, %s2939_s10  ;;  %v674_v10 = vpop.f32.mrb[16].mxu1  ;;  %v765_v11 = vpop.f32.mrb[14].mxu0  ;;  %v1029_v5 = vmul.f32 %v3174_v62, %v3262_v58  ;;  %v875_v37 = vmul.f32 %v3191_v8, %v3282_v6 }
 0x20d   : > { %695 = vst.msk [vmem:[#allocation2 + $0x58] sm:$0xff] %vm500_vm2, %v674_v10  ;;  %v2654_v13 = vpop.f32.mrb[17].mxu1  ;;  %790 = vst.msk [vmem:[#allocation2 + $0x78] sm:$0xff] %vm500_vm2, %v765_v11  ;;  %v2670_v14 = vpop.f32.mrb[15].mxu0  ;;  %v1094_v10 = vmul.f32 %v3233_v40, %v3274_v3  ;;  %v3296_v11 = vld [vmem:[#allocation2 + $0x32] sm:$0xff] }
 0x20e   : > { %v1160_v36 = vmul.f32 %v3254_v53, %v3296_v11  ;;  %v3304_v13 = vld [vmem:[#allocation2 + $0x12] sm:$0xff] }
 0x20f   : > { %881 = vrot.lane.b32.xlu0 %v873_v12, %s4511_s11  ;;  %v1134_v12 = vmul.f32 %v3256_v56, %v3296_v11  ;;  %v3306_v14 = vld [vmem:[#allocation2 + $0x39] sm:$0xff] }
 0x210   : > { %1011 = vrot.lane.b32.xlu1 %v1002_v9, %s4511_s11  ;;  %v679_v17 = vpop.f32.mrb[18].mxu1  ;;  %v770_v18 = vpop.f32.mrb[16].mxu0  ;;  %v901_v9 = vmul.f32 %v3164_v55, %v3282_v6 }
 0x211   : > { %696 = vst.msk [vmem:[#allocation2 + $0x60] sm:$0xff] %vm500_vm2, %v679_v17  ;;  %791 = vst.msk [vmem:[#allocation2 + $0x80] sm:$0xff] %vm500_vm2, %v770_v18  ;;  %v2657_v21 = vpop.f32.mrb[19].mxu1  ;;  %v2673_v22 = vpop.f32.mrb[17].mxu0  ;;  %v941_v17 = vmul.f32 %v3201_v15, %v3304_v13  ;;  %v1069_v18 = vmul.f32 %v3235_v41, %v3306_v14 }
 0x212   : > { %v3322_v22 = vld [vmem:[#allocation2 + $0x40] sm:$0xff] }
 0x213   : > { %947 = vrot.lane.b32.xlu0 %v939_v19, %s4511_s11  ;;  %v3314_v19 = vld [vmem:[#allocation2 + $0x19] sm:$0xff]  ;;  %4563 = vst [vmem:[#allocation12_spill] sm:$0xff] %v3322_v22 }
 0x214   : > { %1037 = vrot.lane.b32.xlu1 %v1028_v20, %s2939_s10  ;;  %v684_v25 = vpop.f32.mrb[20].mxu1  ;;  %v775_v26 = vpop.f32.mrb[18].mxu0  ;;  %v967_v20 = vmul.f32 %v3179_v0, %v3304_v13  ;;  %v876_v21 = vmul.f32 %v3191_v8, %v3314_v19 }
 0x215   : > { %697 = vst.msk [vmem:[#allocation2 + $0x68] sm:$0xff] %vm500_vm2, %v684_v25  ;;  %792 = vst.msk [vmem:[#allocation2 + $0x88] sm:$0xff] %vm500_vm2, %v775_v26  ;;  %v2660_v27 = vpop.f32.mrb[21].mxu1  ;;  %v2676_v28 = vpop.f32.mrb[19].mxu0  ;;  %v3330_v25 = vld [vmem:[#allocation2 + $0x3a] sm:$0xff]  ;;  %v1030_v26 = vmul.f32 %v3174_v62, %v3322_v22  ;;  %v3352_v62 = vstv %s2470_s25  ;;  %s2457_s25 = sld [smem:[#allocation3 + $0x6]] }
 0x216   : > { %4564 = vst [vmem:[#allocation13_spill] sm:$0xff] %v3330_v25  ;;  %v1135_v8 = vmul.f32 %v3256_v56, %v3330_v25  ;;  %v3338_v27 = vld [vmem:[#allocation2 + $0x1a] sm:$0xff]  ;;  %v3348_v28 = vld [vmem:[#allocation2 + $0x50] sm:$0xff] }
 0x217   : > { %819 = vrot.lane.b32.xlu0 %v809_v23, %s4511_s11  ;;  %v902_v23 = vmul.f32 %v3164_v55, %v3314_v19  ;;  %4565 = vst [vmem:[#allocation14_spill] sm:$0xff] %v3338_v27  ;;  %v1095_v55 = vmul.f32 %v3233_v40, %v3306_v14  ;;  %4566 = vst [vmem:[#allocation15_spill] sm:$0xff] %v3348_v28 }
 0x218   : > { %845 = vrot.lane.b32.xlu1 %v835_v24, %s2939_s10  ;;  %v689_v30 = vpop.f32.mrb[22].mxu1  ;;  %v780_v31 = vpop.f32.mrb[20].mxu0  ;;  %v1004_v24 = vmul.f32 %v3146_v45, %v3322_v22  ;;  %v942_v45 = vmul.f32 %v3201_v15, %v3338_v27 }
 0x219   : > { %698 = vst.msk [vmem:[#allocation2 + $0x70] sm:$0x3] %vm505_vm3, %v689_v30  ;;  %v2679_v34 = vpop.f32.mrb[21].mxu0  ;;  %v2663_v35 = vpop.f32.mrb[23].mxu1  ;;  %v3350_v30 = vstv %s2471_s23  ;;  %s2483_s23 = sld [smem:[#allocation3 + $0x185]] }
 0x21a   : > { %793 = vst.msk [vmem:[#allocation2 + $0x90] sm:$0xff] %vm500_vm2, %v780_v31  ;;  %v968_v31 = vmul.f32 %v3179_v0, %v3338_v27  ;;  %v1221_v15 = vmul.f32 %v3350_v30, %v3348_v28  ;;  %v3364_v34 = vld [vmem:[#allocation2 + $0x41] sm:$0xff] }
 0x21b   : > { %909 = vrot.lane.b32.xlu0 %v900_v32, %s2939_s10  ;;  %v1161_v32 = vmul.f32 %v3254_v53, %v3330_v25  ;;  %4567 = vst [vmem:[#allocation16_spill] sm:$0xff] %v3364_v34  ;;  %v1096_v0 = vmul.f32 %v3233_v40, %v3364_v34  ;;  %v1070_v35 = vmul.f32 %v3235_v41, %v3364_v34 }
 0x21c   : > { %883 = vrot.lane.b32.xlu1 %v874_v33, %s4511_s11  ;;  %v785_v42 = vpop.f32.mrb[22].mxu0  ;;  %v1195_v33 = vmul.f32 %v3352_v62, %v3348_v28 }
 0x21d   : > { %794 = vst.msk [vmem:[#allocation2 + $0x98] sm:$0x3] %vm505_vm3, %v785_v42  ;;  %v2682_v48 = vpop.f32.mrb[23].mxu0  ;;  %v3372_v42 = vld [vmem:[#allocation2 + $0x42] sm:$0xff] }
 0x21e   : > { %4568 = vst [vmem:[#allocation17_spill] sm:$0xff] %v3372_v42  ;;  %v1136_v48 = vmul.f32 %v3256_v56, %v3372_v42 }
 0x21f   : > { %1101 = vrot.lane.b32.xlu0 %v1093_v43, %s2939_s10  ;;  %v3376_v43 = vld [vmem:[#allocation2 + $0x58] sm:$0xff] }
 0x220   : > { %1075 = vrot.lane.b32.xlu1 %v1067_v44, %s4511_s11  ;;  %4569 = vst [vmem:[#allocation18_spill] sm:$0xff] %v3376_v43  ;;  %v1162_v44 = vmul.f32 %v3254_v53, %v3372_v42  ;;  %v1222_v40 = vmul.f32 %v3350_v30, %v3376_v43  ;;  %v1196_v41 = vmul.f32 %v3352_v62, %v3376_v43  ;;  %v3392_v53 = vstv %s2479_s30  ;;  %s2466_s30 = sld [smem:[#allocation3 + $0x86]] }
 0x223   : > { %975 = vrot.lane.b32.xlu0 %v966_v50, %s2939_s10  ;;  %v3388_v50 = vld [vmem:[#allocation2 + $0x78] sm:$0xff] }
 0x224   : > { %949 = vrot.lane.b32.xlu1 %v940_v51, %s4511_s11  ;;  %4570 = vst [vmem:[#allocation19_spill] sm:$0xff] %v3388_v50  ;;  %v3390_v51 = vstv %s2480_s26  ;;  %s2486_s26 = sld [smem:[#allocation3 + $0x188]] }
 0x225   : > { %v1415_v56 = vmul.f32 %v3390_v51, %v3388_v50 }
 0x227   : > { %1167 = vrot.lane.b32.xlu0 %v1159_v59, %s2939_s10  ;;  %v1389_v59 = vmul.f32 %v3392_v53, %v3388_v50 }
 0x228   : > { %1141 = vrot.lane.b32.xlu1 %v1133_v60, %s4511_s11  ;;  %v3400_v60 = vld [vmem:[#allocation2 + $0x51] sm:$0xff] }
 0x229   : > { %4571 = vst [vmem:[#allocation20_spill] sm:$0xff] %v3400_v60 }
 0x22b   : > { %821 = vrot.lane.b32.xlu0 %v810_v61, %s4511_s11  ;;  %v3402_v61 = vstv %s2474_s6  ;;  %s3532_s6 = sld [smem:[#allocation6]] }
 0x22c   : > { %1013 = vrot.lane.b32.xlu1 %v1003_v2, %s4511_s11  ;;  %v3404_v2 = vstv %s2473_s7  ;;  %s3534_s7 = sld [smem:[#allocation6 + $0x80]] }
 0x22f   : > { %1077 = vrot.lane.b32.xlu0 %v1068_v4, %s4511_s11  ;;  %v1287_v4 = vmul.f32 %v3402_v61, %v3400_v60 }
 0x230   : > { %1039 = vrot.lane.b32.xlu1 %v1029_v5, %s2939_s10  ;;  %v1261_v5 = vmul.f32 %v3404_v2, %v3400_v60 }
 0x233   : > { %885 = vrot.lane.b32.xlu0 %v875_v37, %s4511_s11  ;;  %v3412_v37 = vld [vmem:[#allocation2 + $0x52] sm:$0xff] }
 0x234   : > { %847 = vrot.lane.b32.xlu1 %v836_v7, %s2939_s10  ;;  %4572 = vst [vmem:[#allocation21_spill] sm:$0xff] %v3412_v37  ;;  %v3414_v7 = vstv %s2477_s8  ;;  %s3540_s8 = sld [smem:[#allocation6 + $0x100]] }
 0x237   : > { %911 = vrot.lane.b32.xlu0 %v901_v9, %s2939_s10  ;;  %v3416_v9 = vstv %s2476_s9  ;;  %s3542_s9 = sld [smem:[#allocation6 + $0x180]] }
 0x238   : > { %1103 = vrot.lane.b32.xlu1 %v1094_v10, %s2939_s10  ;;  %v3420_v10 = vld [vmem:[#allocation2 + $0x60] sm:$0xff] }
 0x239   : > { %4573 = vst [vmem:[#allocation22_spill] sm:$0xff] %v3420_v10 }
 0x23b   : > { %1143 = vrot.lane.b32.xlu0 %v1134_v12, %s4511_s11  ;;  %v3422_v12 = vld [vmem:[#allocation2 + $0x80] sm:$0xff] }
 0x23c   : > { %1169 = vrot.lane.b32.xlu1 %v1160_v36, %s2939_s10  ;;  %4574 = vst [vmem:[#allocation23_spill] sm:$0xff] %v3422_v12  ;;  %v1353_v36 = vmul.f32 %v3414_v7, %v3412_v37 }
 0x23f   : > { %951 = vrot.lane.b32.xlu0 %v941_v17, %s4511_s11  ;;  %v1327_v17 = vmul.f32 %v3416_v9, %v3412_v37  ;;  %v3673_v37 = vstv %s3591_s0  ;;  %s2469_s0 = sld [smem:[#allocation3 + $0x100]] }
 0x240   : > { %1079 = vrot.lane.b32.xlu1 %v1069_v18, %s4511_s11  ;;  %v3428_v18 = vstv %s795_s12  ;;  %s3548_s12 = sld [smem:[#allocation6 + $0x200]] }
 0x243   : > { %977 = vrot.lane.b32.xlu0 %v967_v20, %s2939_s10  ;;  %v1197_v20 = vmul.f32 %v3352_v62, %v3420_v10 }
 0x244   : > { %887 = vrot.lane.b32.xlu1 %v876_v21, %s4511_s11  ;;  %v1416_v21 = vmul.f32 %v3390_v51, %v3422_v12 }
 0x247   : > { %1015 = vrot.lane.b32.xlu0 %v1004_v24, %s4511_s11 }
 0x248   : > { %913 = vrot.lane.b32.xlu1 %v902_v23, %s2939_s10  ;;  %v801_v23 = vmul.f32 %v3428_v18, %v3138_v39 }
 0x24b   : > { %1041 = vrot.lane.b32.xlu0 %v1030_v26, %s2939_s10  ;;  %v3438_v26 = vstv %s2454_s13  ;;  %s3550_s13 = sld [smem:[#allocation6 + $0x280]] }
 0x24c   : > { %1145 = vrot.lane.b32.xlu1 %v1135_v8, %s4511_s11 }
 0x24f   : > { %1105 = vrot.lane.b32.xlu0 %v1095_v55, %s2939_s10  ;;  %v3440_v55 = vld [vmem:[#allocation2 + $0x59] sm:$0xff] }
 0x250   : > { %953 = vrot.lane.b32.xlu1 %v942_v45, %s4511_s11  ;;  %4575 = vst [vmem:[#allocation24_spill] sm:$0xff] %v3440_v55  ;;  %v1288_v39 = vmul.f32 %v3402_v61, %v3440_v55 }
 0x253   : > { %1171 = vrot.lane.b32.xlu0 %v1161_v32, %s2939_s10  ;;  %v863_v32 = vmul.f32 %v3438_v26, %v3162_v54 }
 0x254   : > { %979 = vrot.lane.b32.xlu1 %v968_v31, %s2939_s10 }
 0x257   : > { %1203 = vrot.lane.b32.xlu0 %v1195_v33, %s4511_s11 }
 0x258   : > { %1229 = vrot.lane.b32.xlu1 %v1221_v15, %s2939_s10 }
 0x25b   : > { %1107 = vrot.lane.b32.xlu0 %v1096_v0, %s2939_s10  ;;  %v1390_v0 = vmul.f32 %v3392_v53, %v3422_v12 }
 0x25c   : > { %1081 = vrot.lane.b32.xlu1 %v1070_v35, %s4511_s11  ;;  %v802_v35 = vmul.f32 %v3428_v18, %v3152_v46  ;;  %v1223_v46 = vmul.f32 %v3350_v30, %v3420_v10 }
 0x25f   : > { %1173 = vrot.lane.b32.xlu0 %v1162_v44, %s2939_s10  ;;  %v3452_v44 = vld [vmem:[#allocation2 + $0x79] sm:$0xff] }
 0x260   : > { %1147 = vrot.lane.b32.xlu1 %v1136_v48, %s4511_s11  ;;  %4576 = vst [vmem:[#allocation25_spill] sm:$0xff] %v3452_v44  ;;  %v3454_v48 = vstv %s2482_s14  ;;  %s3556_s14 = sld [smem:[#allocation6 + $0x300]] }
 0x263   : > { %1231 = vrot.lane.b32.xlu0 %v1222_v40, %s2939_s10 }
 0x264   : > { %1205 = vrot.lane.b32.xlu1 %v1196_v41, %s4511_s11  ;;  %v3456_v41 = vstv %s2460_s15  ;;  %s3558_s15 = sld [smem:[#allocation6 + $0x380]] }
 0x265   : > { %4577 = vst [vmem:[#allocation26_spill] sm:$0xff] %v3456_v41 }
 0x267   : > { %1423 = vrot.lane.b32.xlu0 %v1415_v56, %s2939_s10 }
 0x268   : > { %1397 = vrot.lane.b32.xlu1 %v1389_v59, %s4511_s11 }
 0x26b   : > { %1295 = vrot.lane.b32.xlu0 %v1287_v4, %s2939_s10  ;;  %v1455_v4 = vmul.f32 %v3454_v48, %v3452_v44 }
 0x26c   : > { %1269 = vrot.lane.b32.xlu1 %v1261_v5, %s4511_s11  ;;  %v995_v5 = vmul.f32 %v3456_v41, %v3154_v47 }
 0x26f   : > { %1361 = vrot.lane.b32.xlu0 %v1353_v36, %s2939_s10 }
 0x270   : > { %1335 = vrot.lane.b32.xlu1 %v1327_v17, %s4511_s11  ;;  %v3466_v17 = vld [vmem:[#allocation2 + $0x5a] sm:$0xff] }
 0x271   : > { %v842_v24 = vpop.permute.xlu1 %841  ;;  %v816_v8 = vpop.permute.xlu0 %815  ;;  %4578 = vst [vmem:[#allocation27_spill] sm:$0xff] %v3466_v17  ;;  %v1354_v47 = vmul.f32 %v3414_v7, %v3466_v17 }
 0x272   : > { %v827_v45 = vadd.f32 %v816_v8, %v801_v23 }
 0x273   : > { %1207 = vrot.lane.b32.xlu0 %v1197_v20, %s4511_s11  ;;  %v864_v20 = vmul.f32 %v3438_v26, %v3221_v29  ;;  %v3482_v29 = vstv %s2485_s17  ;;  %s3564_s17 = sld [smem:[#allocation6 + $0x81]] }
 0x274   : > { %1425 = vrot.lane.b32.xlu1 %v1416_v21, %s2939_s10  ;;  %v853_v31 = vadd.f32 %v842_v24, %v827_v45  ;;  %v3472_v21 = vstv %s2463_s16  ;;  %s3562_s16 = sld [smem:[#allocation6 + $0x1]] }
 0x275   : > { %v818_v15 = vpop.permute.xlu0 %817  ;;  %4579 = vst [vmem:[#allocation28_spill] sm:$0xff] %v3472_v21 }
 0x276   : > { %v1010_v33 = vpop.permute.xlu1 %1009  ;;  %v867_v40 = vadd.f32 %v863_v32, %v853_v31  ;;  %v828_v54 = vadd.f32 %v818_v15, %v802_v35  ;;  %v1262_v31 = vmul.f32 %v3404_v2, %v3440_v55  ;;  %v3480_v15 = vld [vmem:[#allocation2 + $0x7a] sm:$0xff] }
 0x277   : > { %1399 = vrot.lane.b32.xlu0 %v1390_v0, %s4511_s11  ;;  %v1021_v23 = vadd.f32 %v1010_v33, %v995_v5  ;;  %4580 = vst [vmem:[#allocation29_spill] sm:$0xff] %v3480_v15  ;;  %v1057_v33 = vmul.f32 %v3472_v21, %v3231_v38  ;;  %v3490_v0 = vld [vmem:[#allocation2 + $0x68] sm:$0xff]  ;;  %v3498_v5 = vstv %s2457_s25  ;;  %v996_v38 = vmul.f32 %v3456_v41, %v3183_v1  ;;  %s3572_s25 = sld [smem:[#allocation6 + $0x181]] }
 0x278   : > { %1297 = vrot.lane.b32.xlu1 %v1288_v39, %s2939_s10  ;;  %v3484_v39 = vstv %s2483_s23  ;;  %4581 = vst [vmem:[#allocation30_spill] sm:$0xff] %v3490_v0  ;;  %s3570_s23 = sld [smem:[#allocation6 + $0x101]] }
 0x279   : > { %v844_v56 = vpop.permute.xlu0 %843 }
 0x27a   : > { %v908_v59 = vpop.permute.xlu1 %907  ;;  %v854_v36 = vadd.f32 %v844_v56, %v828_v54 }
 0x27b   : > { %1233 = vrot.lane.b32.xlu0 %v1223_v46, %s2939_s10  ;;  %v1481_v46 = vmul.f32 %v3484_v39, %v3452_v44 }
 0x27c   : > { %1463 = vrot.lane.b32.xlu1 %v1455_v4, %s4511_s11  ;;  %v868_v24 = vadd.f32 %v864_v20, %v854_v36  ;;  %v1521_v4 = vmul.f32 %v3482_v29, %v3480_v15  ;;  %v1198_v20 = vmul.f32 %v3352_v62, %v3490_v0  ;;  %v803_v62 = vmul.f32 %v3428_v18, %v3205_v16 }
 0x27d   : > { %v1036_v8 = vpop.permute.xlu0 %1035 }
 0x27e   : > { %v3474_v45 = vpop.permute.xlu1 %973  ;;  %v1047_v32 = vadd.f32 %v1036_v8, %v1021_v23 }
 0x27f   : > { %1271 = vrot.lane.b32.xlu0 %v1262_v31, %s4511_s11  ;;  %v3508_v31 = vld [vmem:[#allocation2 + $0x88] sm:$0xff] }
 0x280   : > { %1363 = vrot.lane.b32.xlu1 %v1354_v47, %s2939_s10  ;;  %v3492_v35 = vadd.f32 %v1057_v33, %v1047_v32  ;;  %v929_v47 = vmul.f32 %v3498_v5, %v3176_v63  ;;  %4582 = vst [vmem:[#allocation31_spill] sm:$0xff] %v3508_v31  ;;  %v1391_v63 = vmul.f32 %v3392_v53, %v3508_v31 }
 0x281   : > { %v882_v54 = vpop.permute.xlu0 %881 }
 0x282   : > { %v1012_v56 = vpop.permute.xlu1 %1011  ;;  %v893_v36 = vadd.f32 %v882_v54, %v867_v40  ;;  %v1328_v40 = vmul.f32 %v3416_v9, %v3466_v17  ;;  %v3656_v17 = vstv %s3572_s25  ;;  %s2484_s25 = sld [smem:[#allocation3 + $0x186]] }
 0x283   : > { %1489 = vrot.lane.b32.xlu0 %v1481_v46, %s2939_s10  ;;  %v1022_v8 = vadd.f32 %v1012_v56, %v996_v38  ;;  %v1058_v46 = vmul.f32 %v3472_v21, %v3274_v3  ;;  %v3526_v3 = vld [vmem:[#allocation2 + $0x61] sm:$0xff] }
 0x284   : > { %1529 = vrot.lane.b32.xlu1 %v1521_v4, %s4511_s11  ;;  %v919_v23 = vadd.f32 %v908_v59, %v893_v36  ;;  %v3512_v4 = vstv %s2486_s26  ;;  %4584 = vst [vmem:[#allocation33_spill] sm:$0xff] %v3526_v3  ;;  %s3579_s26 = sld [smem:[#allocation6 + $0x201]] }
 0x285   : > { %v948_v32 = vpop.permute.xlu0 %947  ;;  %4583 = vst [vmem:[#allocation32_spill] sm:$0xff] %v3512_v4  ;;  %v1547_v38 = vmul.f32 %v3512_v4, %v3480_v15  ;;  %v3647_v15 = vstv %s3564_s17  ;;  %s2532_s17 = sld [smem:[#allocation6 + $0x302]] }
 0x286   : > { %v1038_v33 = vpop.permute.xlu1 %1037  ;;  %v933_v1 = vadd.f32 %v929_v47, %v919_v23 }
 0x287   : > { %v1048_v54 = vadd.f32 %v1038_v33, %v1022_v8  ;;  %1337 = vrot.lane.b32.xlu0 %v1328_v40, %s4511_s11  ;;  %v865_v8 = vmul.f32 %v3438_v26, %v3282_v6  ;;  %v1224_v33 = vmul.f32 %v3350_v30, %v3490_v0  ;;  %v1263_v40 = vmul.f32 %v3404_v2, %v3526_v3 }
 0x288   : > { %1209 = vrot.lane.b32.xlu1 %v1198_v20, %s4511_s11  ;;  %v3554_v30 = vstv %s2466_s30  ;;  %s3581_s30 = sld [smem:[#allocation6 + $0x281]] }
 0x289   : > { %v3522_v59 = vadd.f32 %v1058_v46, %v1048_v54  ;;  %v820_v56 = vpop.permute.xlu0 %819  ;;  %v3544_v46 = vld [vmem:[#allocation2 + $0x81] sm:$0xff] }
 0x28a   : > { %v846_v36 = vpop.permute.xlu1 %845  ;;  %v829_v23 = vadd.f32 %v820_v56, %v803_v62  ;;  %4585 = vst [vmem:[#allocation34_spill] sm:$0xff] %v3544_v46 }
 0x28b   : > { %1555 = vrot.lane.b32.xlu0 %v1547_v38, %s2939_s10  ;;  %v1482_v38 = vmul.f32 %v3484_v39, %v3544_v46 }
 0x28c   : > { %1401 = vrot.lane.b32.xlu1 %v1391_v63, %s4511_s11  ;;  %v855_v20 = vadd.f32 %v846_v36, %v829_v23  ;;  %v1417_v36 = vmul.f32 %v3390_v51, %v3508_v31 }
 0x28d   : > { %v910_v16 = vpop.permute.xlu0 %909 }
 0x28e   : > { %v884_v47 = vpop.permute.xlu1 %883  ;;  %v3546_v6 = vadd.f32 %v865_v8, %v855_v20  ;;  %v3575_v20 = vld [vmem:[#allocation2 + $0x62] sm:$0xff]  ;;  %v1123_v8 = vmul.f32 %v3554_v30, %v3252_v52 }
 0x28f   : > { %v894_v54 = vadd.f32 %v884_v47, %v868_v24  ;;  %1235 = vrot.lane.b32.xlu0 %v1224_v33, %s2939_s10  ;;  %v930_v24 = vmul.f32 %v3498_v5, %v3244_v49  ;;  %4586 = vst [vmem:[#allocation35_spill] sm:$0xff] %v3575_v20  ;;  %v997_v47 = vmul.f32 %v3456_v41, %v3262_v58  ;;  %v3593_v33 = vld [vmem:[#allocation2 + $0x82] sm:$0xff] }
 0x290   : > { %1273 = vrot.lane.b32.xlu1 %v1263_v40, %s4511_s11  ;;  %s3589_s11 = sld [smem:[#allocation6 + $0x301]]  ;;  %4587 = vst [vmem:[#allocation36_spill] sm:$0xff] %v3593_v33  ;;  %v3603_v40 = vstv %s3534_s7  ;;  %v1456_v58 = vmul.f32 %v3454_v48, %v3544_v46  ;;  %s2481_s7 = sld [smem:[#allocation3 + $0x183]] }
 0x291   : > { %v920_v63 = vadd.f32 %v910_v16, %v894_v54  ;;  %v1102_v62 = vpop.permute.xlu0 %1101  ;;  %v959_v16 = vadd.f32 %v948_v32, %v933_v1  ;;  %v3597_v32 = vmul.f32 %v3472_v21, %v3306_v14  ;;  %v3600_v1 = vstv %s3532_s6  ;;  %s4589_s6 = smov 127  }
 0x292   : > { %v1076_v56 = vpop.permute.xlu1 %1075  ;;  %v1329_v54 = vmul.f32 %v3416_v9, %v3575_v20  ;;  %v3615_v14 = vstv %s3542_s9  ;;  %s2488_s9 = sld [smem:[#allocation6 + $0x2]] }
 0x293   : > { %v1087_v23 = vadd.f32 %v1076_v56, %v3492_v35  ;;  %v934_v49 = vadd.f32 %v930_v24, %v920_v63  ;;  %1427 = vrot.lane.b32.xlu0 %v1417_v36, %s2939_s10  ;;  %v804_v35 = vmul.f32 %v3428_v18, %v3260_v57  ;;  %v3609_v63 = vld [vmem:[#allocation2 + $0x90] sm:$0xff]  ;;  %v3612_v24 = vstv %s3540_s8  ;;  %s3875_s8 = sld [smem:[#allocation3 + $0x106]] }
 0x294   : > { %1491 = vrot.lane.b32.xlu1 %v1482_v38, %s2939_s10  ;;  %4588 = vst [vmem:[#allocation37_spill] sm:$0xff] %v3609_v63  ;;  %v1289_v36 = vmul.f32 %v3402_v61, %v3526_v3  ;;  %v3620_v38 = vstv %s3548_s12  ;;  %v3662_v3 = vstv %s3581_s30  ;;  %s2492_s12 = sld [smem:[#allocation6 + $0x82]]  ;;  %s2493_s30 = sld [smem:[#allocation6 + $0x83]] }
 0x295   : > { %v1113_v52 = vadd.f32 %v1102_v62, %v1087_v23  ;;  %v976_v57 = vpop.permute.xlu0 %975  ;;  %v985_v23 = vadd.f32 %v3474_v45, %v959_v16  ;;  %v1392_v45 = vmul.f32 %v3392_v53, %v3609_v63  ;;  %v1355_v16 = vmul.f32 %v3414_v7, %v3575_v20 }
 0x296   : > { %v950_v18 = vpop.permute.xlu1 %949  ;;  %v3659_v20 = vstv %s3579_s26  ;;  %v3670_v10 = vstv %s3589_s11  ;;  %s2472_s11 = sld [smem:[#allocation3 + $0x103]] }
 0x297   : > { %v960_v62 = vadd.f32 %v950_v18, %v934_v49  ;;  %v1127_v56 = vadd.f32 %v1123_v8, %v1113_v52  ;;  %1465 = vrot.lane.b32.xlu0 %v1456_v58, %s4589_s6  ;;  %v1548_v49 = vmul.f32 %v3512_v4, %v3593_v33  ;;  %v1522_v8 = vmul.f32 %v3482_v29, %v3593_v33  ;;  %v3638_v58 = vld [vmem:[#allocation2 + $0x69] sm:$0xff]  ;;  %s2489_s26 = sld [smem:[#allocation6 + $0x3]] }
 0x298   : > { %1339 = vrot.lane.b32.xlu1 %v1329_v54, %s4589_s6  ;;  %v3630_v52 = vstv %s3550_s13  ;;  %v3641_v54 = vstv %s3556_s14  ;;  %v3644_v33 = vstv %s3562_s16  ;;  %v1264_v46 = vmul.f32 %v3404_v2, %v3638_v58  ;;  %s2500_s13 = sld [smem:[#allocation6 + $0x102]] }
 0x299   : > { %v3632_v18 = vadd.f32 %v976_v57, %v960_v62  ;;  %v1168_v31 = vpop.permute.xlu0 %1167  ;;  %v3650_v57 = vstv %s3570_s23  ;;  %v3653_v62 = vstv %s3558_s15  ;;  %v1573_v12 = vmul.f32 %v3600_v1, %v985_v23  ;;  %s2508_s14 = sld [smem:[#allocation6 + $0x182]] }
 0x29a   : > { %v1142_v0 = vpop.permute.xlu1 %1141  ;;  %v1759_v55 = vmul.f32 %v3612_v24, %v985_v23  ;;  %v1852_v44 = vmul.f32 %v3615_v14, %v985_v23  ;;  %v2038_v43 = vmul.f32 %v3630_v52, %v985_v23  ;;  %v2131_v2 = vmul.f32 %v3641_v54, %v985_v23  ;;  %s2516_s15 = sld [smem:[#allocation6 + $0x202]] }
 0x29b   : > { %v1153_v53 = vadd.f32 %v1142_v0, %v1127_v56  ;;  %1299 = vrot.lane.b32.xlu0 %v1289_v36, %s2939_s10  ;;  %v1666_v56 = vmul.f32 %v3603_v40, %v985_v23  ;;  %v2224_v42 = vmul.f32 %v3653_v62, %v985_v23  ;;  %s2524_s16 = sld [smem:[#allocation6 + $0x282]] }
 0x29c   : > { %1557 = vrot.lane.b32.xlu1 %v1548_v49, %s2939_s10  ;;  %v1945_v49 = vmul.f32 %v3620_v38, %v985_v23  ;;  %s2540_s23 = sld [smem:[#allocation6 + $0x382]] }
 0x29d   : > { %v1179_v0 = vadd.f32 %v1168_v31, %v1153_v53  ;;  %v822_v50 = vpop.permute.xlu0 %821 }
 0x29e   : > { %v1014_v36 = vpop.permute.xlu1 %1013  ;;  %v830_v60 = vadd.f32 %v822_v50, %v804_v35 }
 0x29f   : > { %v1023_v28 = vadd.f32 %v1014_v36, %v997_v47  ;;  %v1579_v31 = vmul.f32 %v3644_v33, %v1179_v0  ;;  %v1672_v53 = vmul.f32 %v3647_v15, %v1179_v0  ;;  %1531 = vrot.lane.b32.xlu0 %v1522_v8, %s4589_s6  ;;  %v1765_v25 = vmul.f32 %v3650_v57, %v1179_v0 }
 0x2a0   : > { %1403 = vrot.lane.b32.xlu1 %v1392_v45, %s4589_s6  ;;  %v1858_v21 = vmul.f32 %v3656_v17, %v1179_v0  ;;  %v1951_v34 = vmul.f32 %v3659_v20, %v1179_v0  ;;  %v2044_v50 = vmul.f32 %v3662_v3, %v1179_v0  ;;  %v2137_v35 = vmul.f32 %v3670_v10, %v1179_v0 }
 0x2a1   : > { %v3689_v27 = vadd.f32 %v1579_v31, %v1573_v12  ;;  %v3691_v4 = vadd.f32 %v1672_v53, %v1666_v56  ;;  %v1078_v47 = vpop.permute.xlu0 %1077  ;;  %v3695_v36 = vadd.f32 %v1765_v25, %v1759_v55  ;;  %v2230_v41 = vmul.f32 %v3673_v37, %v1179_v0  ;;  %v3703_v31 = vld [vmem:[#allocation2 + $0x89] sm:$0xff] }
 0x2a2   : > { %v1040_v23 = vpop.permute.xlu1 %1039  ;;  %v3697_v8 = vadd.f32 %v1858_v21, %v1852_v44  ;;  %v3699_v45 = vadd.f32 %v1951_v34, %v1945_v49  ;;  %v1088_v22 = vadd.f32 %v1078_v47, %v3522_v59  ;;  %4590 = vst [vmem:[#allocation38_spill] sm:$0xff] %v3703_v31  ;;  %v3705_v56 = vadd.f32 %v2044_v50, %v2038_v43  ;;  %v3719_v0 = vld [vmem:[#allocation2 + $0x6a] sm:$0xff] }
 0x2a3   : > { %v1049_v12 = vadd.f32 %v1040_v23, %v1023_v28  ;;  %v3707_v53 = vadd.f32 %v2137_v35, %v2131_v2  ;;  %1365 = vrot.lane.b32.xlu0 %v1355_v16, %s2939_s10  ;;  %v3711_v25 = vadd.f32 %v2230_v41, %v2224_v42  ;;  %v1418_v21 = vmul.f32 %v3390_v51, %v3609_v63  ;;  %v3731_v2 = vld [vmem:[#allocation2 + $0x8a] sm:$0xff]  ;;  %v3739_v35 = vld [vmem:[#allocation2 + $0x92] sm:$0xff] }
 0x2a4   : > { %1275 = vrot.lane.b32.xlu1 %v1264_v46, %s4589_s6  ;;  %v1457_v28 = vmul.f32 %v3454_v48, %v3703_v31  ;;  %4591 = vst [vmem:[#allocation39_spill] sm:$0xff] %v3719_v0  ;;  %v866_v46 = vmul.f32 %v3438_v26, %v3314_v19  ;;  %v1290_v51 = vmul.f32 %v3402_v61, %v3638_v58  ;;  %4592 = vst [vmem:[#allocation40_spill] sm:$0xff] %v3731_v2  ;;  %v3737_v26 = vld [vmem:[#allocation2 + $0x91] sm:$0xff] }
 0x2a5   : > { %v1063_v34 = vadd.f32 %v3597_v32, %v1049_v12  ;;  %v886_v55 = vpop.permute.xlu0 %885  ;;  %v1330_v16 = vmul.f32 %v3416_v9, %v3719_v0  ;;  %v1124_v49 = vmul.f32 %v3554_v30, %v3296_v11  ;;  %v931_v19 = vmul.f32 %v3498_v5, %v3304_v13  ;;  %4593 = vst [vmem:[#allocation41_spill] sm:$0xff] %v3737_v26 }
 0x2a6   : > { %v848_v44 = vpop.permute.xlu1 %847  ;;  %v895_v43 = vadd.f32 %v886_v55, %v3546_v6  ;;  %4594 = vst [vmem:[#allocation42_spill] sm:$0xff] %v3739_v35  ;;  %v1483_v11 = vmul.f32 %v3484_v39, %v3703_v31  ;;  %v1523_v47 = vmul.f32 %v3482_v29, %v3731_v2  ;;  %v1356_v13 = vmul.f32 %v3414_v7, %v3719_v0 }
 0x2a7   : > { %v856_v59 = vadd.f32 %v848_v44, %v830_v60  ;;  %1429 = vrot.lane.b32.xlu0 %v1418_v21, %s2939_s10  ;;  %v1458_v12 = vmul.f32 %v3454_v48, %v3737_v26  ;;  %v1484_v55 = vmul.f32 %v3484_v39, %v3737_v26  ;;  %v1524_v44 = vmul.f32 %v3482_v29, %v3739_v35 }
 0x2a8   : > { %1467 = vrot.lane.b32.xlu1 %v1457_v28, %s4589_s6  ;;  %v1574_v21 = vmul.f32 %v3600_v1, %v3632_v18  ;;  %v1667_v7 = vmul.f32 %v3603_v40, %v3632_v18  ;;  %v1760_v48 = vmul.f32 %v3612_v24, %v3632_v18  ;;  %v1946_v39 = vmul.f32 %v3620_v38, %v3632_v18 }
 0x2a9   : > { %v870_v42 = vadd.f32 %v866_v46, %v856_v59  ;;  %v912_v41 = vpop.permute.xlu0 %911  ;;  %v2039_v29 = vmul.f32 %v3630_v52, %v3632_v18 }
 0x2aa   : > { %v1104_v32 = vpop.permute.xlu1 %1103  ;;  %v921_v6 = vadd.f32 %v912_v41, %v895_v43  ;;  %v1853_v43 = vmul.f32 %v3615_v14, %v3632_v18  ;;  %v2132_v41 = vmul.f32 %v3641_v54, %v3632_v18 }
 0x2ab   : > { %v1114_v60 = vadd.f32 %v1104_v32, %v1088_v22  ;;  %1301 = vrot.lane.b32.xlu0 %v1290_v51, %s2939_s10  ;;  %v2225_v32 = vmul.f32 %v3653_v62, %v3632_v18 }
 0x2ac   : > { %1341 = vrot.lane.b32.xlu1 %v1330_v16, %s4589_s6  ;;  %v935_v50 = vadd.f32 %v931_v19, %v921_v6 }
 0x2ad   : > { %v1128_v61 = vadd.f32 %v1124_v49, %v1114_v60  ;;  %v1144_v9 = vpop.permute.xlu0 %1143 }
 0x2ae   : > { %v1170_v22 = vpop.permute.xlu1 %1169 }
 0x2af   : > { %v1154_v23 = vadd.f32 %v1144_v9, %v1128_v61  ;;  %1493 = vrot.lane.b32.xlu0 %v1483_v11, %s2939_s10 }
 0x2b0   : > { %1533 = vrot.lane.b32.xlu1 %v1523_v47, %s4589_s6 }
 0x2b1   : > { %v1180_v28 = vadd.f32 %v1170_v22, %v1154_v23  ;;  %v952_v59 = vpop.permute.xlu0 %951 }
 0x2b2   : > { %v1080_v46 = vpop.permute.xlu1 %1079  ;;  %v961_v51 = vadd.f32 %v952_v59, %v935_v50 }
 0x2b3   : > { %v1089_v16 = vadd.f32 %v1080_v46, %v1063_v34  ;;  %v1580_v6 = vmul.f32 %v3644_v33, %v1180_v28  ;;  %v1673_v60 = vmul.f32 %v3647_v15, %v1180_v28  ;;  %1367 = vrot.lane.b32.xlu0 %v1356_v13, %s2939_s10  ;;  %v1766_v49 = vmul.f32 %v3650_v57, %v1180_v28 }
 0x2b4   : > { %1469 = vrot.lane.b32.xlu1 %v1458_v12, %s4589_s6  ;;  %v1859_v19 = vmul.f32 %v3656_v17, %v1180_v28  ;;  %v1952_v61 = vmul.f32 %v3659_v20, %v1180_v28  ;;  %v2045_v18 = vmul.f32 %v3662_v3, %v1180_v28  ;;  %v2138_v34 = vmul.f32 %v3670_v10, %v1180_v28 }
 0x2b5   : > { %v3778_v9 = vadd.f32 %v1580_v6, %v1574_v21  ;;  %v3780_v22 = vadd.f32 %v1673_v60, %v1667_v7  ;;  %v978_v50 = vpop.permute.xlu0 %977  ;;  %v3784_v47 = vadd.f32 %v1766_v49, %v1760_v48  ;;  %v2231_v12 = vmul.f32 %v3673_v37, %v1180_v28  ;;  %v4600_v48 = vld [vmem:[#allocation12_spill] sm:$0xff] }
 0x2b6   : > { %v888_v11 = vpop.permute.xlu1 %887  ;;  %v3786_v23 = vadd.f32 %v1859_v19, %v1853_v43  ;;  %v3788_v13 = vadd.f32 %v1952_v61, %v1946_v39  ;;  %v3791_v59 = vadd.f32 %v978_v50, %v961_v51  ;;  %v3793_v46 = vadd.f32 %v2045_v18, %v2039_v29  ;;  %v4601_v43 = vld [vmem:[#allocation26_spill] sm:$0xff]  ;;  %v4602_v28 = vld [vmem:[#allocation32_spill] sm:$0xff] }
 0x2b7   : > { %v896_v21 = vadd.f32 %v888_v11, %v870_v42  ;;  %v3795_v7 = vadd.f32 %v2138_v34, %v2132_v41  ;;  %1495 = vrot.lane.b32.xlu0 %v1484_v55, %s2939_s10  ;;  %v3799_v6 = vadd.f32 %v2231_v12, %v2225_v32  ;;  %v998_v60 = vmul.f32 %v4601_v43, %v4600_v48  ;;  %v4603_v19 = vld [vmem:[#allocation14_spill] sm:$0xff]  ;;  %v4604_v34 = vld [vmem:[#allocation16_spill] sm:$0xff] }
 0x2b8   : > { %4595 = vst [vmem:[#allocation43_spill] sm:$0xff] %v3786_v23  ;;  %4596 = vst [vmem:[#allocation44_spill] sm:$0xff] %v3788_v13  ;;  %1535 = vrot.lane.b32.xlu1 %v1524_v44, %s4589_s6  ;;  %v1549_v51 = vmul.f32 %v4602_v28, %v3731_v2  ;;  %v1550_v42 = vmul.f32 %v4602_v28, %v3739_v35  ;;  %v932_v55 = vmul.f32 %v3498_v5, %v4603_v19  ;;  %v4605_v50 = vld [vmem:[#allocation28_spill] sm:$0xff]  ;;  %s2501_s6 = sld [smem:[#allocation6 + $0x103]] }
 0x2b9   : > { %4597 = vst [vmem:[#allocation45_spill] sm:$0xff] %v3793_v46  ;;  %4598 = vst [vmem:[#allocation46_spill] sm:$0xff] %v3795_v7  ;;  %v1016_v49 = vpop.permute.xlu0 %1015  ;;  %v1060_v11 = vmul.f32 %v4605_v50, %v4604_v34  ;;  %v3815_v28 = vstv %s2469_s0  ;;  %v1668_v50 = vmul.f32 %v3603_v40, %v3791_v59  ;;  %s2509_s0 = sld [smem:[#allocation6 + $0x183]] }
 0x2ba   : > { %4599 = vst [vmem:[#allocation47_spill] sm:$0xff] %v3799_v6  ;;  %v914_v39 = vpop.permute.xlu1 %913  ;;  %v1024_v41 = vadd.f32 %v1016_v49, %v998_v60  ;;  %v4606_v60 = vld [vmem:[#allocation13_spill] sm:$0xff] }
 0x2bb   : > { %v922_v29 = vadd.f32 %v914_v39, %v896_v21  ;;  %1559 = vrot.lane.b32.xlu0 %v1549_v51, %s2939_s10  ;;  %v1125_v5 = vmul.f32 %v3554_v30, %v4606_v60  ;;  %v3817_v51 = vstv %s2472_s11  ;;  %v2040_v60 = vmul.f32 %v3630_v52, %v3791_v59  ;;  %s2517_s11 = sld [smem:[#allocation6 + $0x203]] }
 0x2bc   : > { %1561 = vrot.lane.b32.xlu1 %v1550_v42, %s2939_s10  ;;  %s2478_s10 = sld [smem:[#allocation3 + $0x180]] }
 0x2bd   : > { %v936_v44 = vadd.f32 %v932_v55, %v922_v29  ;;  %v1042_v61 = vpop.permute.xlu0 %1041  ;;  %v4607_v55 = vld [vmem:[#allocation15_spill] sm:$0xff] }
 0x2be   : > { %v1146_v32 = vpop.permute.xlu1 %1145  ;;  %v1050_v18 = vadd.f32 %v1042_v61, %v1024_v41  ;;  %v1189_v61 = vmul.f32 %v3815_v28, %v4607_v55 }
 0x2c0   : > { %v1064_v12 = vadd.f32 %v1060_v11, %v1050_v18  ;;  %v4608_v18 = vld [vmem:[#allocation20_spill] sm:$0xff]  ;;  %v1761_v11 = vmul.f32 %v3612_v24, %v3791_v59 }
 0x2c1   : > { %v1106_v21 = vpop.permute.xlu0 %1105 }
 0x2c2   : > { %v954_v48 = vpop.permute.xlu1 %953  ;;  %v1115_v39 = vadd.f32 %v1106_v21, %v1089_v16  ;;  %v1575_v16 = vmul.f32 %v3600_v1, %v3791_v59 }
 0x2c3   : > { %v962_v43 = vadd.f32 %v954_v48, %v936_v44  ;;  %v1251_v44 = vmul.f32 %v3817_v51, %v4608_v18 }
 0x2c4   : > { %v1129_v49 = vadd.f32 %v1125_v5, %v1115_v39  ;;  %v2133_v5 = vmul.f32 %v3641_v54, %v3791_v59 }
 0x2c5   : > { %v1172_v29 = vpop.permute.xlu0 %1171 }
 0x2c6   : > { %v980_v42 = vpop.permute.xlu1 %979  ;;  %v1155_v41 = vadd.f32 %v1146_v32, %v1129_v49  ;;  %v1854_v32 = vmul.f32 %v3615_v14, %v3791_v59 }
 0x2c7   : > { %v3819_v19 = vadd.f32 %v980_v42, %v962_v43  ;;  %v1947_v43 = vmul.f32 %v3620_v38, %v3791_v59 }
 0x2c8   : > { %v1181_v34 = vadd.f32 %v1172_v29, %v1155_v41 }
 0x2c9   : > { %v1204_v21 = vpop.permute.xlu0 %1203 }
 0x2ca   : > { %v1230_v48 = vpop.permute.xlu1 %1229  ;;  %v1215_v39 = vadd.f32 %v1204_v21, %v1189_v61  ;;  %v1581_v49 = vmul.f32 %v3644_v33, %v1181_v34  ;;  %v1674_v42 = vmul.f32 %v3647_v15, %v1181_v34  ;;  %v1767_v29 = vmul.f32 %v3650_v57, %v1181_v34 }
 0x2cb   : > { %v1860_v41 = vmul.f32 %v3656_v17, %v1181_v34  ;;  %v1953_v55 = vmul.f32 %v3659_v20, %v1181_v34  ;;  %v2046_v18 = vmul.f32 %v3662_v3, %v1181_v34  ;;  %v2139_v35 = vmul.f32 %v3670_v10, %v1181_v34 }
 0x2cc   : > { %v1241_v2 = vadd.f32 %v1230_v48, %v1215_v39  ;;  %v3846_v0 = vadd.f32 %v1581_v49, %v1575_v16  ;;  %v3848_v61 = vadd.f32 %v1674_v42, %v1668_v50  ;;  %v3850_v21 = vadd.f32 %v1767_v29, %v1761_v11  ;;  %v4609_v11 = vld [vmem:[#allocation17_spill] sm:$0xff] }
 0x2cd   : > { %v1108_v26 = vpop.permute.xlu0 %1107  ;;  %v3852_v6 = vadd.f32 %v1860_v41, %v1854_v32  ;;  %v3854_v7 = vadd.f32 %v1953_v55, %v1947_v43  ;;  %v3856_v31 = vadd.f32 %v2046_v18, %v2040_v60  ;;  %v3858_v46 = vadd.f32 %v2139_v35, %v2133_v5  ;;  %v4613_v5 = vld [vmem:[#allocation24_spill] sm:$0xff] }
 0x2ce   : > { %v1082_v63 = vpop.permute.xlu1 %1081  ;;  %v1255_v23 = vadd.f32 %v1251_v44, %v1241_v2  ;;  %v2226_v16 = vmul.f32 %v3653_v62, %v3791_v59  ;;  %v2232_v50 = vmul.f32 %v3673_v37, %v1181_v34  ;;  %v1126_v39 = vmul.f32 %v3554_v30, %v4609_v11  ;;  %v4610_v2 = vld [vmem:[#allocation18_spill] sm:$0xff]  ;;  %v4611_v34 = vld [vmem:[#allocation19_spill] sm:$0xff]  ;;  %v4612_v30 = vld [vmem:[#allocation25_spill] sm:$0xff] }
 0x2cf   : > { %v1090_v13 = vadd.f32 %v1082_v63, %v1064_v12  ;;  %v3867_v60 = vstv %s2478_s10  ;;  %v3869_v35 = vstv %s2481_s7  ;;  %v1190_v12 = vmul.f32 %v3815_v28, %v4610_v2  ;;  %s2525_s10 = sld [smem:[#allocation6 + $0x283]] }
 0x2d0   : > { %v3865_v49 = vadd.f32 %v2232_v50, %v2226_v16  ;;  %v1252_v29 = vmul.f32 %v3817_v51, %v4613_v5  ;;  %v1576_v41 = vmul.f32 %v3600_v1, %v3819_v19  ;;  %v1669_v16 = vmul.f32 %v3603_v40, %v3819_v19  ;;  %s3995_s7 = sld [smem:[#allocation6 + $0x303]] }
 0x2d1   : > { %v1116_v48 = vadd.f32 %v1108_v26, %v1090_v13  ;;  %v1174_v32 = vpop.permute.xlu0 %1173  ;;  %v1383_v26 = vmul.f32 %v3867_v60, %v4611_v34  ;;  %v1445_v13 = vmul.f32 %v3869_v35, %v4612_v30  ;;  %v1762_v50 = vmul.f32 %v3612_v24, %v3819_v19 }
 0x2d2   : > { %v1148_v43 = vpop.permute.xlu1 %1147  ;;  %v1948_v11 = vmul.f32 %v3620_v38, %v3819_v19  ;;  %v2134_v1 = vmul.f32 %v3641_v54, %v3819_v19  ;;  %v3922_v5 = vstv %s3875_s8  ;;  %s4007_s8 = sld [smem:[#allocation6 + $0x383]] }
 0x2d3   : > { %v1130_v42 = vadd.f32 %v1126_v39, %v1116_v48  ;;  %v1855_v48 = vmul.f32 %v3615_v14, %v3819_v19  ;;  %v2041_v39 = vmul.f32 %v3630_v52, %v3819_v19 }
 0x2d5   : > { %v1156_v63 = vadd.f32 %v1148_v43, %v1130_v42  ;;  %v1232_v59 = vpop.permute.xlu0 %1231 }
 0x2d6   : > { %v1206_v44 = vpop.permute.xlu1 %1205 }
 0x2d7   : > { %v1182_v55 = vadd.f32 %v1174_v32, %v1156_v63  ;;  %v1216_v18 = vadd.f32 %v1206_v44, %v1190_v12 }
 0x2d9   : > { %v1242_v32 = vadd.f32 %v1232_v59, %v1216_v18  ;;  %v1582_v43 = vmul.f32 %v3644_v33, %v1182_v55  ;;  %v1675_v40 = vmul.f32 %v3647_v15, %v1182_v55  ;;  %v1768_v42 = vmul.f32 %v3650_v57, %v1182_v55  ;;  %v1424_v24 = vpop.permute.xlu0 %1423 }
 0x2da   : > { %v1398_v63 = vpop.permute.xlu1 %1397  ;;  %v1861_v14 = vmul.f32 %v3656_v17, %v1182_v55  ;;  %v1954_v2 = vmul.f32 %v3659_v20, %v1182_v55  ;;  %v2047_v38 = vmul.f32 %v3662_v3, %v1182_v55  ;;  %v2140_v52 = vmul.f32 %v3670_v10, %v1182_v55 }
 0x2db   : > { %v1409_v12 = vadd.f32 %v1398_v63, %v1383_v26  ;;  %v3902_v44 = vadd.f32 %v1252_v29, %v1242_v32  ;;  %v3904_v54 = vadd.f32 %v1582_v43, %v1576_v41  ;;  %v3906_v33 = vadd.f32 %v1675_v40, %v1669_v16 }
 0x2dc   : > { %v3908_v15 = vadd.f32 %v1768_v42, %v1762_v50  ;;  %v3910_v57 = vadd.f32 %v1861_v14, %v1855_v48  ;;  %v3912_v17 = vadd.f32 %v1954_v2, %v1948_v11  ;;  %v3914_v20 = vadd.f32 %v2047_v38, %v2041_v39  ;;  %v4621_v50 = vld [vmem:[#allocation21_spill] sm:$0xff]  ;;  %v4622_v14 = vld [vmem:[#allocation22_spill] sm:$0xff]  ;;  %v4623_v38 = vld [vmem:[#allocation23_spill] sm:$0xff] }
 0x2dd   : > { %4614 = vst [vmem:[#allocation12_spill] sm:$0xff] %v3906_v33  ;;  %v1435_v3 = vadd.f32 %v1424_v24, %v1409_v12  ;;  %v3916_v10 = vadd.f32 %v2140_v52, %v2134_v1  ;;  %v2227_v59 = vmul.f32 %v3653_v62, %v3819_v19  ;;  %v2233_v34 = vmul.f32 %v3673_v37, %v1182_v55  ;;  %v1296_v26 = vpop.permute.xlu0 %1295 }
 0x2de   : > { %4615 = vst [vmem:[#allocation26_spill] sm:$0xff] %v3908_v15  ;;  %4616 = vst [vmem:[#allocation32_spill] sm:$0xff] %v3910_v57  ;;  %v1270_v30 = vpop.permute.xlu1 %1269  ;;  %v1317_v48 = vmul.f32 %v3922_v5, %v4621_v50  ;;  %v3928_v55 = vstv %s2488_s9  ;;  %v3930_v32 = vstv %s2492_s12  ;;  %v3936_v43 = vstv %s2516_s15 }
 0x2df   : > { %4617 = vst [vmem:[#allocation14_spill] sm:$0xff] %v3912_v17  ;;  %4618 = vst [vmem:[#allocation16_spill] sm:$0xff] %v3914_v20  ;;  %v1281_v29 = vadd.f32 %v1270_v30, %v1255_v23  ;;  %v1449_v41 = vadd.f32 %v1445_v13, %v1435_v3  ;;  %v3924_v18 = vadd.f32 %v2233_v34, %v2227_v59  ;;  %v3932_v23 = vstv %s2500_s13  ;;  %v4630_v17 = vld [vmem:[#allocation43_spill] sm:$0xff] }
 0x2e0   : > { %4619 = vst [vmem:[#allocation28_spill] sm:$0xff] %v3916_v10  ;;  %v3934_v13 = vstv %s2508_s14  ;;  %v3938_v42 = vstv %s2524_s16  ;;  %v3940_v24 = vstv %s2532_s17  ;;  %v3942_v63 = vstv %s2540_s23  ;;  %s242_s16 = sand.u32 1, %s2924_s19  }
 0x2e1   : > { %4620 = vst [vmem:[#allocation13_spill] sm:$0xff] %v3924_v18  ;;  %v1307_v16 = vadd.f32 %v1296_v26, %v1281_v29  ;;  %v1362_v11 = vpop.permute.xlu0 %1361  ;;  %v1191_v2 = vmul.f32 %v3815_v28, %v4622_v14  ;;  %v1384_v52 = vmul.f32 %v3867_v60, %v4623_v38  ;;  %s2421_s17 = sshll.u32 %s242_s16, 8 }
 0x2e2   : > { %v1336_v62 = vpop.permute.xlu1 %1335 }
 0x2e3   : > { %v1321_v19 = vadd.f32 %v1317_v48, %v1307_v16 }
 0x2e5   : > { %v1347_v37 = vadd.f32 %v1336_v62, %v1321_v19  ;;  %v1208_v39 = vpop.permute.xlu0 %1207 }
 0x2e6   : > { %v1426_v1 = vpop.permute.xlu1 %1425 }
 0x2e7   : > { %v1373_v40 = vadd.f32 %v1362_v11, %v1347_v37 }
 0x2e9   : > { %v1589_v12 = vmul.f32 %v3928_v55, %v1373_v40  ;;  %v1682_v3 = vmul.f32 %v3930_v32, %v1373_v40  ;;  %v1775_v59 = vmul.f32 %v3932_v23, %v1373_v40  ;;  %v1868_v34 = vmul.f32 %v3934_v13, %v1373_v40  ;;  %v1400_v30 = vpop.permute.xlu0 %1399 }
 0x2ea   : > { %v1298_v26 = vpop.permute.xlu1 %1297  ;;  %v1961_v29 = vmul.f32 %v3936_v43, %v1373_v40  ;;  %v2054_v16 = vmul.f32 %v3938_v42, %v1373_v40  ;;  %v2147_v50 = vmul.f32 %v3940_v24, %v1373_v40  ;;  %v2240_v48 = vmul.f32 %v3942_v63, %v1373_v40 }
 0x2eb   : > { %v1410_v11 = vadd.f32 %v1400_v30, %v1384_v52  ;;  %v3957_v62 = vadd.f32 %v1589_v12, %v3689_v27  ;;  %v3960_v19 = vadd.f32 %v1682_v3, %v3691_v4  ;;  %v3963_v37 = vadd.f32 %v1775_v59, %v3695_v36  ;;  %v4624_v4 = vld [vmem:[#allocation34_spill] sm:$0xff] }
 0x2ec   : > { %v3966_v14 = vadd.f32 %v1868_v34, %v3697_v8  ;;  %v3969_v38 = vadd.f32 %v1961_v29, %v3699_v45  ;;  %v3972_v18 = vadd.f32 %v2054_v16, %v3705_v56  ;;  %v3975_v40 = vadd.f32 %v2147_v50, %v3707_v53  ;;  %v4625_v34 = vld [vmem:[#allocation33_spill] sm:$0xff]  ;;  %v4626_v16 = vld [vmem:[#allocation27_spill] sm:$0xff] }
 0x2ed   : > { %v1217_v27 = vadd.f32 %v1208_v39, %v1191_v2  ;;  %v1436_v52 = vadd.f32 %v1426_v1, %v1410_v11  ;;  %v1446_v12 = vmul.f32 %v3869_v35, %v4624_v4  ;;  %v3980_v36 = vadd.f32 %v2240_v48, %v3711_v25  ;;  %v1234_v8 = vpop.permute.xlu0 %1233 }
 0x2ee   : > { %v1464_v3 = vpop.permute.xlu1 %1463  ;;  %v1253_v45 = vmul.f32 %v3817_v51, %v4625_v34  ;;  %v3989_v1 = vstv %s2484_s25  ;;  %v1318_v50 = vmul.f32 %v3922_v5, %v4626_v16 }
 0x2ef   : > { %v1243_v59 = vadd.f32 %v1234_v8, %v1217_v27  ;;  %v3984_v30 = vadd.f32 %v1446_v12, %v1436_v52  ;;  %v1475_v25 = vadd.f32 %v1464_v3, %v1449_v41  ;;  %v4627_v27 = vld [vmem:[#allocation29_spill] sm:$0xff]  ;;  %v4628_v41 = vld [vmem:[#allocation30_spill] sm:$0xff]  ;;  %v4629_v3 = vld [vmem:[#allocation31_spill] sm:$0xff] }
 0x2f0   : > { %v1511_v52 = vmul.f32 %v3989_v1, %v4627_v27  ;;  %v4003_v27 = vstv %s2489_s26 }
 0x2f1   : > { %v3986_v56 = vadd.f32 %v1253_v45, %v1243_v59  ;;  %v1272_v29 = vpop.permute.xlu0 %1271  ;;  %v1385_v45 = vmul.f32 %v3867_v60, %v4629_v3 }
 0x2f2   : > { %v1364_v53 = vpop.permute.xlu1 %1363  ;;  %v1282_v39 = vadd.f32 %v1272_v29, %v3902_v44  ;;  %v1254_v29 = vmul.f32 %v3817_v51, %v3638_v58 }
 0x2f4   : > { %v1308_v2 = vadd.f32 %v1298_v26, %v1282_v39  ;;  %v1192_v26 = vmul.f32 %v3815_v28, %v4628_v41  ;;  %v4013_v28 = vstv %s2517_s11 }
 0x2f5   : > { %v1490_v11 = vpop.permute.xlu0 %1489 }
 0x2f6   : > { %v1530_v48 = vpop.permute.xlu1 %1529  ;;  %v1501_v4 = vadd.f32 %v1490_v11, %v1475_v25  ;;  %v1322_v44 = vadd.f32 %v1318_v50, %v1308_v2  ;;  %v4005_v25 = vstv %s2493_s30  ;;  %v4009_v11 = vstv %s2501_s6  ;;  %s4328_s30 = scalar_lea.vmem [#allocation8], %s2421_s17 }
 0x2f8   : > { %v1515_v12 = vadd.f32 %v1511_v52, %v1501_v4  ;;  %v4011_v52 = vstv %s2509_s0  ;;  %v4015_v4 = vstv %s2525_s10 }
 0x2f9   : > { %v1338_v59 = vpop.permute.xlu0 %1337 }
 0x2fa   : > { %v1210_v8 = vpop.permute.xlu1 %1209  ;;  %v1348_v34 = vadd.f32 %v1338_v59, %v1322_v44  ;;  %v1541_v16 = vadd.f32 %v1530_v48, %v1515_v12 }
 0x2fb   : > { %v1218_v44 = vadd.f32 %v1210_v8, %v1192_v26 }
 0x2fc   : > { %v1374_v39 = vadd.f32 %v1364_v53, %v1348_v34 }
 0x2fd   : > { %v1556_v2 = vpop.permute.xlu0 %1555 }
 0x2fe   : > { %v1402_v50 = vpop.permute.xlu1 %1401  ;;  %v1567_v58 = vadd.f32 %v1556_v2, %v1541_v16  ;;  %v1590_v51 = vmul.f32 %v3928_v55, %v1374_v39  ;;  %v1683_v53 = vmul.f32 %v3930_v32, %v1374_v39  ;;  %v1776_v48 = vmul.f32 %v3932_v23, %v1374_v39 }
 0x2ff   : > { %v1869_v12 = vmul.f32 %v3934_v13, %v1374_v39  ;;  %v1962_v59 = vmul.f32 %v3936_v43, %v1374_v39  ;;  %v2055_v34 = vmul.f32 %v3938_v42, %v1374_v39 }
 0x300   : > { %v4024_v41 = vadd.f32 %v1590_v51, %v3778_v9  ;;  %v1599_v3 = vmul.f32 %v4003_v27, %v1567_v58  ;;  %v4028_v8 = vadd.f32 %v1683_v53, %v3780_v22  ;;  %v1692_v26 = vmul.f32 %v4005_v25, %v1567_v58 }
 0x301   : > { %v1236_v16 = vpop.permute.xlu0 %1235  ;;  %v4032_v10 = vadd.f32 %v1776_v48, %v3784_v47  ;;  %v1785_v20 = vmul.f32 %v4009_v11, %v1567_v58  ;;  %v4036_v57 = vadd.f32 %v1869_v12, %v4630_v17  ;;  %v1878_v9 = vmul.f32 %v4011_v52, %v1567_v58  ;;  %v4634_v48 = vld [vmem:[#allocation44_spill] sm:$0xff] }
 0x302   : > { %v1274_v2 = vpop.permute.xlu1 %1273  ;;  %v1244_v51 = vadd.f32 %v1236_v16, %v1218_v44  ;;  %v4040_v15 = vadd.f32 %v1599_v3, %v3957_v62  ;;  %v4043_v22 = vadd.f32 %v1692_v26, %v3960_v19  ;;  %v4046_v53 = vstv %s3995_s7  ;;  %v4635_v62 = vld [vmem:[#allocation45_spill] sm:$0xff] }
 0x303   : > { %v4049_v33 = vadd.f32 %v1785_v20, %v3963_v37  ;;  %v4052_v47 = vadd.f32 %v1878_v9, %v3966_v14  ;;  %v4055_v17 = vadd.f32 %v1962_v59, %v4634_v48  ;;  %v1971_v12 = vmul.f32 %v4013_v28, %v1567_v58  ;;  %v4639_v48 = vld [vmem:[#allocation46_spill] sm:$0xff] }
 0x304   : > { %4631 = vst [vmem:[#allocation15_spill] sm:$0xff] %v4040_v15  ;;  %4632 = vst [vmem:[#allocation20_spill] sm:$0xff] %v4043_v22  ;;  %v1411_v44 = vadd.f32 %v1402_v50, %v1385_v45  ;;  %v1258_v16 = vadd.f32 %v1254_v29, %v1244_v51  ;;  %v4059_v3 = vadd.f32 %v2055_v34, %v4635_v62  ;;  %v4062_v19 = vstv %s4007_s8  ;;  %v4636_v15 = vld [vmem:[#allocation38_spill] sm:$0xff] }
 0x305   : > { %4633 = vst [vmem:[#allocation17_spill] sm:$0xff] %v4052_v47  ;;  %v1428_v26 = vpop.permute.xlu0 %1427  ;;  %v1447_v20 = vmul.f32 %v3869_v35, %v4636_v15  ;;  %v4067_v37 = vadd.f32 %v1971_v12, %v3969_v38  ;;  %v2064_v14 = vmul.f32 %v4015_v4, %v1567_v58  ;;  %v2148_v9 = vmul.f32 %v3940_v24, %v1374_v39  ;;  %v4641_v12 = vld [vmem:[#allocation47_spill] sm:$0xff] }
 0x306   : > { %v1492_v22 = vpop.permute.xlu1 %1491  ;;  %v1437_v59 = vadd.f32 %v1428_v26, %v1411_v44  ;;  %v2157_v45 = vmul.f32 %v4046_v53, %v1567_v58  ;;  %v2241_v29 = vmul.f32 %v3942_v63, %v1374_v39  ;;  %v2250_v34 = vmul.f32 %v4062_v19, %v1567_v58 }
 0x307   : > { %4637 = vst [vmem:[#allocation18_spill] sm:$0xff] %v4067_v37  ;;  %v4074_v50 = vadd.f32 %v2064_v14, %v3972_v18  ;;  %v4078_v15 = vadd.f32 %v2148_v9, %v4639_v48  ;;  %v1283_v39 = vadd.f32 %v1274_v2, %v3986_v56 }
 0x308   : > { %v1451_v51 = vadd.f32 %v1447_v20, %v1437_v59  ;;  %v4081_v38 = vadd.f32 %v2157_v45, %v3975_v40  ;;  %v4084_v44 = vadd.f32 %v2241_v29, %v4641_v12  ;;  %v4087_v37 = vadd.f32 %v2250_v34, %v3980_v36  ;;  %v4643_v20 = vld [vmem:[#allocation36_spill] sm:$0xff]  ;;  %v4644_v40 = vld [vmem:[#allocation35_spill] sm:$0xff] }
 0x309   : > { %4638 = vst [vmem:[#allocation19_spill] sm:$0xff] %v4074_v50  ;;  %v1466_v62 = vpop.permute.xlu0 %1465  ;;  %v1512_v14 = vmul.f32 %v3989_v1, %v4643_v20  ;;  %v1319_v45 = vmul.f32 %v3922_v5, %v4644_v40 }
 0x30a   : > { %4640 = vst [vmem:[#allocation25_spill] sm:$0xff] %v4081_v38  ;;  %v1340_v26 = vpop.permute.xlu1 %1339  ;;  %4642 = vst [vmem:[#allocation24_spill] sm:$0xff] %v4087_v37  ;;  %v1476_v18 = vadd.f32 %v1466_v62, %v3984_v30  ;;  %v4645_v30 = vld [vmem:[#allocation37_spill] sm:$0xff] }
 0x30b   : > { %v1386_v56 = vmul.f32 %v3867_v60, %v4645_v30 }
 0x30c   : > { %v1502_v58 = vadd.f32 %v1492_v22, %v1476_v18 }
 0x30d   : > { %v1300_v59 = vpop.permute.xlu0 %1299 }
 0x30e   : > { %v1558_v9 = vpop.permute.xlu1 %1557  ;;  %v1309_v29 = vadd.f32 %v1300_v59, %v1283_v39  ;;  %v1516_v48 = vadd.f32 %v1512_v14, %v1502_v58 }
 0x310   : > { %v1323_v12 = vadd.f32 %v1319_v45, %v1309_v29 }
 0x311   : > { %v1532_v38 = vpop.permute.xlu0 %1531 }
 0x312   : > { %v1404_v50 = vpop.permute.xlu1 %1403  ;;  %v1542_v36 = vadd.f32 %v1532_v38, %v1516_v48  ;;  %v1349_v37 = vadd.f32 %v1340_v26, %v1323_v12 }
 0x313   : > { %v1412_v47 = vadd.f32 %v1404_v50, %v1386_v56 }
 0x314   : > { %v1568_v34 = vadd.f32 %v1558_v9, %v1542_v36 }
 0x315   : > { %v1366_v2 = vpop.permute.xlu0 %1365 }
 0x316   : > { %v1276_v22 = vpop.permute.xlu1 %1275  ;;  %v1375_v62 = vadd.f32 %v1366_v2, %v1349_v37  ;;  %v1600_v18 = vmul.f32 %v4003_v27, %v1568_v34  ;;  %v1693_v20 = vmul.f32 %v4005_v25, %v1568_v34  ;;  %v1786_v39 = vmul.f32 %v4009_v11, %v1568_v34 }
 0x317   : > { %v1879_v58 = vmul.f32 %v4011_v52, %v1568_v34  ;;  %v1972_v14 = vmul.f32 %v4013_v28, %v1568_v34  ;;  %v1284_v56 = vadd.f32 %v1276_v22, %v1258_v16  ;;  %v2158_v22 = vmul.f32 %v4046_v53, %v1568_v34 }
 0x318   : > { %v1591_v38 = vmul.f32 %v3928_v55, %v1375_v62  ;;  %v4104_v26 = vadd.f32 %v1600_v18, %v4024_v41  ;;  %v1684_v60 = vmul.f32 %v3930_v32, %v1375_v62  ;;  %v4108_v37 = vadd.f32 %v1693_v20, %v4028_v8  ;;  %v4646_v41 = vld [vmem:[#allocation41_spill] sm:$0xff] }
 0x319   : > { %v1430_v59 = vpop.permute.xlu0 %1429  ;;  %v1777_v50 = vmul.f32 %v3932_v23, %v1375_v62  ;;  %v4112_v40 = vadd.f32 %v1786_v39, %v4032_v10  ;;  %v1870_v45 = vmul.f32 %v3934_v13, %v1375_v62  ;;  %v4116_v29 = vadd.f32 %v1879_v58, %v4036_v57  ;;  %v4647_v39 = vld [vmem:[#allocation39_spill] sm:$0xff] }
 0x31a   : > { %v1468_v9 = vpop.permute.xlu1 %1467  ;;  %v1438_v48 = vadd.f32 %v1430_v59, %v1412_v47  ;;  %v1448_v12 = vmul.f32 %v3869_v35, %v4646_v41  ;;  %v4121_v36 = vadd.f32 %v1591_v38, %v3846_v0  ;;  %v2065_v8 = vmul.f32 %v4015_v4, %v1568_v34 }
 0x31b   : > { %v4125_v30 = vadd.f32 %v1684_v60, %v3848_v61  ;;  %v4128_v10 = vadd.f32 %v1777_v50, %v3850_v21  ;;  %v4131_v57 = vadd.f32 %v1870_v45, %v3852_v6  ;;  %v1963_v35 = vmul.f32 %v3936_v43, %v1375_v62  ;;  %v4648_v45 = vld [vmem:[#allocation40_spill] sm:$0xff] }
 0x31c   : > { %v1452_v2 = vadd.f32 %v1448_v12, %v1438_v48  ;;  %v4135_v0 = vadd.f32 %v1972_v14, %v4055_v17  ;;  %v1320_v61 = vmul.f32 %v3922_v5, %v4647_v39  ;;  %v2056_v58 = vmul.f32 %v3938_v42, %v1375_v62 }
 0x31d   : > { %v1302_v47 = vpop.permute.xlu0 %1301  ;;  %v4141_v21 = vadd.f32 %v2065_v8, %v4059_v3  ;;  %v4144_v16 = vadd.f32 %v1963_v35, %v3854_v7  ;;  %v2149_v6 = vmul.f32 %v3940_v24, %v1375_v62  ;;  %v1477_v38 = vadd.f32 %v1468_v9, %v1451_v51 }
 0x31e   : > { %v1342_v18 = vpop.permute.xlu1 %1341  ;;  %v1310_v20 = vadd.f32 %v1302_v47, %v1284_v56  ;;  %v4149_v17 = vadd.f32 %v2056_v58, %v3856_v31  ;;  %v4155_v3 = vadd.f32 %v2158_v22, %v4078_v15  ;;  %v2242_v7 = vmul.f32 %v3942_v63, %v1375_v62  ;;  %v4649_v47 = vld [vmem:[#allocation42_spill] sm:$0xff] }
 0x31f   : > { %v4152_v5 = vadd.f32 %v2149_v6, %v3858_v46  ;;  %v1513_v48 = vmul.f32 %v3989_v1, %v4648_v45  ;;  %v2251_v51 = vmul.f32 %v4062_v19, %v1568_v34  ;;  %v1514_v62 = vmul.f32 %v3989_v1, %v4649_v47 }
 0x320   : > { %v1324_v60 = vadd.f32 %v1320_v61, %v1310_v20  ;;  %v4162_v9 = vadd.f32 %v2242_v7, %v3865_v49  ;;  %v4654_v7 = vld [vmem:[#allocation16_spill] sm:$0xff] }
 0x321   : > { %v1494_v14 = vpop.permute.xlu0 %1493  ;;  %v4165_v12 = vadd.f32 %v2251_v51, %v4084_v44 }
 0x322   : > { %v1534_v59 = vpop.permute.xlu1 %1533  ;;  %v1503_v50 = vadd.f32 %v1494_v14, %v1477_v38  ;;  %v1350_v31 = vadd.f32 %v1342_v18, %v1324_v60 }
 0x324   : > { %v1517_v41 = vadd.f32 %v1513_v48, %v1503_v50 }
 0x325   : > { %v1368_v46 = vpop.permute.xlu0 %1367 }
 0x326   : > { %v1470_v8 = vpop.permute.xlu1 %1469  ;;  %v1376_v15 = vadd.f32 %v1368_v46, %v1350_v31  ;;  %v1609_v46 = vsel %vm1607_vm4, %v4104_v26, 0.0 }
 0x327   : > { %v1478_v56 = vadd.f32 %v1470_v8, %v1452_v2  ;;  %v1701_v8 = vsel %vm1607_vm4, %v4108_v37, 0.0 }
 0x328   : > { %v1592_v35 = vmul.f32 %v3928_v55, %v1376_v15  ;;  %v1685_v20 = vmul.f32 %v3930_v32, %v1376_v15  ;;  %v1778_v34 = vmul.f32 %v3932_v23, %v1376_v15  ;;  %v1871_v49 = vmul.f32 %v3934_v13, %v1376_v15  ;;  %v4650_v55 = vld [vmem:[#allocation12_spill] sm:$0xff]  ;;  %v4651_v32 = vld [vmem:[#allocation26_spill] sm:$0xff] }
 0x329   : > { %v1496_v18 = vpop.permute.xlu0 %1495  ;;  %v1964_v44 = vmul.f32 %v3936_v43, %v1376_v15  ;;  %v2057_v61 = vmul.f32 %v3938_v42, %v1376_v15  ;;  %v2150_v58 = vmul.f32 %v3940_v24, %v1376_v15  ;;  %v2243_v2 = vmul.f32 %v3942_v63, %v1376_v15  ;;  %v4652_v23 = vld [vmem:[#allocation32_spill] sm:$0xff]  ;;  %v4653_v13 = vld [vmem:[#allocation14_spill] sm:$0xff]  ;;  %v4656_v24 = vld [vmem:[#allocation13_spill] sm:$0xff] }
 0x32a   : > { %v1536_v39 = vpop.permute.xlu1 %1535  ;;  %v1504_v6 = vadd.f32 %v1496_v18, %v1478_v56  ;;  %v1596_v1 = vadd.f32 %v1592_v35, %v3904_v54  ;;  %v1689_v22 = vadd.f32 %v1685_v20, %v4650_v55  ;;  %v1782_v38 = vadd.f32 %v1778_v34, %v4651_v32  ;;  %v4655_v43 = vld [vmem:[#allocation28_spill] sm:$0xff]  ;;  %v4657_v56 = vld [vmem:[#allocation15_spill] sm:$0xff] }
 0x32b   : > { %v1875_v60 = vadd.f32 %v1871_v49, %v4652_v23  ;;  %v1968_v14 = vadd.f32 %v1964_v44, %v4653_v13  ;;  %v2061_v50 = vadd.f32 %v2057_v61, %v4654_v7  ;;  %v2154_v45 = vadd.f32 %v2150_v58, %v4655_v43  ;;  %v4658_v35 = vld [vmem:[#allocation20_spill] sm:$0xff] }
 0x32c   : > { %v1543_v42 = vadd.f32 %v1534_v59, %v1517_v41  ;;  %v1518_v48 = vadd.f32 %v1514_v62, %v1504_v6  ;;  %v2247_v63 = vadd.f32 %v2243_v2, %v4656_v24  ;;  %v1608_v47 = vsel %vm1607_vm4, %v4657_v56, 0.0 }
 0x32d   : > { %v1560_v51 = vpop.permute.xlu0 %1559  ;;  %v1700_v59 = vsel %vm1607_vm4, %v4658_v35, 0.0  ;;  %v1610_v49 = vadd.f32 %v1609_v46, %v1608_v47 }
 0x32e   : > { %v1544_v31 = vadd.f32 %v1536_v39, %v1518_v48  ;;  %v1569_v54 = vadd.f32 %v1560_v51, %v1543_v42  ;;  %v1562_v15 = vpop.permute.xlu1 %1561  ;;  %v1702_v18 = vadd.f32 %v1701_v8, %v1700_v59 }
 0x330   : > { %v1570_v41 = vadd.f32 %v1562_v15, %v1544_v31  ;;  %v1601_v62 = vmul.f32 %v4003_v27, %v1569_v54  ;;  %v1694_v20 = vmul.f32 %v4005_v25, %v1569_v54  ;;  %v1787_v34 = vmul.f32 %v4009_v11, %v1569_v54 }
 0x331   : > { %v1880_v39 = vmul.f32 %v4011_v52, %v1569_v54  ;;  %v2252_v8 = vmul.f32 %v4062_v19, %v1569_v54 }
 0x332   : > { %v1602_v44 = vmul.f32 %v4003_v27, %v1570_v41  ;;  %v1605_v61 = vadd.f32 %v1601_v62, %v4121_v36  ;;  %v1695_v58 = vmul.f32 %v4005_v25, %v1570_v41  ;;  %v4201_v2 = vadd.f32 %v1694_v20, %v4125_v30 }
 0x333   : > { %v1788_v6 = vmul.f32 %v4009_v11, %v1570_v41  ;;  %v4205_v55 = vadd.f32 %v1787_v34, %v4128_v10  ;;  %v1881_v32 = vmul.f32 %v4011_v52, %v1570_v41  ;;  %v4209_v23 = vadd.f32 %v1880_v39, %v4131_v57 }
 0x334   : > { %v1606_v13 = vadd.f32 %v1602_v44, %v1596_v1  ;;  %v1611_v27 = vsel %vm1607_vm4, %v1605_v61, 0.0  ;;  %v4212_v7 = vadd.f32 %v1695_v58, %v1689_v22  ;;  %v1703_v25 = vsel %vm1607_vm4, %v4201_v2, 0.0 }
 0x335   : > { %v1612_v36 = vadd.f32 %v1611_v27, %v1610_v49  ;;  %v4216_v30 = vadd.f32 %v1788_v6, %v1782_v38  ;;  %v1973_v11 = vmul.f32 %v4013_v28, %v1569_v54  ;;  %v2066_v10 = vmul.f32 %v4015_v4, %v1569_v54 }
 0x336   : > { %v1613_v52 = vsel %vm1607_vm4, %v1606_v13, 0.0  ;;  %v4221_v43 = vadd.f32 %v1881_v32, %v1875_v60  ;;  %v2159_v57 = vmul.f32 %v4046_v53, %v1569_v54  ;;  %v1704_v42 = vadd.f32 %v1703_v25, %v1702_v18 }
 0x337   : > { %v1614_v1 = vadd.f32 %v1613_v52, %v1612_v36  ;;  %v1705_v22 = vsel %vm1607_vm4, %v4212_v7, 0.0  ;;  %v1974_v48 = vmul.f32 %v4013_v28, %v1570_v41  ;;  %v4228_v38 = vadd.f32 %v1973_v11, %v4144_v16  ;;  %v4659_v52 = vld [vmem:[#allocation17_spill] sm:$0xff] }
 0x338   : > { %v2067_v24 = vmul.f32 %v4015_v4, %v1570_v41  ;;  %v4232_v51 = vadd.f32 %v2066_v10, %v4149_v17  ;;  %v2160_v60 = vmul.f32 %v4046_v53, %v1570_v41  ;;  %v4238_v46 = vadd.f32 %v2159_v57, %v4152_v5 }
 0x339   : > { %1615 = vadd.xlane.f32.xlu0 %v1614_v1  ;;  %v4235_v31 = vadd.f32 %v1974_v48, %v1968_v14  ;;  %v1706_v15 = vadd.f32 %v1705_v22, %v1704_v42  ;;  %v2253_v4 = vmul.f32 %v4062_v19, %v1570_v41  ;;  %v4247_v16 = vadd.f32 %v2252_v8, %v4162_v9  ;;  %v4660_v8 = vld [vmem:[#allocation18_spill] sm:$0xff] }
 0x33a   : > { %v4241_v28 = vadd.f32 %v2067_v24, %v2061_v50  ;;  %v4243_v47 = vadd.f32 %v2160_v60, %v2154_v45  ;;  %v1794_v39 = vsel %vm1607_vm4, %v4112_v40, 0.0  ;;  %v1793_v58 = vsel %vm1607_vm4, %v4049_v33, 0.0 }
 0x33b   : > { %v4249_v17 = vadd.f32 %v2253_v4, %v2247_v63  ;;  %v1796_v6 = vsel %vm1607_vm4, %v4205_v55, 0.0  ;;  %v1887_v25 = vsel %vm1607_vm4, %v4116_v29, 0.0  ;;  %v1798_v10 = vsel %vm1607_vm4, %v4216_v30, 0.0 }
 0x33c   : > { %v1886_v57 = vsel %vm1607_vm4, %v4659_v52, 0.0  ;;  %v1889_v1 = vsel %vm1607_vm4, %v4209_v23, 0.0  ;;  %v1980_v22 = vsel %vm1607_vm4, %v4135_v0, 0.0  ;;  %v1891_v60 = vsel %vm1607_vm4, %v4221_v43, 0.0 }
 0x33d   : > { %1707 = vadd.xlane.f32.xlu0 %v1706_v15  ;;  %v1888_v42 = vadd.f32 %v1887_v25, %v1886_v57  ;;  %v1979_v15 = vsel %vm1607_vm4, %v4660_v8, 0.0  ;;  %v1982_v4 = vsel %vm1607_vm4, %v4228_v38, 0.0 }
 0x33f   : > { %v1890_v24 = vadd.f32 %v1889_v1, %v1888_v42  ;;  %v2263_v1 = vsel %vm1607_vm4, %v4249_v17, 0.0 }
 0x3c6   : > { %v1616_v53 = vpop.xlane.xlu0 %1615 }
 0x3c7   : > { %v1617_v14 = vrot.slane %v1616_v53, 4 }
 0x3c9   : > { %v1618_v59 = vadd.f32 %v1617_v14, %v1616_v53  ;;  %v1981_v53 = vadd.f32 %v1980_v22, %v1979_v15  ;;  %v2073_v14 = vsel %vm1607_vm4, %v4141_v21, 0.0 }
 0x3cb   : > { %v1619_v5 = vrot.slane %v1618_v59, 2 }
 0x3cd   : > { %v1620_v62 = vadd.f32 %v1619_v5, %v1618_v59  ;;  %v1892_v59 = vadd.f32 %v1891_v60, %v1890_v24  ;;  %v1983_v5 = vadd.f32 %v1982_v4, %v1981_v53 }
 0x3cf   : > { %v1621_v20 = vrot.slane %v1620_v62, 1 }
 0x3d1   : > { %v1622_v54 = vadd.f32 %v1621_v20, %v1620_v62  ;;  %v1984_v62 = vsel %vm1607_vm4, %v4235_v31, 0.0  ;;  %v4661_v20 = vld [vmem:[#allocation19_spill] sm:$0xff] }
 0x3d3   : > { %2701 = vpush %v1622_v54  ;;  %v2072_v54 = vsel %vm1607_vm4, %v4661_v20, 0.0 }
 0x404   : > { %s2702_s9 = spop %2701 }
 0x405   : > { %s1624_s12 = smul.f32 0.0009765625, %s2702_s9 }
 0x407   : > { %v1625_v50 = vstv %s1624_s12 }
 0x408   : > { %v4252_v45 = vsub.f32 %v4657_v56, %v1625_v50  ;;  %v4255_v19 = vsub.f32 %v4104_v26, %v1625_v50  ;;  %v4257_v9 = vsub.f32 %v1605_v61, %v1625_v50  ;;  %v4259_v63 = vsub.f32 %v1606_v13, %v1625_v50 }
 0x409   : > { %v1795_v13 = vadd.f32 %v1794_v39, %v1793_v58  ;;  %v2075_v50 = vsel %vm1607_vm4, %v4232_v51, 0.0  ;;  %v2259_v58 = vsel %vm1607_vm4, %v4165_v12, 0.0 }
 0x40a   : > { %v1630_v41 = vmul.f32 %v4252_v45, %v4252_v45  ;;  %v1631_v34 = vmul.f32 %v4255_v19, %v4255_v19  ;;  %v1632_v49 = vmul.f32 %v4257_v9, %v4257_v9  ;;  %v1633_v56 = vmul.f32 %v4259_v63, %v4259_v63 }
 0x40b   : > { %v1797_v11 = vadd.f32 %v1796_v6, %v1795_v13  ;;  %v2170_v13 = vsel %vm1607_vm4, %v4243_v47, 0.0 }
 0x40c   : > { %v1634_v18 = vsel %vm1607_vm4, %v1630_v41, 0.0  ;;  %v1635_v26 = vsel %vm1607_vm4, %v1631_v34, 0.0  ;;  %v1637_v61 = vsel %vm1607_vm4, %v1632_v49, 0.0  ;;  %v1639_v27 = vsel %vm1607_vm4, %v1633_v56, 0.0 }
 0x40d   : > { %v1636_v44 = vadd.f32 %v1635_v26, %v1634_v18  ;;  %v1799_v48 = vadd.f32 %v1798_v10, %v1797_v11  ;;  %v2074_v41 = vadd.f32 %v2073_v14, %v2072_v54  ;;  %v2166_v34 = vsel %vm1607_vm4, %v4155_v3, 0.0  ;;  %v4662_v26 = vld [vmem:[#allocation25_spill] sm:$0xff]  ;;  %v1708_v14 = vpop.xlane.xlu0 %1707 }
 0x40e   : > { %v1985_v49 = vadd.f32 %v1984_v62, %v1983_v5  ;;  %v2077_v18 = vsel %vm1607_vm4, %v4241_v28, 0.0  ;;  %v2165_v39 = vsel %vm1607_vm4, %v4662_v26, 0.0 }
 0x40f   : > { %v1638_v32 = vadd.f32 %v1637_v61, %v1636_v44  ;;  %v2076_v56 = vadd.f32 %v2075_v50, %v2074_v41  ;;  %v2168_v44 = vsel %vm1607_vm4, %v4238_v46, 0.0  ;;  %v2167_v61 = vadd.f32 %v2166_v34, %v2165_v39 }
 0x411   : > { %v1640_v36 = vadd.f32 %v1639_v27, %v1638_v32  ;;  %v2078_v6 = vadd.f32 %v2077_v18, %v2076_v56  ;;  %v2169_v32 = vadd.f32 %v2168_v44, %v2167_v61  ;;  %v4663_v27 = vld [vmem:[#allocation24_spill] sm:$0xff] }
 0x412   : > { %v2258_v25 = vsel %vm1607_vm4, %v4663_v27, 0.0 }
 0x413   : > { %1641 = vadd.xlane.f32.xlu1 %v1640_v36  ;;  %v2261_v36 = vsel %vm1607_vm4, %v4247_v16, 0.0  ;;  %v2260_v11 = vadd.f32 %v2259_v58, %v2258_v25  ;;  %v2171_v10 = vadd.f32 %v2170_v13, %v2169_v32 }
 0x415   : > { %v2262_v57 = vadd.f32 %v2261_v36, %v2260_v11 }
 0x417   : > { %1800 = vadd.xlane.f32.xlu1 %v1799_v48  ;;  %v2264_v42 = vadd.f32 %v2263_v1, %v2262_v57 }
 0x41b   : > { %1893 = vadd.xlane.f32.xlu1 %v1892_v59  ;;  %v1709_v59 = vrot.slane %v1708_v14, 4 }
 0x41d   : > { %v1710_v5 = vadd.f32 %v1709_v59, %v1708_v14 }
 0x41f   : > { %1986 = vadd.xlane.f32.xlu1 %v1985_v49  ;;  %v1711_v62 = vrot.slane %v1710_v5, 2 }
 0x421   : > { %v1712_v50 = vadd.f32 %v1711_v62, %v1710_v5 }
 0x423   : > { %2079 = vadd.xlane.f32.xlu1 %v2078_v6  ;;  %v1713_v41 = vrot.slane %v1712_v50, 1 }
 0x425   : > { %v1714_v49 = vadd.f32 %v1713_v41, %v1712_v50 }
 0x427   : > { %2172 = vadd.xlane.f32.xlu1 %v2171_v10 }
 0x42b   : > { %2265 = vadd.xlane.f32.xlu1 %v2264_v42 }
 0x4a0   : > { %v1642_v22 = vpop.xlane.xlu1 %1641 }
 0x4a1   : > { %v1643_v48 = vrot.slane %v1642_v22, 4 }
 0x4a3   : > { %v1644_v24 = vadd.f32 %v1643_v48, %v1642_v22 }
 0x4a5   : > { %v1645_v60 = vrot.slane %v1644_v24, 2 }
 0x4a7   : > { %v1646_v15 = vadd.f32 %v1645_v60, %v1644_v24 }
 0x4a9   : > { %v1647_v4 = vrot.slane %v1646_v15, 1 }
 0x4ab   : > { %v1648_v53 = vadd.f32 %v1647_v4, %v1646_v15  ;;  %v1801_v15 = vpop.xlane.xlu1 %1800 }
 0x4ac   : > { %v1802_v4 = vrot.slane %v1801_v15, 4 }
 0x4ad   : > { %2703 = vpush %v1648_v53 }
 0x4ae   : > { %v1803_v53 = vadd.f32 %v1802_v4, %v1801_v15 }
 0x4b0   : > { %v1804_v14 = vrot.slane %v1803_v53, 2 }
 0x4b2   : > { %v1805_v5 = vadd.f32 %v1804_v14, %v1803_v53 }
 0x4b4   : > { %v1806_v62 = vrot.slane %v1805_v5, 1 }
 0x4b6   : > { %v1807_v50 = vadd.f32 %v1806_v62, %v1805_v5 }
 0x4de   : > { %s2704_s13 = spop %2703 }
 0x4df   : > { %s1650_s14 = smul.f32 0.0009765625, %s2704_s13 }
 0x4e1   : > { %s1651_s15 = sadd.f32 1e-05, %s1650_s14 }
 0x4e3   : > { %v1652_v54 = vstv %s1651_s15 }
 0x4e4   : > { %2816 = vrsqrt.f32 %v1652_v54 }
 0x4ee   : > { %v2817_v34 = vpop.eup %2816 }
 0x4ef   : > { %2705 = vpush %v2817_v34 }
 0x4f0   : > { %2707 = vpush %v1714_v49 }
 0x520   : > { %s2706_s23 = spop %2705 }
 0x521   : > { %v1655_v56 = vstv %s2706_s23  ;;  %s2708_s25 = spop %2707 }
 0x522   : > { %v1656_v18 = vmul.f32 %v1655_v56, %v4252_v45  ;;  %v1657_v39 = vmul.f32 %v1655_v56, %v4255_v19  ;;  %v1658_v44 = vmul.f32 %v1655_v56, %v4257_v9  ;;  %v1659_v61 = vmul.f32 %v1655_v56, %v4259_v63  ;;  %s1716_s26 = smul.f32 0.0009765625, %s2708_s25 }
 0x524   : > { %1660 = vst.msk [vmem:[%s4328_s30] sm:$0xff] %vm1607_vm4, %v1656_v18  ;;  %1661 = vst.msk [vmem:[%s4328_s30 + $0x8] sm:$0xff] %vm1607_vm4, %v1657_v39  ;;  %v1717_v45 = vstv %s1716_s26 }
 0x525   : > { %1662 = vst.msk [vmem:[%s4328_s30 + $0x10] sm:$0xff] %vm1607_vm4, %v1658_v44  ;;  %1663 = vst.msk [vmem:[%s4328_s30 + $0x18] sm:$0xff] %vm1607_vm4, %v1659_v61  ;;  %v1718_v19 = vsub.f32 %v4658_v35, %v1717_v45  ;;  %v1719_v9 = vsub.f32 %v4108_v37, %v1717_v45  ;;  %v1720_v63 = vsub.f32 %v4201_v2, %v1717_v45 }
 0x526   : > { %v1721_v58 = vsub.f32 %v4212_v7, %v1717_v45 }
 0x527   : > { %v1722_v6 = vmul.f32 %v1718_v19, %v1718_v19  ;;  %v1723_v32 = vmul.f32 %v1719_v9, %v1719_v9  ;;  %v1724_v13 = vmul.f32 %v1720_v63, %v1720_v63 }
 0x528   : > { %v1725_v25 = vmul.f32 %v1721_v58, %v1721_v58 }
 0x529   : > { %v1726_v36 = vsel %vm1607_vm4, %v1722_v6, 0.0  ;;  %v1727_v11 = vsel %vm1607_vm4, %v1723_v32, 0.0  ;;  %v1729_v57 = vsel %vm1607_vm4, %v1724_v13, 0.0 }
 0x52a   : > { %v1728_v10 = vadd.f32 %v1727_v11, %v1726_v36  ;;  %v1731_v35 = vsel %vm1607_vm4, %v1725_v25, 0.0 }
 0x52c   : > { %v1730_v1 = vadd.f32 %v1729_v57, %v1728_v10 }
 0x52e   : > { %v1732_v42 = vadd.f32 %v1731_v35, %v1730_v1 }
 0x530   : > { %1733 = vadd.xlane.f32.xlu0 %v1732_v42 }
 0x5bd   : > { %v1734_v37 = vpop.xlane.xlu0 %1733 }
 0x5be   : > { %v1735_v2 = vrot.slane %v1734_v37, 4 }
 0x5c0   : > { %v1736_v22 = vadd.f32 %v1735_v2, %v1734_v37  ;;  %v1894_v37 = vpop.xlane.xlu1 %1893 }
 0x5c1   : > { %v1895_v2 = vrot.slane %v1894_v37, 4 }
 0x5c2   : > { %v1737_v7 = vrot.slane %v1736_v22, 2 }
 0x5c4   : > { %v1738_v48 = vadd.f32 %v1737_v7, %v1736_v22  ;;  %v1896_v22 = vadd.f32 %v1895_v2, %v1894_v37 }
 0x5c6   : > { %v1739_v24 = vrot.slane %v1738_v48, 1  ;;  %v1897_v7 = vrot.slane %v1896_v22, 2 }
 0x5c8   : > { %v1740_v60 = vadd.f32 %v1739_v24, %v1738_v48  ;;  %v1898_v24 = vadd.f32 %v1897_v7, %v1896_v22 }
 0x5ca   : > { %2709 = vpush %v1740_v60  ;;  %v1899_v60 = vrot.slane %v1898_v24, 1 }
 0x5cc   : > { %v1900_v4 = vadd.f32 %v1899_v60, %v1898_v24 }
 0x5fb   : > { %s2710_s6 = spop %2709 }
 0x5fc   : > { %s1742_s0 = smul.f32 0.0009765625, %s2710_s6 }
 0x5fe   : > { %s1743_s11 = sadd.f32 1e-05, %s1742_s0 }
 0x600   : > { %v1744_v59 = vstv %s1743_s11 }
 0x601   : > { %2818 = vrsqrt.f32 %v1744_v59 }
 0x60b   : > { %v2819_v54 = vpop.eup %2818 }
 0x60c   : > { %2711 = vpush %v2819_v54 }
 0x60d   : > { %2713 = vpush %v1807_v50 }
 0x63d   : > { %s2712_s10 = spop %2711 }
 0x63e   : > { %v1747_v41 = vstv %s2712_s10  ;;  %s2714_s7 = spop %2713 }
 0x63f   : > { %v1748_v34 = vmul.f32 %v1747_v41, %v1718_v19  ;;  %v1749_v49 = vmul.f32 %v1747_v41, %v1719_v9  ;;  %v1750_v56 = vmul.f32 %v1747_v41, %v1720_v63  ;;  %v1751_v18 = vmul.f32 %v1747_v41, %v1721_v58  ;;  %s1809_s8 = smul.f32 0.0009765625, %s2714_s7 }
 0x641   : > { %2494 = vst.msk [vmem:[%s4328_s30 + $0x20] sm:$0xff] %vm1607_vm4, %v1748_v34  ;;  %2495 = vst.msk [vmem:[%s4328_s30 + $0x28] sm:$0xff] %vm1607_vm4, %v1749_v49  ;;  %v1810_v39 = vstv %s1809_s8 }
 0x642   : > { %2496 = vst.msk [vmem:[%s4328_s30 + $0x30] sm:$0xff] %vm1607_vm4, %v1750_v56  ;;  %2497 = vst.msk [vmem:[%s4328_s30 + $0x38] sm:$0xff] %vm1607_vm4, %v1751_v18  ;;  %v1811_v44 = vsub.f32 %v4049_v33, %v1810_v39  ;;  %v1812_v61 = vsub.f32 %v4112_v40, %v1810_v39  ;;  %v1813_v45 = vsub.f32 %v4205_v55, %v1810_v39 }
 0x643   : > { %v1814_v19 = vsub.f32 %v4216_v30, %v1810_v39 }
 0x644   : > { %v1815_v9 = vmul.f32 %v1811_v44, %v1811_v44  ;;  %v1816_v63 = vmul.f32 %v1812_v61, %v1812_v61  ;;  %v1817_v58 = vmul.f32 %v1813_v45, %v1813_v45 }
 0x645   : > { %v1818_v6 = vmul.f32 %v1814_v19, %v1814_v19 }
 0x646   : > { %v1819_v32 = vsel %vm1607_vm4, %v1815_v9, 0.0  ;;  %v1820_v13 = vsel %vm1607_vm4, %v1816_v63, 0.0  ;;  %v1822_v36 = vsel %vm1607_vm4, %v1817_v58, 0.0 }
 0x647   : > { %v1821_v25 = vadd.f32 %v1820_v13, %v1819_v32  ;;  %v1824_v33 = vsel %vm1607_vm4, %v1818_v6, 0.0 }
 0x649   : > { %v1823_v11 = vadd.f32 %v1822_v36, %v1821_v25  ;;  %v1987_v36 = vpop.xlane.xlu1 %1986 }
 0x64b   : > { %v1825_v10 = vadd.f32 %v1824_v33, %v1823_v11  ;;  %v1988_v11 = vrot.slane %v1987_v36, 4 }
 0x64d   : > { %1826 = vadd.xlane.f32.xlu0 %v1825_v10  ;;  %v1989_v33 = vadd.f32 %v1988_v11, %v1987_v36 }
 0x64f   : > { %v1990_v10 = vrot.slane %v1989_v33, 2 }
 0x6da   : > { %v1827_v40 = vpop.xlane.xlu0 %1826 }
 0x6db   : > { %v1828_v55 = vrot.slane %v1827_v40, 4 }
 0x6dd   : > { %v1829_v57 = vadd.f32 %v1828_v55, %v1827_v40  ;;  %v1991_v55 = vadd.f32 %v1990_v10, %v1989_v33 }
 0x6df   : > { %v1830_v30 = vrot.slane %v1829_v57, 2 }
 0x6e1   : > { %v1831_v1 = vadd.f32 %v1830_v30, %v1829_v57  ;;  %v1992_v57 = vrot.slane %v1991_v55, 1 }
 0x6e3   : > { %v1832_v35 = vrot.slane %v1831_v1, 1 }
 0x6e5   : > { %v1833_v42 = vadd.f32 %v1832_v35, %v1831_v1  ;;  %v1993_v1 = vadd.f32 %v1992_v57, %v1991_v55 }
 0x6e7   : > { %2715 = vpush %v1833_v42 }
 0x718   : > { %s2716_s9 = spop %2715 }
 0x719   : > { %s1835_s12 = smul.f32 0.0009765625, %s2716_s9 }
 0x71b   : > { %s1836_s13 = sadd.f32 1e-05, %s1835_s12 }
 0x71d   : > { %v1837_v48 = vstv %s1836_s13 }
 0x71e   : > { %2820 = vrsqrt.f32 %v1837_v48 }
 0x728   : > { %v2821_v15 = vpop.eup %2820 }
 0x729   : > { %2717 = vpush %v2821_v15 }
 0x72a   : > { %2719 = vpush %v1900_v4 }
 0x75a   : > { %s2718_s14 = spop %2717 }
 0x75b   : > { %v1840_v53 = vstv %s2718_s14  ;;  %s2720_s15 = spop %2719 }
 0x75c   : > { %v1841_v14 = vmul.f32 %v1840_v53, %v1811_v44  ;;  %v1842_v59 = vmul.f32 %v1840_v53, %v1812_v61  ;;  %v1843_v5 = vmul.f32 %v1840_v53, %v1813_v45  ;;  %v1844_v62 = vmul.f32 %v1840_v53, %v1814_v19  ;;  %s1902_s17 = smul.f32 0.0009765625, %s2720_s15 }
 0x75e   : > { %2502 = vst.msk [vmem:[%s4328_s30 + $0x40] sm:$0xff] %vm1607_vm4, %v1841_v14  ;;  %2503 = vst.msk [vmem:[%s4328_s30 + $0x48] sm:$0xff] %vm1607_vm4, %v1842_v59  ;;  %v1903_v54 = vstv %s1902_s17 }
 0x75f   : > { %2504 = vst.msk [vmem:[%s4328_s30 + $0x50] sm:$0xff] %vm1607_vm4, %v1843_v5  ;;  %2505 = vst.msk [vmem:[%s4328_s30 + $0x58] sm:$0xff] %vm1607_vm4, %v1844_v62  ;;  %v1904_v50 = vsub.f32 %v4659_v52, %v1903_v54  ;;  %v1905_v41 = vsub.f32 %v4116_v29, %v1903_v54  ;;  %v1906_v34 = vsub.f32 %v4209_v23, %v1903_v54 }
 0x760   : > { %v1907_v49 = vsub.f32 %v4221_v43, %v1903_v54 }
 0x761   : > { %v1908_v56 = vmul.f32 %v1904_v50, %v1904_v50  ;;  %v1909_v18 = vmul.f32 %v1905_v41, %v1905_v41  ;;  %v1910_v39 = vmul.f32 %v1906_v34, %v1906_v34 }
 0x762   : > { %v1911_v44 = vmul.f32 %v1907_v49, %v1907_v49 }
 0x763   : > { %v1912_v61 = vsel %vm1607_vm4, %v1908_v56, 0.0  ;;  %v1913_v45 = vsel %vm1607_vm4, %v1909_v18, 0.0  ;;  %v1915_v9 = vsel %vm1607_vm4, %v1910_v39, 0.0 }
 0x764   : > { %v1914_v19 = vadd.f32 %v1913_v45, %v1912_v61  ;;  %v1917_v52 = vsel %vm1607_vm4, %v1911_v44, 0.0  ;;  %v2080_v44 = vpop.xlane.xlu1 %2079 }
 0x765   : > { %v2081_v61 = vrot.slane %v2080_v44, 4 }
 0x766   : > { %v1916_v63 = vadd.f32 %v1915_v9, %v1914_v19 }
 0x767   : > { %v2082_v45 = vadd.f32 %v2081_v61, %v2080_v44 }
 0x768   : > { %v1918_v58 = vadd.f32 %v1917_v52, %v1916_v63 }
 0x769   : > { %v2083_v19 = vrot.slane %v2082_v45, 2 }
 0x76a   : > { %1919 = vadd.xlane.f32.xlu0 %v1918_v58 }
 0x76b   : > { %v2084_v63 = vadd.f32 %v2083_v19, %v2082_v45 }
 0x76d   : > { %v2085_v52 = vrot.slane %v2084_v63, 1 }
 0x7f7   : > { %v1920_v29 = vpop.xlane.xlu0 %1919 }
 0x7f8   : > { %v1921_v23 = vrot.slane %v1920_v29, 4 }
 0x7fa   : > { %v1922_v6 = vadd.f32 %v1921_v23, %v1920_v29  ;;  %v2086_v29 = vadd.f32 %v2085_v52, %v2084_v63 }
 0x7fc   : > { %v1923_v43 = vrot.slane %v1922_v6, 2 }
 0x7fe   : > { %v1924_v32 = vadd.f32 %v1923_v43, %v1922_v6 }
 0x800   : > { %v1925_v13 = vrot.slane %v1924_v32, 1 }
 0x802   : > { %v1926_v25 = vadd.f32 %v1925_v13, %v1924_v32 }
 0x804   : > { %2721 = vpush %v1926_v25 }
 0x835   : > { %s2722_s23 = spop %2721 }
 0x836   : > { %s1928_s25 = smul.f32 0.0009765625, %s2722_s23 }
 0x838   : > { %s1929_s26 = sadd.f32 1e-05, %s1928_s25 }
 0x83a   : > { %v1930_v40 = vstv %s1929_s26 }
 0x83b   : > { %2822 = vrsqrt.f32 %v1930_v40 }
 0x845   : > { %v2823_v30 = vpop.eup %2822 }
 0x846   : > { %2723 = vpush %v2823_v30 }
 0x847   : > { %2725 = vpush %v1993_v1 }
 0x877   : > { %s2724_s6 = spop %2723 }
 0x878   : > { %v1933_v35 = vstv %s2724_s6  ;;  %s2726_s0 = spop %2725 }
 0x879   : > { %v1934_v42 = vmul.f32 %v1933_v35, %v1904_v50  ;;  %v1935_v37 = vmul.f32 %v1933_v35, %v1905_v41  ;;  %v1936_v2 = vmul.f32 %v1933_v35, %v1906_v34  ;;  %v1937_v22 = vmul.f32 %v1933_v35, %v1907_v49  ;;  %s1995_s11 = smul.f32 0.0009765625, %s2726_s0 }
 0x87b   : > { %2510 = vst.msk [vmem:[%s4328_s30 + $0x60] sm:$0xff] %vm1607_vm4, %v1934_v42  ;;  %2511 = vst.msk [vmem:[%s4328_s30 + $0x68] sm:$0xff] %vm1607_vm4, %v1935_v37  ;;  %v1996_v7 = vstv %s1995_s11 }
 0x87c   : > { %2512 = vst.msk [vmem:[%s4328_s30 + $0x70] sm:$0xff] %vm1607_vm4, %v1936_v2  ;;  %2513 = vst.msk [vmem:[%s4328_s30 + $0x78] sm:$0xff] %vm1607_vm4, %v1937_v22  ;;  %v1997_v48 = vsub.f32 %v4660_v8, %v1996_v7  ;;  %v1998_v24 = vsub.f32 %v4135_v0, %v1996_v7  ;;  %v1999_v60 = vsub.f32 %v4228_v38, %v1996_v7 }
 0x87d   : > { %v2000_v15 = vsub.f32 %v4235_v31, %v1996_v7 }
 0x87e   : > { %v2001_v4 = vmul.f32 %v1997_v48, %v1997_v48  ;;  %v2002_v53 = vmul.f32 %v1998_v24, %v1998_v24  ;;  %v2003_v14 = vmul.f32 %v1999_v60, %v1999_v60 }
 0x87f   : > { %v2004_v59 = vmul.f32 %v2000_v15, %v2000_v15 }
 0x880   : > { %v2005_v5 = vsel %vm1607_vm4, %v2001_v4, 0.0  ;;  %v2006_v62 = vsel %vm1607_vm4, %v2002_v53, 0.0  ;;  %v2008_v50 = vsel %vm1607_vm4, %v2003_v14, 0.0 }
 0x881   : > { %v2007_v54 = vadd.f32 %v2006_v62, %v2005_v5  ;;  %v2010_v8 = vsel %vm1607_vm4, %v2004_v59, 0.0 }
 0x883   : > { %v2009_v41 = vadd.f32 %v2008_v50, %v2007_v54 }
 0x885   : > { %v2011_v34 = vadd.f32 %v2010_v8, %v2009_v41 }
 0x887   : > { %2012 = vadd.xlane.f32.xlu0 %v2011_v34 }
 0x914   : > { %v2013_v0 = vpop.xlane.xlu0 %2012 }
 0x915   : > { %v2014_v38 = vrot.slane %v2013_v0, 4 }
 0x917   : > { %v2015_v49 = vadd.f32 %v2014_v38, %v2013_v0 }
 0x919   : > { %v2016_v31 = vrot.slane %v2015_v49, 2 }
 0x91b   : > { %v2017_v56 = vadd.f32 %v2016_v31, %v2015_v49 }
 0x91d   : > { %v2018_v18 = vrot.slane %v2017_v56, 1 }
 0x91f   : > { %v2019_v39 = vadd.f32 %v2018_v18, %v2017_v56 }
 0x921   : > { %2727 = vpush %v2019_v39 }
 0x952   : > { %s2728_s10 = spop %2727 }
 0x953   : > { %s2021_s7 = smul.f32 0.0009765625, %s2728_s10 }
 0x955   : > { %s2022_s8 = sadd.f32 1e-05, %s2021_s7 }
 0x957   : > { %v2023_v9 = vstv %s2022_s8 }
 0x958   : > { %2824 = vrsqrt.f32 %v2023_v9 }
 0x962   : > { %v2825_v58 = vpop.eup %2824 }
 0x963   : > { %2729 = vpush %v2825_v58 }
 0x964   : > { %2731 = vpush %v2086_v29 }
 0x994   : > { %s2730_s9 = spop %2729 }
 0x995   : > { %v2026_v23 = vstv %s2730_s9  ;;  %s2732_s12 = spop %2731 }
 0x996   : > { %v2027_v6 = vmul.f32 %v2026_v23, %v1997_v48  ;;  %v2028_v43 = vmul.f32 %v2026_v23, %v1998_v24  ;;  %v2029_v32 = vmul.f32 %v2026_v23, %v1999_v60  ;;  %v2030_v13 = vmul.f32 %v2026_v23, %v2000_v15  ;;  %s2088_s13 = smul.f32 0.0009765625, %s2732_s12  ;;  %v2173_v15 = vpop.xlane.xlu1 %2172 }
 0x997   : > { %v2174_v4 = vrot.slane %v2173_v15, 4 }
 0x998   : > { %2518 = vst.msk [vmem:[%s4328_s30 + $0x80] sm:$0xff] %vm1607_vm4, %v2027_v6  ;;  %2519 = vst.msk [vmem:[%s4328_s30 + $0x88] sm:$0xff] %vm1607_vm4, %v2028_v43  ;;  %v2089_v25 = vstv %s2088_s13 }
 0x999   : > { %2520 = vst.msk [vmem:[%s4328_s30 + $0x90] sm:$0xff] %vm1607_vm4, %v2029_v32  ;;  %2521 = vst.msk [vmem:[%s4328_s30 + $0x98] sm:$0xff] %vm1607_vm4, %v2030_v13  ;;  %v2090_v36 = vsub.f32 %v4661_v20, %v2089_v25  ;;  %v2091_v11 = vsub.f32 %v4141_v21, %v2089_v25  ;;  %v2092_v33 = vsub.f32 %v4232_v51, %v2089_v25 }
 0x99a   : > { %v2093_v10 = vsub.f32 %v4241_v28, %v2089_v25  ;;  %v2175_v53 = vadd.f32 %v2174_v4, %v2173_v15  ;;  %v2266_v25 = vpop.xlane.xlu1 %2265 }
 0x99b   : > { %v2094_v40 = vmul.f32 %v2090_v36, %v2090_v36  ;;  %v2095_v55 = vmul.f32 %v2091_v11, %v2091_v11  ;;  %v2096_v57 = vmul.f32 %v2092_v33, %v2092_v33 }
 0x99c   : > { %v2097_v30 = vmul.f32 %v2093_v10, %v2093_v10  ;;  %v2176_v14 = vrot.slane %v2175_v53, 2 }
 0x99d   : > { %v2098_v1 = vsel %vm1607_vm4, %v2094_v40, 0.0  ;;  %v2099_v35 = vsel %vm1607_vm4, %v2095_v55, 0.0  ;;  %v2101_v37 = vsel %vm1607_vm4, %v2096_v57, 0.0 }
 0x99e   : > { %v2100_v42 = vadd.f32 %v2099_v35, %v2098_v1  ;;  %v2103_v20 = vsel %vm1607_vm4, %v2097_v30, 0.0  ;;  %v2177_v5 = vadd.f32 %v2176_v14, %v2175_v53 }
 0x9a0   : > { %v2102_v2 = vadd.f32 %v2101_v37, %v2100_v42  ;;  %v2178_v62 = vrot.slane %v2177_v5, 1 }
 0x9a2   : > { %v2104_v22 = vadd.f32 %v2103_v20, %v2102_v2  ;;  %v2179_v50 = vadd.f32 %v2178_v62, %v2177_v5 }
 0x9a4   : > { %2105 = vadd.xlane.f32.xlu0 %v2104_v22 }
 0xa31   : > { %v2106_v21 = vpop.xlane.xlu0 %2105 }
 0xa32   : > { %v2107_v51 = vrot.slane %v2106_v21, 4 }
 0xa34   : > { %v2108_v7 = vadd.f32 %v2107_v51, %v2106_v21 }
 0xa36   : > { %v2109_v28 = vrot.slane %v2108_v7, 2 }
 0xa38   : > { %v2110_v48 = vadd.f32 %v2109_v28, %v2108_v7 }
 0xa3a   : > { %v2111_v24 = vrot.slane %v2110_v48, 1 }
 0xa3c   : > { %v2112_v60 = vadd.f32 %v2111_v24, %v2110_v48 }
 0xa3e   : > { %2733 = vpush %v2112_v60 }
 0xa6f   : > { %s2734_s14 = spop %2733 }
 0xa70   : > { %s2114_s15 = smul.f32 0.0009765625, %s2734_s14  ;;  %s2552_s14 = sshll.u32 %s2995_s22, 12 }
 0xa71   : > { %s4461_s22 = scalar_lea.sflag [#allocation4], %s242_s16 }
 0xa72   : > { %s2115_s17 = sadd.f32 1e-05, %s2114_s15  ;;  %s2329_s15 = sshll.u32 %s4328_s30, 4  ;;  %s4449_s15 = int_to_ptr.vmem [resolvable:$true] %s2329_s15 }
 0xa74   : > { %v2116_v59 = vstv %s2115_s17 }
 0xa75   : > { %2826 = vrsqrt.f32 %v2116_v59 }
 0xa7f   : > { %v2827_v54 = vpop.eup %2826 }
 0xa80   : > { %2735 = vpush %v2827_v54 }
 0xa81   : > { %2737 = vpush %v2179_v50 }
 0xab1   : > { %s2736_s23 = spop %2735 }
 0xab2   : > { %v2119_v41 = vstv %s2736_s23  ;;  %s2738_s25 = spop %2737 }
 0xab3   : > { %v2120_v8 = vmul.f32 %v2119_v41, %v2090_v36  ;;  %v2121_v34 = vmul.f32 %v2119_v41, %v2091_v11  ;;  %v2122_v0 = vmul.f32 %v2119_v41, %v2092_v33  ;;  %v2123_v38 = vmul.f32 %v2119_v41, %v2093_v10  ;;  %s2181_s26 = smul.f32 0.0009765625, %s2738_s25 }
 0xab4   : > { %v2267_v36 = vrot.slane %v2266_v25, 4 }
 0xab5   : > { %2526 = vst.msk [vmem:[%s4328_s30 + $0xa0] sm:$0xff] %vm1607_vm4, %v2120_v8  ;;  %2527 = vst.msk [vmem:[%s4328_s30 + $0xa8] sm:$0xff] %vm1607_vm4, %v2121_v34  ;;  %v2182_v49 = vstv %s2181_s26  ;;  %s4447_s26 = scalar_lea.hbm %s4507_s5, %s2552_s14 }
 0xab6   : > { %2528 = vst.msk [vmem:[%s4328_s30 + $0xb0] sm:$0xff] %vm1607_vm4, %v2122_v0  ;;  %2529 = vst.msk [vmem:[%s4328_s30 + $0xb8] sm:$0xff] %vm1607_vm4, %v2123_v38  ;;  %v2183_v31 = vsub.f32 %v4662_v26, %v2182_v49  ;;  %v2184_v56 = vsub.f32 %v4155_v3, %v2182_v49  ;;  %v2185_v18 = vsub.f32 %v4238_v46, %v2182_v49 }
 0xab7   : > { %v2186_v39 = vsub.f32 %v4243_v47, %v2182_v49  ;;  %v2268_v11 = vadd.f32 %v2267_v36, %v2266_v25 }
 0xab8   : > { %v2187_v44 = vmul.f32 %v2183_v31, %v2183_v31  ;;  %v2188_v61 = vmul.f32 %v2184_v56, %v2184_v56  ;;  %v2189_v45 = vmul.f32 %v2185_v18, %v2185_v18 }
 0xab9   : > { %v2190_v19 = vmul.f32 %v2186_v39, %v2186_v39  ;;  %v2269_v33 = vrot.slane %v2268_v11, 2 }
 0xaba   : > { %v2191_v9 = vsel %vm1607_vm4, %v2187_v44, 0.0  ;;  %v2192_v63 = vsel %vm1607_vm4, %v2188_v61, 0.0  ;;  %v2194_v58 = vsel %vm1607_vm4, %v2189_v45, 0.0 }
 0xabb   : > { %v2193_v52 = vadd.f32 %v2192_v63, %v2191_v9  ;;  %v2196_v26 = vsel %vm1607_vm4, %v2190_v19, 0.0  ;;  %v2270_v40 = vadd.f32 %v2269_v33, %v2268_v11 }
 0xabd   : > { %v2195_v29 = vadd.f32 %v2194_v58, %v2193_v52  ;;  %v2271_v55 = vrot.slane %v2270_v40, 1 }
 0xabf   : > { %v2197_v23 = vadd.f32 %v2196_v26, %v2195_v29  ;;  %v2272_v30 = vadd.f32 %v2271_v55, %v2270_v40 }
 0xac1   : > { %2198 = vadd.xlane.f32.xlu0 %v2197_v23 }
 0xb4e   : > { %v2199_v3 = vpop.xlane.xlu0 %2198 }
 0xb4f   : > { %v2200_v46 = vrot.slane %v2199_v3, 4 }
 0xb51   : > { %v2201_v6 = vadd.f32 %v2200_v46, %v2199_v3 }
 0xb53   : > { %v2202_v47 = vrot.slane %v2201_v6, 2 }
 0xb55   : > { %v2203_v43 = vadd.f32 %v2202_v47, %v2201_v6 }
 0xb57   : > { %v2204_v32 = vrot.slane %v2203_v43, 1 }
 0xb59   : > { %v2205_v13 = vadd.f32 %v2204_v32, %v2203_v43 }
 0xb5b   : > { %2739 = vpush %v2205_v13 }
 0xb8c   : > { %s2740_s6 = spop %2739 }
 0xb8d   : > { %s2207_s0 = smul.f32 0.0009765625, %s2740_s6  ;;  %s2862_s6 = scalar_lea.vmem %s4449_s15, 4096 }
 0xb8e   : > { %p2863_p10 = scmp.ne.s32.totalorder %s4449_s15, %s2862_s6 }
 0xb8f   : > { %s2208_s11 = sadd.f32 1e-05, %s2207_s0  ;;  %s2941_s0 = smov [#allocation8]  }
 0xb90   : > { %p2864_p0 = pnand %p2863_p10, %p4664_p12 }
 0xb91   : > { %v2209_v10 = vstv %s2208_s11  ;;  %s2866_s11 = sshll.u32 %s2941_s0, 4  ;;  %s2867_s11 = int_to_ptr.vmem [resolvable:$false] %s2866_s11 }
 0xb92   : > { %2828 = vrsqrt.f32 %v2209_v10  ;;  %p2865_p7 = pneg %p2864_p0  ;;  %p2869_p8 = scmp.lt.s32.totalorder %s4449_s15, %s2867_s11 }
 0xb9c   : > { %v2829_v57 = vpop.eup %2828 }
 0xb9d   : > { %2741 = vpush %v2829_v57 }
 0xb9e   : > { %2743 = vpush %v2272_v30 }
 0xbce   : > { %s2742_s10 = spop %2741 }
 0xbcf   : > { %v2212_v1 = vstv %s2742_s10  ;;  %s2744_s7 = spop %2743  ;;  %s2868_s10 = scalar_lea.vmem %s2867_s11, 8192 }
 0xbd0   : > { %v2213_v35 = vmul.f32 %v2212_v1, %v2183_v31  ;;  %v2214_v42 = vmul.f32 %v2212_v1, %v2184_v56  ;;  %v2215_v37 = vmul.f32 %v2212_v1, %v2185_v18  ;;  %v2216_v2 = vmul.f32 %v2212_v1, %v2186_v39  ;;  %s2274_s8 = smul.f32 0.0009765625, %s2744_s7  ;;  %p2870_p11 = scmp.lt.s32.totalorder %s2868_s10, %s2862_s6 }
 0xbd2   : > { %2534 = vst.msk [vmem:[%s4328_s30 + $0xc0] sm:$0xff] %vm1607_vm4, %v2213_v35  ;;  %2535 = vst.msk [vmem:[%s4328_s30 + $0xc8] sm:$0xff] %vm1607_vm4, %v2214_v42  ;;  %v2275_v20 = vstv %s2274_s8  ;;  %p2871_p13 = por %p2870_p11, %p2869_p8 }
 0xbd3   : > { %2536 = vst.msk [vmem:[%s4328_s30 + $0xd0] sm:$0xff] %vm1607_vm4, %v2215_v37  ;;  %2537 = vst.msk [vmem:[%s4328_s30 + $0xd8] sm:$0xff] %vm1607_vm4, %v2216_v2  ;;  %v2276_v22 = vsub.f32 %v4663_v27, %v2275_v20  ;;  %v2277_v21 = vsub.f32 %v4165_v12, %v2275_v20  ;;  %v2278_v51 = vsub.f32 %v4247_v16, %v2275_v20 }
 0xbd4   : > { %v2279_v7 = vsub.f32 %v4249_v17, %v2275_v20  ;;  %p2872_p1 = pnand %p2871_p13, %p2865_p7 }
 0xbd5   : > { %v2280_v28 = vmul.f32 %v2276_v22, %v2276_v22  ;;  %v2281_v48 = vmul.f32 %v2277_v21, %v2277_v21  ;;  %v2282_v24 = vmul.f32 %v2278_v51, %v2278_v51 }
 0xbd6   : > { %v2283_v60 = vmul.f32 %v2279_v7, %v2279_v7 }
 0xbd7   : > { %v2284_v15 = vsel %vm1607_vm4, %v2280_v28, 0.0  ;;  %v2285_v4 = vsel %vm1607_vm4, %v2281_v48, 0.0  ;;  %v2287_v14 = vsel %vm1607_vm4, %v2282_v24, 0.0 }
 0xbd8   : > { %v2286_v53 = vadd.f32 %v2285_v4, %v2284_v15  ;;  %v2289_v27 = vsel %vm1607_vm4, %v2283_v60, 0.0 }
 0xbda   : > { %v2288_v59 = vadd.f32 %v2287_v14, %v2286_v53 }
 0xbdc   : > { %v2290_v5 = vadd.f32 %v2289_v27, %v2288_v59 }
 0xbde   : > { %2291 = vadd.xlane.f32.xlu0 %v2290_v5 }
 0xc6b   : > { %v2292_v12 = vpop.xlane.xlu0 %2291 }
 0xc6c   : > { %v2293_v16 = vrot.slane %v2292_v12, 4 }
 0xc6e   : > { %v2294_v17 = vadd.f32 %v2293_v16, %v2292_v12 }
 0xc70   : > { %v2295_v62 = vrot.slane %v2294_v17, 2 }
 0xc72   : > { %v2296_v54 = vadd.f32 %v2295_v62, %v2294_v17 }
 0xc74   : > { %v2297_v50 = vrot.slane %v2296_v54, 1 }
 0xc76   : > { %v2298_v41 = vadd.f32 %v2297_v50, %v2296_v54 }
 0xc78   : > { %2745 = vpush %v2298_v41 }
 0xca9   : > { %s2746_s9 = spop %2745 }
 0xcaa   : > { %s2300_s12 = smul.f32 0.0009765625, %s2746_s9 }
 0xcac   : > { %s2301_s13 = sadd.f32 1e-05, %s2300_s12 }
 0xcae   : > { %v2302_v8 = vstv %s2301_s13 }
 0xcaf   : > { %2830 = vrsqrt.f32 %v2302_v8 }
 0xcb9   : > { %v2831_v34 = vpop.eup %2830 }
 0xcba   : > { %2747 = vpush %v2831_v34 }
 0xceb   : > { %s2748_s17 = spop %2747 }
 0xcec   : > { %v2305_v0 = vstv %s2748_s17 }
 0xced   : > { %v2306_v38 = vmul.f32 %v2305_v0, %v2276_v22  ;;  %v2307_v49 = vmul.f32 %v2305_v0, %v2277_v21  ;;  %v2308_v31 = vmul.f32 %v2305_v0, %v2278_v51  ;;  %v2309_v56 = vmul.f32 %v2305_v0, %v2279_v7 }
 0xcef   : > { %2542 = vst.msk [vmem:[%s4328_s30 + $0xe0] sm:$0xff] %vm1607_vm4, %v2306_v38  ;;  %2543 = vst.msk [vmem:[%s4328_s30 + $0xe8] sm:$0xff] %vm1607_vm4, %v2307_v49 }
 0xcf0   : > { %2544 = vst.msk [vmem:[%s4328_s30 + $0xf0] sm:$0xff] %vm1607_vm4, %v2308_v31  ;;  %2545 = vst.msk [vmem:[%s4328_s30 + $0xf8] sm:$0xff] %vm1607_vm4, %v2309_v56 }
 0xcf1   : > { %2875 = shalt.err (!%p2872_p1)
}
 0xcf2   : > { %s2876_s16 = scalar_lea.hbm %s4447_s26, 4096  ;;  %s2880_s8 = scalar_lea.hbm %s4507_s5, 8192 }
 0xcf3   : > { %p2877_p2 = scmp.ne.s32.totalorder %s4447_s26, %s2876_s16  ;;  %p2881_p9 = scmp.lt.u32.totalorder %s4447_s26, %s4507_s5 }
 0xcf4   : > { %p2882_p5 = scmp.lt.u32.totalorder %s2880_s8, %s2876_s16  ;;  %p2884_p10 = scmp.lt.u32.totalorder %s2876_s16, %s4447_s26 }
 0xcf5   : > { %p2878_p3 = pnand %p2877_p2, %p4664_p12 }
 0xcf6   : > { %p2883_p6 = por %p2882_p5, %p2881_p9 }
 0xcf7   : > { %p2879_p4 = pneg %p2878_p3 }
 0xcf8   : > { %p2885_p0 = por %p2884_p10, %p2883_p6 }
 0xcfa   : > { %p2886_p7 = pnand %p2885_p0, %p2879_p4 }
 0xcfc   : > { %2889 = shalt.err (!%p2886_p7)
}
 0xcfd   : > { %s2942_s13 = smov 128   ;;  %s2943_s14 = smov 8  }
 0xcfe   : > { %2757 = dma.vmem_to_hbm [thread:$0]  (%p4664_p12), %s4449_s15, 4096, %s4447_s26, %s4461_s22, %s2942_s13, %s2942_s13, %s2943_s14  }
 0xcff PF: > { %p2774_p8 = scmp.ge.s32.totalorder %s2932_s21, 2  ;;  %s2344_s17 = sand.u32 1, %s2920_s18  }
 0xd00   : > { %p4665_p11 = scmp.ne.s32.totalorder %s4554_s29, 0  ;;  %s2345_s23 = scalar_lea.sflag [#allocation4], %s2344_s17 }
 0xd02   : > { %p2767_p13 = pnand %p2774_p8, %p4665_p11 }
 0xd04   : > { %2915 = dma.done.wait (!%p2767_p13), %s2345_s23, 4096  }
 0xd05   : > { %2917 = vsyncadd (!%p2767_p13), %s2345_s23, 4294963200  ;;  %p17_p1 = scmp.ge.s32.totalorder %s2999_s24, 4   ;;  %s4666_s18 = smov %s2924_s19 }
 0xd06   : > { %s4667_s19 = smov %s2928_s20  ;;  %s4668_s20 = smov %s3010_s27 }
 0xd07   : > { %s4669_s21 = smov %s2999_s24  ;;  %19 = sbr.rel (!%p17_p1) target bundleno = 7 (0x7), region = 94 }
 0xd0e   :  { %2350 = vsyncpa [#allocation4], 1 }
 0xd0f   :  { %2352 = vsyncpa [#allocation4 + $0x1], 1 }
 0xd10   :  { %2353 = vsyncpa [#allocation5], 1 }
 0xd11   :  { %2355 = vsyncpa [#allocation5 + $0x1], 1 }
 0xd12   :  { %2356 = vsyncpa [#allocation7], 1 }

</bundles_post_ra>
